<compile_context>
chip_gen: v7x
topology: tpu7x:2x2x1
jax: 0.10.0
libtpu: 0.0.40
codegen_flags: <defaults>
</compile_context>

<pallas_src>
import math
import functools

import numpy as np
import jax
import jax.numpy as jnp
from jax.experimental import pallas as pl
from jax.experimental.pallas import tpu as pltpu


_MXU_DTYPE = jnp.bfloat16   # MXU operand dtype; accumulation stays float32.
_LN_EPS = 1e-5              # PyTorch nn.LayerNorm default.


# ----------------------- reference-quirk reshape (const) -----------------------

def _make_scramble(Lq, heads, head_dim):
    """Constant 0/1 matrices reproducing the reference's reshape quirk:
    (N, H, Lq, hd).reshape(N, Lq, E) WITHOUT un-permuting the head axis.
    out[:, hp*hd:(hp+1)*hd] = sum_g S[hp, g] @ o_g  (o_g = per-head attention)."""
    S = np.zeros((heads, heads, Lq, Lq), np.float32)
    for hp in range(heads):
        for l in range(Lq):
            idx = l * heads + hp
            S[hp, idx // Lq, l, idx % Lq] = 1.0
    nz = S.reshape(heads, heads, -1).any(axis=-1)
    return S, nz


# ------------------------------ in-kernel helpers ------------------------------

def _mha_scrambled(q, k, v, masked, sel_ref, *, heads, head_dim, inv_scale, nz):
    """Multi-head attention; returns the reference's quirk-reshaped (Lq, E) tensor."""
    qb = q.astype(_MXU_DTYPE)
    kb = k.astype(_MXU_DTYPE)
    vb = v.astype(_MXU_DTYPE)
    outs = []
    for h in range(heads):
        sl = slice(h * head_dim, (h + 1) * head_dim)
        # q @ k^T without materializing a transpose (contract head dim of both).
        s = jax.lax.dot_general(qb[:, sl], kb[:, sl],
                                dimension_numbers=(((1,), (1,)), ((), ())),
                                preferred_element_type=jnp.float32)
        # Reference quirk: mask BEFORE scaling; scale by 1/sqrt(embed_size).
        s = jnp.where(masked, jnp.float32(-1e20), s)
        s = s * inv_scale
        s = s - jnp.max(s, axis=-1, keepdims=True)
        e = jnp.exp(s)
        p = e * pl.reciprocal(jnp.sum(e, axis=-1, keepdims=True), approx=True)
        outs.append(jnp.dot(p.astype(_MXU_DTYPE), vb[:, sl],
                            preferred_element_type=jnp.float32))
    # Quirk reshape as constant selection matmuls (VMEM-local, layout-safe).
    blocks = []
    for hp in range(heads):
        acc = None
        for g in range(heads):
            if not nz[hp, g]:
                continue
            t = jnp.dot(sel_ref[hp, g], outs[g], preferred_element_type=jnp.float32)
            acc = t if acc is None else acc + t
        blocks.append(acc)
    return jnp.concatenate(blocks, axis=-1)          # (Lq, E), lane-dense


def _outproj_res_ln(att_s, x, wo, bo, gamma, beta, eps):
    h = jnp.dot(att_s.astype(_MXU_DTYPE), wo, preferred_element_type=jnp.float32) + bo
    h = h + x
    mu = jnp.mean(h, axis=-1, keepdims=True)
    var = jnp.mean(jnp.square(h - mu), axis=-1, keepdims=True)
    return (h - mu) * jax.lax.rsqrt(var + eps) * gamma + beta


def _ffn_res_ln(x, w1, b1, w2, b2, gamma, beta, eps):
    h = jnp.dot(x.astype(_MXU_DTYPE), w1, preferred_element_type=jnp.float32) + b1
    h = jnp.maximum(h, 0.0)
    h = jnp.dot(h.astype(_MXU_DTYPE), w2, preferred_element_type=jnp.float32) + b2
    h = h + x
    mu = jnp.mean(h, axis=-1, keepdims=True)
    var = jnp.mean(jnp.square(h - mu), axis=-1, keepdims=True)
    return (h - mu) * jax.lax.rsqrt(var + eps) * gamma + beta


# --------------------------------- kernels --------------------------------------

def _enc_block_kernel(x_ref, kmask_ref, sel_ref,
                      wqkv_ref, wo_ref, bo_ref, ln1g_ref, ln1b_ref,
                      w1_ref, b1_ref, w2_ref, b2_ref, ln2g_ref, ln2b_ref,
                      o_ref, *, heads, head_dim, inv_scale, eps, nz):
    """Whole encoder TransformerBlock (self-attention) for one batch element."""
    E = heads * head_dim
    x = x_ref[0]                                                     # (Lq, E)
    proj = jnp.dot(x.astype(_MXU_DTYPE), wqkv_ref[...],
                   preferred_element_type=jnp.float32)               # (Lq, 3E)
    q, k, v = proj[:, :E], proj[:, E:2 * E], proj[:, 2 * E:]
    masked = kmask_ref[0] == 0.0                                     # (1, Lk) pad mask
    att_s = _mha_scrambled(q, k, v, masked, sel_ref, heads=heads,
                           head_dim=head_dim, inv_scale=inv_scale, nz=nz)
    y = _outproj_res_ln(att_s, x, wo_ref[...], bo_ref[...],
                        ln1g_ref[...], ln1b_ref[...], eps)
    o_ref[0] = _ffn_res_ln(y, w1_ref[...], b1_ref[...], w2_ref[...], b2_ref[...],
                           ln2g_ref[...], ln2b_ref[...], eps)


def _dec_self_kernel(x_ref, sel_ref, wqkv_ref, wo_ref, bo_ref, lng_ref, lnb_ref,
                     o_ref, *, heads, head_dim, inv_scale, eps, nz):
    """Decoder causal self-attention + fc_out + residual + LayerNorm (fused)."""
    E = heads * head_dim
    x = x_ref[0]
    proj = jnp.dot(x.astype(_MXU_DTYPE), wqkv_ref[...],
                   preferred_element_type=jnp.float32)
    q, k, v = proj[:, :E], proj[:, E:2 * E], proj[:, 2 * E:]
    Lq = q.shape[0]
    qi = jax.lax.broadcasted_iota(jnp.int32, (Lq, Lq), 0)
    ki = jax.lax.broadcasted_iota(jnp.int32, (Lq, Lq), 1)
    masked = qi < ki                                   # causal (tgt_mask == 0)
    att_s = _mha_scrambled(q, k, v, masked, sel_ref, heads=heads,
                           head_dim=head_dim, inv_scale=inv_scale, nz=nz)
    o_ref[0] = _outproj_res_ln(att_s, x, wo_ref[...], bo_ref[...],
                               lng_ref[...], lnb_ref[...], eps)


def _cross_block_kernel(xq_ref, kvin_ref, kmask_ref, sel_ref,
                        wq_ref, wkv_ref, wo_ref, bo_ref, ln1g_ref, ln1b_ref,
                        w1_ref, b1_ref, w2_ref, b2_ref, ln2g_ref, ln2b_ref,
                        o_ref, *, heads, head_dim, inv_scale, eps, nz):
    """Whole decoder TransformerBlock (cross-attention onto enc_out) for one batch."""
    E = heads * head_dim
    x = xq_ref[0]                                       # query == residual (ref)
    q = jnp.dot(x.astype(_MXU_DTYPE), wq_ref[...],
                preferred_element_type=jnp.float32)
    kv = jnp.dot(kvin_ref[0].astype(_MXU_DTYPE), wkv_ref[...],
                 preferred_element_type=jnp.float32)
    k, v = kv[:, :E], kv[:, E:]
    masked = kmask_ref[0] == 0.0
    att_s = _mha_scrambled(q, k, v, masked, sel_ref, heads=heads,
                           head_dim=head_dim, inv_scale=inv_scale, nz=nz)
    y = _outproj_res_ln(att_s, x, wo_ref[...], bo_ref[...],
                        ln1g_ref[...], ln1b_ref[...], eps)
    o_ref[0] = _ffn_res_ln(y, w1_ref[...], b1_ref[...], w2_ref[...], b2_ref[...],
                           ln2g_ref[...], ln2b_ref[...], eps)


def _linear_bias_kernel(x_ref, w_ref, b_ref, o_ref):
    o_ref[0] = jnp.dot(x_ref[0].astype(_MXU_DTYPE), w_ref[...],
                       preferred_element_type=jnp.float32) + b_ref[...]


# ------------------------------ pallas_call wrappers ----------------------------

def _wspec(*shape):
    nd = len(shape)
    return pl.BlockSpec(shape, lambda b, _nd=nd: (0,) * _nd)


def encoder_block(x, kmask, p, heads):
    N, Lq, E = x.shape
    Lk = kmask.shape[-1]
    hd = E // heads
    F = p["W1"].shape[1]
    sel, nz = _make_scramble(Lq, heads, hd)
    kern = functools.partial(_enc_block_kernel, heads=heads, head_dim=hd,
                             inv_scale=1.0 / math.sqrt(float(E)), eps=_LN_EPS, nz=nz)
    return pl.pallas_call(
        kern,
        out_shape=jax.ShapeDtypeStruct((N, Lq, E), jnp.float32),
        grid=(N,),
        in_specs=[
            pl.BlockSpec((1, Lq, E), lambda b: (b, 0, 0)),
            pl.BlockSpec((1, 1, Lk), lambda b: (b, 0, 0)),
            _wspec(heads, heads, Lq, Lq),
            _wspec(E, 3 * E), _wspec(E, E), _wspec(1, E), _wspec(1, E), _wspec(1, E),
            _wspec(E, F), _wspec(1, F), _wspec(F, E), _wspec(1, E),
            _wspec(1, E), _wspec(1, E),
        ],
        out_specs=pl.BlockSpec((1, Lq, E), lambda b: (b, 0, 0)),
        compiler_params=pltpu.CompilerParams(dimension_semantics=("parallel",)),
    )(x, kmask, jnp.asarray(sel),
      p["attn"]["Wqkv"], p["attn"]["Wo"], p["attn"]["bo"],
      p["ln1_g"], p["ln1_b"],
      p["W1"], p["b1"], p["W2"], p["b2"], p["ln2_g"], p["ln2_b"])


def decoder_self_block(x, p, heads):
    N, Lq, E = x.shape
    hd = E // heads
    sel, nz = _make_scramble(Lq, heads, hd)
    kern = functools.partial(_dec_self_kernel, heads=heads, head_dim=hd,
                             inv_scale=1.0 / math.sqrt(float(E)), eps=_LN_EPS, nz=nz)
    return pl.pallas_call(
        kern,
        out_shape=jax.ShapeDtypeStruct((N, Lq, E), jnp.float32),
        grid=(N,),
        in_specs=[
            pl.BlockSpec((1, Lq, E), lambda b: (b, 0, 0)),
            _wspec(heads, heads, Lq, Lq),
            _wspec(E, 3 * E), _wspec(E, E), _wspec(1, E), _wspec(1, E), _wspec(1, E),
        ],
        out_specs=pl.BlockSpec((1, Lq, E), lambda b: (b, 0, 0)),
        compiler_params=pltpu.CompilerParams(dimension_semantics=("parallel",)),
    )(x, jnp.asarray(sel),
      p["attn"]["Wqkv"], p["attn"]["Wo"], p["attn"]["bo"], p["ln_g"], p["ln_b"])


def cross_block(xq, kv_in, kmask, p, heads):
    N, Lq, E = xq.shape
    Lk = kv_in.shape[1]
    hd = E // heads
    F = p["W1"].shape[1]
    sel, nz = _make_scramble(Lq, heads, hd)
    kern = functools.partial(_cross_block_kernel, heads=heads, head_dim=hd,
                             inv_scale=1.0 / math.sqrt(float(E)), eps=_LN_EPS, nz=nz)
    return pl.pallas_call(
        kern,
        out_shape=jax.ShapeDtypeStruct((N, Lq, E), jnp.float32),
        grid=(N,),
        in_specs=[
            pl.BlockSpec((1, Lq, E), lambda b: (b, 0, 0)),
            pl.BlockSpec((1, Lk, E), lambda b: (b, 0, 0)),
            pl.BlockSpec((1, 1, Lk), lambda b: (b, 0, 0)),
            _wspec(heads, heads, Lq, Lq),
            _wspec(E, E), _wspec(E, 2 * E), _wspec(E, E), _wspec(1, E),
            _wspec(1, E), _wspec(1, E),
            _wspec(E, F), _wspec(1, F), _wspec(F, E), _wspec(1, E),
            _wspec(1, E), _wspec(1, E),
        ],
        out_specs=pl.BlockSpec((1, Lq, E), lambda b: (b, 0, 0)),
        compiler_params=pltpu.CompilerParams(dimension_semantics=("parallel",)),
    )(xq, kv_in, kmask, jnp.asarray(sel),
      p["attn"]["Wq"], p["attn"]["Wkv"], p["attn"]["Wo"], p["attn"]["bo"],
      p["ln1_g"], p["ln1_b"],
      p["W1"], p["b1"], p["W2"], p["b2"], p["ln2_g"], p["ln2_b"])


def linear_bias(x, w, b):
    """x:(N,L,K) @ w:(K,M)[bf16] + b:(1,M) -> (N,L,M) f32."""
    N, L, K = x.shape
    M = w.shape[1]
    return pl.pallas_call(
        _linear_bias_kernel,
        out_shape=jax.ShapeDtypeStruct((N, L, M), jnp.float32),
        grid=(N,),
        in_specs=[pl.BlockSpec((1, L, K), lambda b: (b, 0, 0)),
                  _wspec(K, M), _wspec(1, M)],
        out_specs=pl.BlockSpec((1, L, M), lambda b: (b, 0, 0)),
        compiler_params=pltpu.CompilerParams(dimension_semantics=("parallel",)),
    )(x, w, b)


# --------------------------- model forward (glue) ---------------------------

def positional_encoding(max_seq_len, dim, n=10000):
    pos = np.arange(max_seq_len)[:, None].astype(np.float64)
    i = np.arange(dim // 2)[None, :].astype(np.float64)
    denom = np.power(float(n), 2.0 * i / dim)
    pe = np.zeros((max_seq_len, dim), dtype=np.float64)
    pe[:, 0::2] = np.sin(pos / denom)
    pe[:, 1::2] = np.cos(pos / denom)
    return pe


def embedding_fwd(embed_w, pe, tokens):
    # Embedding lookup as an XLA gather (O(M*E) DMA, no one-hot matmul).
    N = tokens.shape[0]
    x = jnp.take(embed_w, tokens, axis=0)           # (N, L, E)
    # Reference quirk: pe indexed by the *batch size*, broadcast over seq & batch.
    x = x + pe[N]
    # TODO(synk): dropout after the embedding is identity (eval-mode semantics).
    return x


def transformer_fwd(params, src, trg, heads, src_pad_idx=0):
    N, Ls = src.shape
    # Key-validity mask only (N,1,Ls); the causal mask is built inside the
    # decoder self-attention kernel — no (N,L,L) fp32 masks in HBM.
    src_kmask = (src != src_pad_idx).astype(jnp.float32).reshape(N, 1, Ls)

    # ---------------- Encoder ----------------
    x = embedding_fwd(params["enc_embed"], params["enc_pe"], src)
    for lp in params["enc_layers"]:
        x = encoder_block(x, src_kmask, lp, heads)
    enc_out = x

    # ---------------- Decoder ----------------
    y = embedding_fwd(params["dec_embed"], params["dec_pe"], trg)
    for lp in params["dec_layers"]:
        y = decoder_self_block(y, lp, heads)
        y = cross_block(y, enc_out, src_kmask, lp["tblock"], heads)

    return linear_bias(y, params["Wfc"], params["bfc"])


# ------------------------------ parameter init ------------------------------

def init_params(key, src_vocab, tgt_vocab, E, F, num_layers,
                max_seq_len_enc=100, max_seq_len_dec=128, n=10000):
    keys = iter(jax.random.split(key, 4096))

    def xavier(shape):
        lim = math.sqrt(6.0 / (shape[0] + shape[1]))
        return jax.random.uniform(next(keys), shape, jnp.float32, -lim, lim)

    def self_attn_params():
        wq, wk, wv = xavier((E, E)), xavier((E, E)), xavier((E, E))
        return dict(Wqkv=jnp.concatenate([wq, wk, wv], axis=1).astype(_MXU_DTYPE),
                    Wo=xavier((E, E)).astype(_MXU_DTYPE),
                    bo=jnp.zeros((1, E), jnp.float32))

    def cross_attn_params():
        wq, wk, wv = xavier((E, E)), xavier((E, E)), xavier((E, E))
        return dict(Wq=wq.astype(_MXU_DTYPE),
                    Wkv=jnp.concatenate([wk, wv], axis=1).astype(_MXU_DTYPE),
                    Wo=xavier((E, E)).astype(_MXU_DTYPE),
                    bo=jnp.zeros((1, E), jnp.float32))

    def tblock_params(cross):
        return dict(attn=cross_attn_params() if cross else self_attn_params(),
                    ln1_g=jnp.ones((1, E), jnp.float32),
                    ln1_b=jnp.zeros((1, E), jnp.float32),
                    ln2_g=jnp.ones((1, E), jnp.float32),
                    ln2_b=jnp.zeros((1, E), jnp.float32),
                    W1=xavier((E, F)).astype(_MXU_DTYPE),
                    b1=jnp.zeros((1, F), jnp.float32),
                    W2=xavier((F, E)).astype(_MXU_DTYPE),
                    b2=jnp.zeros((1, E), jnp.float32))

    def dblock_params():
        return dict(attn=self_attn_params(),
                    ln_g=jnp.ones((1, E), jnp.float32),
                    ln_b=jnp.zeros((1, E), jnp.float32),
                    tblock=tblock_params(cross=True))

    return dict(
        enc_embed=xavier((src_vocab, E)),
        dec_embed=xavier((tgt_vocab, E)),
        enc_pe=jnp.asarray(positional_encoding(max_seq_len_enc, E, n), jnp.float32),
        dec_pe=jnp.asarray(positional_encoding(max_seq_len_dec, E, n), jnp.float32),
        enc_layers=[tblock_params(cross=False) for _ in range(num_layers)],
        dec_layers=[dblock_params() for _ in range(num_layers)],
        Wfc=xavier((E, tgt_vocab)).astype(_MXU_DTYPE),
        bfc=jnp.zeros((1, tgt_vocab), jnp.float32),
    )


# ----------------------------------- main -----------------------------------

if __name__ == "__main__":
    EMBED, HEADS, FF_DIM, NUM_LAYERS = 32, 4, 64, 2
    SRC_VOCAB, TGT_VOCAB = 50, 50
    N, LS, LT = 2, 10, 8

    key = jax.random.PRNGKey(0)
    kp, ksrc, ktrg = jax.random.split(key, 3)

    params = init_params(kp, SRC_VOCAB, TGT_VOCAB, EMBED, FF_DIM, NUM_LAYERS)

    src = jax.random.randint(ksrc, (N, LS), 1, SRC_VOCAB, dtype=jnp.int32)
    src = src.at[:, -2:].set(0)   # a couple of pad tokens to exercise the src mask
    trg = jax.random.randint(ktrg, (N, LT), 1, TGT_VOCAB, dtype=jnp.int32)

    fwd = jax.jit(functools.partial(transformer_fwd, heads=HEADS, src_pad_idx=0))
    out = fwd(params, src, trg)
    out = jax.block_until_ready(out)

    assert out.shape == (N, LT, TGT_VOCAB), out.shape
    assert bool(jnp.all(jnp.isfinite(out)))
    print("KERNEL_OK")
</pallas_src>

<mosaic_0001>
module attributes {stable_mosaic.version = 11 : i64} {
  func.func @_dec_self_kernel(%arg0: i32, %arg1: memref<1x8x32xf32, #tpu.memory_space<vmem>>, %arg2: memref<4x4x8x8xf32, #tpu.memory_space<vmem>>, %arg3: memref<32x96xbf16, #tpu.memory_space<vmem>>, %arg4: memref<32x32xbf16, #tpu.memory_space<vmem>>, %arg5: memref<1x32xf32, #tpu.memory_space<vmem>>, %arg6: memref<1x32xf32, #tpu.memory_space<vmem>>, %arg7: memref<1x32xf32, #tpu.memory_space<vmem>>, %arg8: memref<1x8x32xf32, #tpu.memory_space<vmem>>) attributes {dimension_semantics = [#tpu.dimension_semantics<parallel>], iteration_bounds = array<i64: 2>, scalar_prefetch = 0 : i64, scratch_operands = 0 : i64, tpu.core_type = #tpu.core_type<tc>, window_params = [{transform_indices = @transform_0, window_bounds = array<i64: 1, 8, 32>}, {pipeline_mode = #tpu.pipeline_mode<synchronous>, transform_indices = @transform_1, window_bounds = array<i64: 4, 4, 8, 8>}, {pipeline_mode = #tpu.pipeline_mode<synchronous>, transform_indices = @transform_2, window_bounds = array<i64: 32, 96>}, {pipeline_mode = #tpu.pipeline_mode<synchronous>, transform_indices = @transform_3, window_bounds = array<i64: 32, 32>}, {pipeline_mode = #tpu.pipeline_mode<synchronous>, transform_indices = @transform_4, window_bounds = array<i64: 1, 32>}, {pipeline_mode = #tpu.pipeline_mode<synchronous>, transform_indices = @transform_5, window_bounds = array<i64: 1, 32>}, {pipeline_mode = #tpu.pipeline_mode<synchronous>, transform_indices = @transform_6, window_bounds = array<i64: 1, 32>}, {transform_indices = @transform_7, window_bounds = array<i64: 1, 8, 32>}]} {
    %c0 = arith.constant 0 : index
    %c0_0 = arith.constant 0 : index
    %c0_1 = arith.constant 0 : index
    %0 = vector.load %arg1[%c0, %c0_0, %c0_1] : memref<1x8x32xf32, #tpu.memory_space<vmem>>, vector<1x8x32xf32>
    %1 = vector.shape_cast %0 : vector<1x8x32xf32> to vector<8x32xf32>
    %2 = arith.truncf %1 : vector<8x32xf32> to vector<8x32xbf16>
    %c0_2 = arith.constant 0 : index
    %c0_3 = arith.constant 0 : index
    %3 = vector.load %arg3[%c0_2, %c0_3] : memref<32x96xbf16, #tpu.memory_space<vmem>>, vector<32x96xbf16>
    %cst = arith.constant dense<0.000000e+00> : vector<8x96xf32>
    %4 = tpu.matmul %2, %3, %cst {dimension_numbers = #tpu.dot_dimension_numbers<[1], [0], [0], [1], [0, 0, 1, 1], [], []>} : vector<8x32xbf16>, vector<32x96xbf16>, vector<8x96xf32> -> vector<8x96xf32>
    %5 = vector.extract_strided_slice %4 {offsets = [0, 0], sizes = [8, 32], strides = [1, 1]} : vector<8x96xf32> to vector<8x32xf32>
    %6 = vector.extract_strided_slice %4 {offsets = [0, 32], sizes = [8, 32], strides = [1, 1]} : vector<8x96xf32> to vector<8x32xf32>
    %7 = vector.extract_strided_slice %4 {offsets = [0, 64], sizes = [8, 32], strides = [1, 1]} : vector<8x96xf32> to vector<8x32xf32>
    %8 = tpu.iota {dimensions = array<i32: 0>} : vector<8x8xi32>
    %9 = tpu.iota {dimensions = array<i32: 1>} : vector<8x8xi32>
    %10 = arith.cmpi slt, %8, %9 : vector<8x8xi32>
    %11 = arith.truncf %5 : vector<8x32xf32> to vector<8x32xbf16>
    %12 = arith.truncf %6 : vector<8x32xf32> to vector<8x32xbf16>
    %13 = arith.truncf %7 : vector<8x32xf32> to vector<8x32xbf16>
    %14 = vector.extract_strided_slice %11 {offsets = [0, 0], sizes = [8, 8], strides = [1, 1]} : vector<8x32xbf16> to vector<8x8xbf16>
    %15 = vector.extract_strided_slice %12 {offsets = [0, 0], sizes = [8, 8], strides = [1, 1]} : vector<8x32xbf16> to vector<8x8xbf16>
    %cst_4 = arith.constant dense<0.000000e+00> : vector<8x8xf32>
    %16 = tpu.matmul %14, %15, %cst_4 {dimension_numbers = #tpu.dot_dimension_numbers<[1], [1], [0], [0], [0, 0, 1, 0], [], []>} : vector<8x8xbf16>, vector<8x8xbf16>, vector<8x8xf32> -> vector<8x8xf32>
    %cst_5 = arith.constant -1.000000e+20 : f32
    %17 = vector.broadcast %cst_5 : f32 to vector<8x8xf32>
    %18 = arith.select %10, %17, %16 : vector<8x8xi1>, vector<8x8xf32>
    %cst_6 = arith.constant 0.176776692 : f32
    %19 = vector.broadcast %cst_6 : f32 to vector<8x8xf32>
    %20 = arith.mulf %18, %19 : vector<8x8xf32>
    %cst_7 = arith.constant dense<0xFF800000> : vector<8xf32>
    %21 = vector.multi_reduction <maximumf>, %20, %cst_7 [1] : vector<8x8xf32> to vector<8xf32>
    %22 = vector.shape_cast %21 : vector<8xf32> to vector<8x1xf32>
    %23 = vector.broadcast %22 : vector<8x1xf32> to vector<8x8xf32>
    %24 = arith.subf %20, %23 : vector<8x8xf32>
    %25 = math.exp %24 : vector<8x8xf32>
    %cst_8 = arith.constant dense<0.000000e+00> : vector<8xf32>
    %26 = vector.multi_reduction <add>, %25, %cst_8 [1] : vector<8x8xf32> to vector<8xf32>
    %27 = vector.shape_cast %26 : vector<8xf32> to vector<8x1xf32>
    %28 = tpu.reciprocal %27 {approx = true} : vector<8x1xf32> -> vector<8x1xf32>
    %29 = vector.broadcast %28 : vector<8x1xf32> to vector<8x8xf32>
    %30 = arith.mulf %25, %29 : vector<8x8xf32>
    %31 = arith.truncf %30 : vector<8x8xf32> to vector<8x8xbf16>
    %32 = vector.extract_strided_slice %13 {offsets = [0, 0], sizes = [8, 8], strides = [1, 1]} : vector<8x32xbf16> to vector<8x8xbf16>
    %cst_9 = arith.constant dense<0.000000e+00> : vector<8x8xf32>
    %33 = tpu.matmul %31, %32, %cst_9 {dimension_numbers = #tpu.dot_dimension_numbers<[1], [0], [0], [1], [0, 0, 1, 1], [], []>} : vector<8x8xbf16>, vector<8x8xbf16>, vector<8x8xf32> -> vector<8x8xf32>
    %34 = vector.extract_strided_slice %11 {offsets = [0, 8], sizes = [8, 8], strides = [1, 1]} : vector<8x32xbf16> to vector<8x8xbf16>
    %35 = vector.extract_strided_slice %12 {offsets = [0, 8], sizes = [8, 8], strides = [1, 1]} : vector<8x32xbf16> to vector<8x8xbf16>
    %cst_10 = arith.constant dense<0.000000e+00> : vector<8x8xf32>
    %36 = tpu.matmul %34, %35, %cst_10 {dimension_numbers = #tpu.dot_dimension_numbers<[1], [1], [0], [0], [0, 0, 1, 0], [], []>} : vector<8x8xbf16>, vector<8x8xbf16>, vector<8x8xf32> -> vector<8x8xf32>
    %cst_11 = arith.constant -1.000000e+20 : f32
    %37 = vector.broadcast %cst_11 : f32 to vector<8x8xf32>
    %38 = arith.select %10, %37, %36 : vector<8x8xi1>, vector<8x8xf32>
    %cst_12 = arith.constant 0.176776692 : f32
    %39 = vector.broadcast %cst_12 : f32 to vector<8x8xf32>
    %40 = arith.mulf %38, %39 : vector<8x8xf32>
    %cst_13 = arith.constant dense<0xFF800000> : vector<8xf32>
    %41 = vector.multi_reduction <maximumf>, %40, %cst_13 [1] : vector<8x8xf32> to vector<8xf32>
    %42 = vector.shape_cast %41 : vector<8xf32> to vector<8x1xf32>
    %43 = vector.broadcast %42 : vector<8x1xf32> to vector<8x8xf32>
    %44 = arith.subf %40, %43 : vector<8x8xf32>
    %45 = math.exp %44 : vector<8x8xf32>
    %cst_14 = arith.constant dense<0.000000e+00> : vector<8xf32>
    %46 = vector.multi_reduction <add>, %45, %cst_14 [1] : vector<8x8xf32> to vector<8xf32>
    %47 = vector.shape_cast %46 : vector<8xf32> to vector<8x1xf32>
    %48 = tpu.reciprocal %47 {approx = true} : vector<8x1xf32> -> vector<8x1xf32>
    %49 = vector.broadcast %48 : vector<8x1xf32> to vector<8x8xf32>
    %50 = arith.mulf %45, %49 : vector<8x8xf32>
    %51 = arith.truncf %50 : vector<8x8xf32> to vector<8x8xbf16>
    %52 = vector.extract_strided_slice %13 {offsets = [0, 8], sizes = [8, 8], strides = [1, 1]} : vector<8x32xbf16> to vector<8x8xbf16>
    %cst_15 = arith.constant dense<0.000000e+00> : vector<8x8xf32>
    %53 = tpu.matmul %51, %52, %cst_15 {dimension_numbers = #tpu.dot_dimension_numbers<[1], [0], [0], [1], [0, 0, 1, 1], [], []>} : vector<8x8xbf16>, vector<8x8xbf16>, vector<8x8xf32> -> vector<8x8xf32>
    %54 = vector.extract_strided_slice %11 {offsets = [0, 16], sizes = [8, 8], strides = [1, 1]} : vector<8x32xbf16> to vector<8x8xbf16>
    %55 = vector.extract_strided_slice %12 {offsets = [0, 16], sizes = [8, 8], strides = [1, 1]} : vector<8x32xbf16> to vector<8x8xbf16>
    %cst_16 = arith.constant dense<0.000000e+00> : vector<8x8xf32>
    %56 = tpu.matmul %54, %55, %cst_16 {dimension_numbers = #tpu.dot_dimension_numbers<[1], [1], [0], [0], [0, 0, 1, 0], [], []>} : vector<8x8xbf16>, vector<8x8xbf16>, vector<8x8xf32> -> vector<8x8xf32>
    %cst_17 = arith.constant -1.000000e+20 : f32
    %57 = vector.broadcast %cst_17 : f32 to vector<8x8xf32>
    %58 = arith.select %10, %57, %56 : vector<8x8xi1>, vector<8x8xf32>
    %cst_18 = arith.constant 0.176776692 : f32
    %59 = vector.broadcast %cst_18 : f32 to vector<8x8xf32>
    %60 = arith.mulf %58, %59 : vector<8x8xf32>
    %cst_19 = arith.constant dense<0xFF800000> : vector<8xf32>
    %61 = vector.multi_reduction <maximumf>, %60, %cst_19 [1] : vector<8x8xf32> to vector<8xf32>
    %62 = vector.shape_cast %61 : vector<8xf32> to vector<8x1xf32>
    %63 = vector.broadcast %62 : vector<8x1xf32> to vector<8x8xf32>
    %64 = arith.subf %60, %63 : vector<8x8xf32>
    %65 = math.exp %64 : vector<8x8xf32>
    %cst_20 = arith.constant dense<0.000000e+00> : vector<8xf32>
    %66 = vector.multi_reduction <add>, %65, %cst_20 [1] : vector<8x8xf32> to vector<8xf32>
    %67 = vector.shape_cast %66 : vector<8xf32> to vector<8x1xf32>
    %68 = tpu.reciprocal %67 {approx = true} : vector<8x1xf32> -> vector<8x1xf32>
    %69 = vector.broadcast %68 : vector<8x1xf32> to vector<8x8xf32>
    %70 = arith.mulf %65, %69 : vector<8x8xf32>
    %71 = arith.truncf %70 : vector<8x8xf32> to vector<8x8xbf16>
    %72 = vector.extract_strided_slice %13 {offsets = [0, 16], sizes = [8, 8], strides = [1, 1]} : vector<8x32xbf16> to vector<8x8xbf16>
    %cst_21 = arith.constant dense<0.000000e+00> : vector<8x8xf32>
    %73 = tpu.matmul %71, %72, %cst_21 {dimension_numbers = #tpu.dot_dimension_numbers<[1], [0], [0], [1], [0, 0, 1, 1], [], []>} : vector<8x8xbf16>, vector<8x8xbf16>, vector<8x8xf32> -> vector<8x8xf32>
    %74 = vector.extract_strided_slice %11 {offsets = [0, 24], sizes = [8, 8], strides = [1, 1]} : vector<8x32xbf16> to vector<8x8xbf16>
    %75 = vector.extract_strided_slice %12 {offsets = [0, 24], sizes = [8, 8], strides = [1, 1]} : vector<8x32xbf16> to vector<8x8xbf16>
    %cst_22 = arith.constant dense<0.000000e+00> : vector<8x8xf32>
    %76 = tpu.matmul %74, %75, %cst_22 {dimension_numbers = #tpu.dot_dimension_numbers<[1], [1], [0], [0], [0, 0, 1, 0], [], []>} : vector<8x8xbf16>, vector<8x8xbf16>, vector<8x8xf32> -> vector<8x8xf32>
    %cst_23 = arith.constant -1.000000e+20 : f32
    %77 = vector.broadcast %cst_23 : f32 to vector<8x8xf32>
    %78 = arith.select %10, %77, %76 : vector<8x8xi1>, vector<8x8xf32>
    %cst_24 = arith.constant 0.176776692 : f32
    %79 = vector.broadcast %cst_24 : f32 to vector<8x8xf32>
    %80 = arith.mulf %78, %79 : vector<8x8xf32>
    %cst_25 = arith.constant dense<0xFF800000> : vector<8xf32>
    %81 = vector.multi_reduction <maximumf>, %80, %cst_25 [1] : vector<8x8xf32> to vector<8xf32>
    %82 = vector.shape_cast %81 : vector<8xf32> to vector<8x1xf32>
    %83 = vector.broadcast %82 : vector<8x1xf32> to vector<8x8xf32>
    %84 = arith.subf %80, %83 : vector<8x8xf32>
    %85 = math.exp %84 : vector<8x8xf32>
    %cst_26 = arith.constant dense<0.000000e+00> : vector<8xf32>
    %86 = vector.multi_reduction <add>, %85, %cst_26 [1] : vector<8x8xf32> to vector<8xf32>
    %87 = vector.shape_cast %86 : vector<8xf32> to vector<8x1xf32>
    %88 = tpu.reciprocal %87 {approx = true} : vector<8x1xf32> -> vector<8x1xf32>
    %89 = vector.broadcast %88 : vector<8x1xf32> to vector<8x8xf32>
    %90 = arith.mulf %85, %89 : vector<8x8xf32>
    %91 = arith.truncf %90 : vector<8x8xf32> to vector<8x8xbf16>
    %92 = vector.extract_strided_slice %13 {offsets = [0, 24], sizes = [8, 8], strides = [1, 1]} : vector<8x32xbf16> to vector<8x8xbf16>
    %cst_27 = arith.constant dense<0.000000e+00> : vector<8x8xf32>
    %93 = tpu.matmul %91, %92, %cst_27 {dimension_numbers = #tpu.dot_dimension_numbers<[1], [0], [0], [1], [0, 0, 1, 1], [], []>} : vector<8x8xbf16>, vector<8x8xbf16>, vector<8x8xf32> -> vector<8x8xf32>
    %c0_28 = arith.constant 0 : index
    %c0_29 = arith.constant 0 : index
    %c0_30 = arith.constant 0 : index
    %c0_31 = arith.constant 0 : index
    %94 = vector.load %arg2[%c0_28, %c0_29, %c0_30, %c0_31] : memref<4x4x8x8xf32, #tpu.memory_space<vmem>>, vector<1x1x8x8xf32>
    %95 = vector.shape_cast %94 : vector<1x1x8x8xf32> to vector<8x8xf32>
    %cst_32 = arith.constant dense<0.000000e+00> : vector<8x8xf32>
    %96 = tpu.matmul %95, %33, %cst_32 {dimension_numbers = #tpu.dot_dimension_numbers<[1], [0], [0], [1], [0, 0, 1, 1], [], []>} : vector<8x8xf32>, vector<8x8xf32>, vector<8x8xf32> -> vector<8x8xf32>
    %c0_33 = arith.constant 0 : index
    %c1 = arith.constant 1 : index
    %c0_34 = arith.constant 0 : index
    %c0_35 = arith.constant 0 : index
    %97 = vector.load %arg2[%c0_33, %c1, %c0_34, %c0_35] : memref<4x4x8x8xf32, #tpu.memory_space<vmem>>, vector<1x1x8x8xf32>
    %98 = vector.shape_cast %97 : vector<1x1x8x8xf32> to vector<8x8xf32>
    %cst_36 = arith.constant dense<0.000000e+00> : vector<8x8xf32>
    %99 = tpu.matmul %98, %53, %cst_36 {dimension_numbers = #tpu.dot_dimension_numbers<[1], [0], [0], [1], [0, 0, 1, 1], [], []>} : vector<8x8xf32>, vector<8x8xf32>, vector<8x8xf32> -> vector<8x8xf32>
    %100 = arith.addf %96, %99 : vector<8x8xf32>
    %c0_37 = arith.constant 0 : index
    %c2 = arith.constant 2 : index
    %c0_38 = arith.constant 0 : index
    %c0_39 = arith.constant 0 : index
    %101 = vector.load %arg2[%c0_37, %c2, %c0_38, %c0_39] : memref<4x4x8x8xf32, #tpu.memory_space<vmem>>, vector<1x1x8x8xf32>
    %102 = vector.shape_cast %101 : vector<1x1x8x8xf32> to vector<8x8xf32>
    %cst_40 = arith.constant dense<0.000000e+00> : vector<8x8xf32>
    %103 = tpu.matmul %102, %73, %cst_40 {dimension_numbers = #tpu.dot_dimension_numbers<[1], [0], [0], [1], [0, 0, 1, 1], [], []>} : vector<8x8xf32>, vector<8x8xf32>, vector<8x8xf32> -> vector<8x8xf32>
    %104 = arith.addf %100, %103 : vector<8x8xf32>
    %c0_41 = arith.constant 0 : index
    %c3 = arith.constant 3 : index
    %c0_42 = arith.constant 0 : index
    %c0_43 = arith.constant 0 : index
    %105 = vector.load %arg2[%c0_41, %c3, %c0_42, %c0_43] : memref<4x4x8x8xf32, #tpu.memory_space<vmem>>, vector<1x1x8x8xf32>
    %106 = vector.shape_cast %105 : vector<1x1x8x8xf32> to vector<8x8xf32>
    %cst_44 = arith.constant dense<0.000000e+00> : vector<8x8xf32>
    %107 = tpu.matmul %106, %93, %cst_44 {dimension_numbers = #tpu.dot_dimension_numbers<[1], [0], [0], [1], [0, 0, 1, 1], [], []>} : vector<8x8xf32>, vector<8x8xf32>, vector<8x8xf32> -> vector<8x8xf32>
    %108 = arith.addf %104, %107 : vector<8x8xf32>
    %c1_45 = arith.constant 1 : index
    %c0_46 = arith.constant 0 : index
    %c0_47 = arith.constant 0 : index
    %c0_48 = arith.constant 0 : index
    %109 = vector.load %arg2[%c1_45, %c0_46, %c0_47, %c0_48] : memref<4x4x8x8xf32, #tpu.memory_space<vmem>>, vector<1x1x8x8xf32>
    %110 = vector.shape_cast %109 : vector<1x1x8x8xf32> to vector<8x8xf32>
    %cst_49 = arith.constant dense<0.000000e+00> : vector<8x8xf32>
    %111 = tpu.matmul %110, %33, %cst_49 {dimension_numbers = #tpu.dot_dimension_numbers<[1], [0], [0], [1], [0, 0, 1, 1], [], []>} : vector<8x8xf32>, vector<8x8xf32>, vector<8x8xf32> -> vector<8x8xf32>
    %c1_50 = arith.constant 1 : index
    %c1_51 = arith.constant 1 : index
    %c0_52 = arith.constant 0 : index
    %c0_53 = arith.constant 0 : index
    %112 = vector.load %arg2[%c1_50, %c1_51, %c0_52, %c0_53] : memref<4x4x8x8xf32, #tpu.memory_space<vmem>>, vector<1x1x8x8xf32>
    %113 = vector.shape_cast %112 : vector<1x1x8x8xf32> to vector<8x8xf32>
    %cst_54 = arith.constant dense<0.000000e+00> : vector<8x8xf32>
    %114 = tpu.matmul %113, %53, %cst_54 {dimension_numbers = #tpu.dot_dimension_numbers<[1], [0], [0], [1], [0, 0, 1, 1], [], []>} : vector<8x8xf32>, vector<8x8xf32>, vector<8x8xf32> -> vector<8x8xf32>
    %115 = arith.addf %111, %114 : vector<8x8xf32>
    %c1_55 = arith.constant 1 : index
    %c2_56 = arith.constant 2 : index
    %c0_57 = arith.constant 0 : index
    %c0_58 = arith.constant 0 : index
    %116 = vector.load %arg2[%c1_55, %c2_56, %c0_57, %c0_58] : memref<4x4x8x8xf32, #tpu.memory_space<vmem>>, vector<1x1x8x8xf32>
    %117 = vector.shape_cast %116 : vector<1x1x8x8xf32> to vector<8x8xf32>
    %cst_59 = arith.constant dense<0.000000e+00> : vector<8x8xf32>
    %118 = tpu.matmul %117, %73, %cst_59 {dimension_numbers = #tpu.dot_dimension_numbers<[1], [0], [0], [1], [0, 0, 1, 1], [], []>} : vector<8x8xf32>, vector<8x8xf32>, vector<8x8xf32> -> vector<8x8xf32>
    %119 = arith.addf %115, %118 : vector<8x8xf32>
    %c1_60 = arith.constant 1 : index
    %c3_61 = arith.constant 3 : index
    %c0_62 = arith.constant 0 : index
    %c0_63 = arith.constant 0 : index
    %120 = vector.load %arg2[%c1_60, %c3_61, %c0_62, %c0_63] : memref<4x4x8x8xf32, #tpu.memory_space<vmem>>, vector<1x1x8x8xf32>
    %121 = vector.shape_cast %120 : vector<1x1x8x8xf32> to vector<8x8xf32>
    %cst_64 = arith.constant dense<0.000000e+00> : vector<8x8xf32>
    %122 = tpu.matmul %121, %93, %cst_64 {dimension_numbers = #tpu.dot_dimension_numbers<[1], [0], [0], [1], [0, 0, 1, 1], [], []>} : vector<8x8xf32>, vector<8x8xf32>, vector<8x8xf32> -> vector<8x8xf32>
    %123 = arith.addf %119, %122 : vector<8x8xf32>
    %c2_65 = arith.constant 2 : index
    %c0_66 = arith.constant 0 : index
    %c0_67 = arith.constant 0 : index
    %c0_68 = arith.constant 0 : index
    %124 = vector.load %arg2[%c2_65, %c0_66, %c0_67, %c0_68] : memref<4x4x8x8xf32, #tpu.memory_space<vmem>>, vector<1x1x8x8xf32>
    %125 = vector.shape_cast %124 : vector<1x1x8x8xf32> to vector<8x8xf32>
    %cst_69 = arith.constant dense<0.000000e+00> : vector<8x8xf32>
    %126 = tpu.matmul %125, %33, %cst_69 {dimension_numbers = #tpu.dot_dimension_numbers<[1], [0], [0], [1], [0, 0, 1, 1], [], []>} : vector<8x8xf32>, vector<8x8xf32>, vector<8x8xf32> -> vector<8x8xf32>
    %c2_70 = arith.constant 2 : index
    %c1_71 = arith.constant 1 : index
    %c0_72 = arith.constant 0 : index
    %c0_73 = arith.constant 0 : index
    %127 = vector.load %arg2[%c2_70, %c1_71, %c0_72, %c0_73] : memref<4x4x8x8xf32, #tpu.memory_space<vmem>>, vector<1x1x8x8xf32>
    %128 = vector.shape_cast %127 : vector<1x1x8x8xf32> to vector<8x8xf32>
    %cst_74 = arith.constant dense<0.000000e+00> : vector<8x8xf32>
    %129 = tpu.matmul %128, %53, %cst_74 {dimension_numbers = #tpu.dot_dimension_numbers<[1], [0], [0], [1], [0, 0, 1, 1], [], []>} : vector<8x8xf32>, vector<8x8xf32>, vector<8x8xf32> -> vector<8x8xf32>
    %130 = arith.addf %126, %129 : vector<8x8xf32>
    %c2_75 = arith.constant 2 : index
    %c2_76 = arith.constant 2 : index
    %c0_77 = arith.constant 0 : index
    %c0_78 = arith.constant 0 : index
    %131 = vector.load %arg2[%c2_75, %c2_76, %c0_77, %c0_78] : memref<4x4x8x8xf32, #tpu.memory_space<vmem>>, vector<1x1x8x8xf32>
    %132 = vector.shape_cast %131 : vector<1x1x8x8xf32> to vector<8x8xf32>
    %cst_79 = arith.constant dense<0.000000e+00> : vector<8x8xf32>
    %133 = tpu.matmul %132, %73, %cst_79 {dimension_numbers = #tpu.dot_dimension_numbers<[1], [0], [0], [1], [0, 0, 1, 1], [], []>} : vector<8x8xf32>, vector<8x8xf32>, vector<8x8xf32> -> vector<8x8xf32>
    %134 = arith.addf %130, %133 : vector<8x8xf32>
    %c2_80 = arith.constant 2 : index
    %c3_81 = arith.constant 3 : index
    %c0_82 = arith.constant 0 : index
    %c0_83 = arith.constant 0 : index
    %135 = vector.load %arg2[%c2_80, %c3_81, %c0_82, %c0_83] : memref<4x4x8x8xf32, #tpu.memory_space<vmem>>, vector<1x1x8x8xf32>
    %136 = vector.shape_cast %135 : vector<1x1x8x8xf32> to vector<8x8xf32>
    %cst_84 = arith.constant dense<0.000000e+00> : vector<8x8xf32>
    %137 = tpu.matmul %136, %93, %cst_84 {dimension_numbers = #tpu.dot_dimension_numbers<[1], [0], [0], [1], [0, 0, 1, 1], [], []>} : vector<8x8xf32>, vector<8x8xf32>, vector<8x8xf32> -> vector<8x8xf32>
    %138 = arith.addf %134, %137 : vector<8x8xf32>
    %c3_85 = arith.constant 3 : index
    %c0_86 = arith.constant 0 : index
    %c0_87 = arith.constant 0 : index
    %c0_88 = arith.constant 0 : index
    %139 = vector.load %arg2[%c3_85, %c0_86, %c0_87, %c0_88] : memref<4x4x8x8xf32, #tpu.memory_space<vmem>>, vector<1x1x8x8xf32>
    %140 = vector.shape_cast %139 : vector<1x1x8x8xf32> to vector<8x8xf32>
    %cst_89 = arith.constant dense<0.000000e+00> : vector<8x8xf32>
    %141 = tpu.matmul %140, %33, %cst_89 {dimension_numbers = #tpu.dot_dimension_numbers<[1], [0], [0], [1], [0, 0, 1, 1], [], []>} : vector<8x8xf32>, vector<8x8xf32>, vector<8x8xf32> -> vector<8x8xf32>
    %c3_90 = arith.constant 3 : index
    %c1_91 = arith.constant 1 : index
    %c0_92 = arith.constant 0 : index
    %c0_93 = arith.constant 0 : index
    %142 = vector.load %arg2[%c3_90, %c1_91, %c0_92, %c0_93] : memref<4x4x8x8xf32, #tpu.memory_space<vmem>>, vector<1x1x8x8xf32>
    %143 = vector.shape_cast %142 : vector<1x1x8x8xf32> to vector<8x8xf32>
    %cst_94 = arith.constant dense<0.000000e+00> : vector<8x8xf32>
    %144 = tpu.matmul %143, %53, %cst_94 {dimension_numbers = #tpu.dot_dimension_numbers<[1], [0], [0], [1], [0, 0, 1, 1], [], []>} : vector<8x8xf32>, vector<8x8xf32>, vector<8x8xf32> -> vector<8x8xf32>
    %145 = arith.addf %141, %144 : vector<8x8xf32>
    %c3_95 = arith.constant 3 : index
    %c2_96 = arith.constant 2 : index
    %c0_97 = arith.constant 0 : index
    %c0_98 = arith.constant 0 : index
    %146 = vector.load %arg2[%c3_95, %c2_96, %c0_97, %c0_98] : memref<4x4x8x8xf32, #tpu.memory_space<vmem>>, vector<1x1x8x8xf32>
    %147 = vector.shape_cast %146 : vector<1x1x8x8xf32> to vector<8x8xf32>
    %cst_99 = arith.constant dense<0.000000e+00> : vector<8x8xf32>
    %148 = tpu.matmul %147, %73, %cst_99 {dimension_numbers = #tpu.dot_dimension_numbers<[1], [0], [0], [1], [0, 0, 1, 1], [], []>} : vector<8x8xf32>, vector<8x8xf32>, vector<8x8xf32> -> vector<8x8xf32>
    %149 = arith.addf %145, %148 : vector<8x8xf32>
    %c3_100 = arith.constant 3 : index
    %c3_101 = arith.constant 3 : index
    %c0_102 = arith.constant 0 : index
    %c0_103 = arith.constant 0 : index
    %150 = vector.load %arg2[%c3_100, %c3_101, %c0_102, %c0_103] : memref<4x4x8x8xf32, #tpu.memory_space<vmem>>, vector<1x1x8x8xf32>
    %151 = vector.shape_cast %150 : vector<1x1x8x8xf32> to vector<8x8xf32>
    %cst_104 = arith.constant dense<0.000000e+00> : vector<8x8xf32>
    %152 = tpu.matmul %151, %93, %cst_104 {dimension_numbers = #tpu.dot_dimension_numbers<[1], [0], [0], [1], [0, 0, 1, 1], [], []>} : vector<8x8xf32>, vector<8x8xf32>, vector<8x8xf32> -> vector<8x8xf32>
    %153 = arith.addf %149, %152 : vector<8x8xf32>
    %154 = tpu.concatenate %108, %123, %138, %153 in 1 : vector<8x8xf32>, vector<8x8xf32>, vector<8x8xf32>, vector<8x8xf32> -> vector<8x32xf32>
    %c0_105 = arith.constant 0 : index
    %c0_106 = arith.constant 0 : index
    %155 = vector.load %arg4[%c0_105, %c0_106] : memref<32x32xbf16, #tpu.memory_space<vmem>>, vector<32x32xbf16>
    %c0_107 = arith.constant 0 : index
    %c0_108 = arith.constant 0 : index
    %156 = vector.load %arg5[%c0_107, %c0_108] : memref<1x32xf32, #tpu.memory_space<vmem>>, vector<1x32xf32>
    %c0_109 = arith.constant 0 : index
    %c0_110 = arith.constant 0 : index
    %157 = vector.load %arg6[%c0_109, %c0_110] : memref<1x32xf32, #tpu.memory_space<vmem>>, vector<1x32xf32>
    %c0_111 = arith.constant 0 : index
    %c0_112 = arith.constant 0 : index
    %158 = vector.load %arg7[%c0_111, %c0_112] : memref<1x32xf32, #tpu.memory_space<vmem>>, vector<1x32xf32>
    %159 = arith.truncf %154 : vector<8x32xf32> to vector<8x32xbf16>
    %cst_113 = arith.constant dense<0.000000e+00> : vector<8x32xf32>
    %160 = tpu.matmul %159, %155, %cst_113 {dimension_numbers = #tpu.dot_dimension_numbers<[1], [0], [0], [1], [0, 0, 1, 1], [], []>} : vector<8x32xbf16>, vector<32x32xbf16>, vector<8x32xf32> -> vector<8x32xf32>
    %161 = vector.broadcast %156 : vector<1x32xf32> to vector<8x32xf32>
    %162 = arith.addf %160, %161 : vector<8x32xf32>
    %163 = arith.addf %162, %1 : vector<8x32xf32>
    %cst_114 = arith.constant dense<0.000000e+00> : vector<8xf32>
    %164 = vector.multi_reduction <add>, %163, %cst_114 [1] : vector<8x32xf32> to vector<8xf32>
    %165 = vector.shape_cast %164 : vector<8xf32> to vector<8x1xf32>
    %cst_115 = arith.constant 3.200000e+01 : f32
    %166 = vector.broadcast %cst_115 : f32 to vector<8x1xf32>
    %167 = arith.divf %165, %166 : vector<8x1xf32>
    %168 = vector.broadcast %167 : vector<8x1xf32> to vector<8x32xf32>
    %169 = arith.subf %163, %168 : vector<8x32xf32>
    %170 = arith.mulf %169, %169 : vector<8x32xf32>
    %cst_116 = arith.constant dense<0.000000e+00> : vector<8xf32>
    %171 = vector.multi_reduction <add>, %170, %cst_116 [1] : vector<8x32xf32> to vector<8xf32>
    %172 = vector.shape_cast %171 : vector<8xf32> to vector<8x1xf32>
    %cst_117 = arith.constant 3.200000e+01 : f32
    %173 = vector.broadcast %cst_117 : f32 to vector<8x1xf32>
    %174 = arith.divf %172, %173 : vector<8x1xf32>
    %175 = vector.broadcast %167 : vector<8x1xf32> to vector<8x32xf32>
    %176 = arith.subf %163, %175 : vector<8x32xf32>
    %cst_118 = arith.constant 9.99999974E-6 : f32
    %177 = vector.broadcast %cst_118 : f32 to vector<8x1xf32>
    %178 = arith.addf %174, %177 : vector<8x1xf32>
    %179 = math.rsqrt %178 : vector<8x1xf32>
    %180 = vector.broadcast %179 : vector<8x1xf32> to vector<8x32xf32>
    %181 = arith.mulf %176, %180 : vector<8x32xf32>
    %182 = vector.broadcast %157 : vector<1x32xf32> to vector<8x32xf32>
    %183 = arith.mulf %181, %182 : vector<8x32xf32>
    %184 = vector.broadcast %158 : vector<1x32xf32> to vector<8x32xf32>
    %185 = arith.addf %183, %184 : vector<8x32xf32>
    %c0_119 = arith.constant 0 : index
    %c0_120 = arith.constant 0 : index
    %c0_121 = arith.constant 0 : index
    %186 = vector.load %arg8[%c0_119, %c0_120, %c0_121] : memref<1x8x32xf32, #tpu.memory_space<vmem>>, vector<1x8x32xf32>
    %187 = vector.shape_cast %186 : vector<1x8x32xf32> to vector<8x32xf32>
    %188 = vector.shape_cast %185 : vector<8x32xf32> to vector<1x8x32xf32>
    tpu.vector_store %arg8[%c0_119, %c0_120, %c0_121], %188 {strides = array<i32>} : memref<1x8x32xf32, #tpu.memory_space<vmem>>, vector<1x8x32xf32>,
    return
  }
  func.func @transform_0(%arg0: i32) -> (i32, i32, i32) {
    %c0_i32 = arith.constant 0 : i32
    %c0_i32_0 = arith.constant 0 : i32
    %c0_i32_1 = arith.constant 0 : i32
    return %arg0, %c0_i32, %c0_i32_0 : i32, i32, i32
  }
  func.func @transform_1(%arg0: i32) -> (i32, i32, i32, i32) {
    %c0_i32 = arith.constant 0 : i32
    %c0_i32_0 = arith.constant 0 : i32
    %c0_i32_1 = arith.constant 0 : i32
    %c0_i32_2 = arith.constant 0 : i32
    %c0_i32_3 = arith.constant 0 : i32
    return %c0_i32, %c0_i32_0, %c0_i32_1, %c0_i32_2 : i32, i32, i32, i32
  }
  func.func @transform_2(%arg0: i32) -> (i32, i32) {
    %c0_i32 = arith.constant 0 : i32
    %c0_i32_0 = arith.constant 0 : i32
    %c0_i32_1 = arith.constant 0 : i32
    return %c0_i32, %c0_i32_0 : i32, i32
  }
  func.func @transform_3(%arg0: i32) -> (i32, i32) {
    %c0_i32 = arith.constant 0 : i32
    %c0_i32_0 = arith.constant 0 : i32
    %c0_i32_1 = arith.constant 0 : i32
    return %c0_i32, %c0_i32_0 : i32, i32
  }
  func.func @transform_4(%arg0: i32) -> (i32, i32) {
    %c0_i32 = arith.constant 0 : i32
    %c0_i32_0 = arith.constant 0 : i32
    %c0_i32_1 = arith.constant 0 : i32
    return %c0_i32, %c0_i32_0 : i32, i32
  }
  func.func @transform_5(%arg0: i32) -> (i32, i32) {
    %c0_i32 = arith.constant 0 : i32
    %c0_i32_0 = arith.constant 0 : i32
    %c0_i32_1 = arith.constant 0 : i32
    return %c0_i32, %c0_i32_0 : i32, i32
  }
  func.func @transform_6(%arg0: i32) -> (i32, i32) {
    %c0_i32 = arith.constant 0 : i32
    %c0_i32_0 = arith.constant 0 : i32
    %c0_i32_1 = arith.constant 0 : i32
    return %c0_i32, %c0_i32_0 : i32, i32
  }
  func.func @transform_7(%arg0: i32) -> (i32, i32, i32) {
    %c0_i32 = arith.constant 0 : i32
    %c0_i32_0 = arith.constant 0 : i32
    %c0_i32_1 = arith.constant 0 : i32
    return %arg0, %c0_i32, %c0_i32_0 : i32, i32, i32
  }
}

module attributes {stable_mosaic.version = 11 : i64} {
  func.func @_linear_bias_kernel(%arg0: i32, %arg1: memref<1x8x32xf32, #tpu.memory_space<vmem>>, %arg2: memref<32x50xbf16, #tpu.memory_space<vmem>>, %arg3: memref<1x50xf32, #tpu.memory_space<vmem>>, %arg4: memref<1x8x50xf32, #tpu.memory_space<vmem>>) attributes {dimension_semantics = [#tpu.dimension_semantics<parallel>], iteration_bounds = array<i64: 2>, scalar_prefetch = 0 : i64, scratch_operands = 0 : i64, tpu.core_type = #tpu.core_type<tc>, window_params = [{transform_indices = @transform_0, window_bounds = array<i64: 1, 8, 32>}, {pipeline_mode = #tpu.pipeline_mode<synchronous>, transform_indices = @transform_1, window_bounds = array<i64: 32, 50>}, {pipeline_mode = #tpu.pipeline_mode<synchronous>, transform_indices = @transform_2, window_bounds = array<i64: 1, 50>}, {transform_indices = @transform_3, window_bounds = array<i64: 1, 8, 50>}]} {
    %c0 = arith.constant 0 : index
    %c0_0 = arith.constant 0 : index
    %c0_1 = arith.constant 0 : index
    %0 = vector.load %arg1[%c0, %c0_0, %c0_1] : memref<1x8x32xf32, #tpu.memory_space<vmem>>, vector<1x8x32xf32>
    %1 = vector.shape_cast %0 : vector<1x8x32xf32> to vector<8x32xf32>
    %2 = arith.truncf %1 : vector<8x32xf32> to vector<8x32xbf16>
    %c0_2 = arith.constant 0 : index
    %c0_3 = arith.constant 0 : index
    %3 = vector.load %arg2[%c0_2, %c0_3] : memref<32x50xbf16, #tpu.memory_space<vmem>>, vector<32x50xbf16>
    %cst = arith.constant dense<0.000000e+00> : vector<8x50xf32>
    %4 = tpu.matmul %2, %3, %cst {dimension_numbers = #tpu.dot_dimension_numbers<[1], [0], [0], [1], [0, 0, 1, 1], [], []>} : vector<8x32xbf16>, vector<32x50xbf16>, vector<8x50xf32> -> vector<8x50xf32>
    %c0_4 = arith.constant 0 : index
    %c0_5 = arith.constant 0 : index
    %5 = vector.load %arg3[%c0_4, %c0_5] : memref<1x50xf32, #tpu.memory_space<vmem>>, vector<1x50xf32>
    %6 = vector.broadcast %5 : vector<1x50xf32> to vector<8x50xf32>
    %7 = arith.addf %4, %6 : vector<8x50xf32>
    %c0_6 = arith.constant 0 : index
    %c0_7 = arith.constant 0 : index
    %c0_8 = arith.constant 0 : index
    %8 = vector.load %arg4[%c0_6, %c0_7, %c0_8] : memref<1x8x50xf32, #tpu.memory_space<vmem>>, vector<1x8x50xf32>
    %9 = vector.shape_cast %8 : vector<1x8x50xf32> to vector<8x50xf32>
    %10 = vector.shape_cast %7 : vector<8x50xf32> to vector<1x8x50xf32>
    tpu.vector_store %arg4[%c0_6, %c0_7, %c0_8], %10 {strides = array<i32>} : memref<1x8x50xf32, #tpu.memory_space<vmem>>, vector<1x8x50xf32>,
    return
  }
  func.func @transform_0(%arg0: i32) -> (i32, i32, i32) {
    %c0_i32 = arith.constant 0 : i32
    %c0_i32_0 = arith.constant 0 : i32
    %c0_i32_1 = arith.constant 0 : i32
    return %arg0, %c0_i32, %c0_i32_0 : i32, i32, i32
  }
  func.func @transform_1(%arg0: i32) -> (i32, i32) {
    %c0_i32 = arith.constant 0 : i32
    %c0_i32_0 = arith.constant 0 : i32
    %c0_i32_1 = arith.constant 0 : i32
    return %c0_i32, %c0_i32_0 : i32, i32
  }
  func.func @transform_2(%arg0: i32) -> (i32, i32) {
    %c0_i32 = arith.constant 0 : i32
    %c0_i32_0 = arith.constant 0 : i32
    %c0_i32_1 = arith.constant 0 : i32
    return %c0_i32, %c0_i32_0 : i32, i32
  }
  func.func @transform_3(%arg0: i32) -> (i32, i32, i32) {
    %c0_i32 = arith.constant 0 : i32
    %c0_i32_0 = arith.constant 0 : i32
    %c0_i32_1 = arith.constant 0 : i32
    return %arg0, %c0_i32, %c0_i32_0 : i32, i32, i32
  }
}

module attributes {stable_mosaic.version = 11 : i64} {
  func.func @_enc_block_kernel(%arg0: i32, %arg1: memref<1x10x32xf32, #tpu.memory_space<vmem>>, %arg2: memref<1x1x10xf32, #tpu.memory_space<vmem>>, %arg3: memref<4x4x10x10xf32, #tpu.memory_space<vmem>>, %arg4: memref<32x96xbf16, #tpu.memory_space<vmem>>, %arg5: memref<32x32xbf16, #tpu.memory_space<vmem>>, %arg6: memref<1x32xf32, #tpu.memory_space<vmem>>, %arg7: memref<1x32xf32, #tpu.memory_space<vmem>>, %arg8: memref<1x32xf32, #tpu.memory_space<vmem>>, %arg9: memref<32x64xbf16, #tpu.memory_space<vmem>>, %arg10: memref<1x64xf32, #tpu.memory_space<vmem>>, %arg11: memref<64x32xbf16, #tpu.memory_space<vmem>>, %arg12: memref<1x32xf32, #tpu.memory_space<vmem>>, %arg13: memref<1x32xf32, #tpu.memory_space<vmem>>, %arg14: memref<1x32xf32, #tpu.memory_space<vmem>>, %arg15: memref<1x10x32xf32, #tpu.memory_space<vmem>>) attributes {dimension_semantics = [#tpu.dimension_semantics<parallel>], iteration_bounds = array<i64: 2>, scalar_prefetch = 0 : i64, scratch_operands = 0 : i64, tpu.core_type = #tpu.core_type<tc>, window_params = [{transform_indices = @transform_0, window_bounds = array<i64: 1, 10, 32>}, {transform_indices = @transform_1, window_bounds = array<i64: 1, 1, 10>}, {pipeline_mode = #tpu.pipeline_mode<synchronous>, transform_indices = @transform_2, window_bounds = array<i64: 4, 4, 10, 10>}, {pipeline_mode = #tpu.pipeline_mode<synchronous>, transform_indices = @transform_3, window_bounds = array<i64: 32, 96>}, {pipeline_mode = #tpu.pipeline_mode<synchronous>, transform_indices = @transform_4, window_bounds = array<i64: 32, 32>}, {pipeline_mode = #tpu.pipeline_mode<synchronous>, transform_indices = @transform_5, window_bounds = array<i64: 1, 32>}, {pipeline_mode = #tpu.pipeline_mode<synchronous>, transform_indices = @transform_6, window_bounds = array<i64: 1, 32>}, {pipeline_mode = #tpu.pipeline_mode<synchronous>, transform_indices = @transform_7, window_bounds = array<i64: 1, 32>}, {pipeline_mode = #tpu.pipeline_mode<synchronous>, transform_indices = @transform_8, window_bounds = array<i64: 32, 64>}, {pipeline_mode = #tpu.pipeline_mode<synchronous>, transform_indices = @transform_9, window_bounds = array<i64: 1, 64>}, {pipeline_mode = #tpu.pipeline_mode<synchronous>, transform_indices = @transform_10, window_bounds = array<i64: 64, 32>}, {pipeline_mode = #tpu.pipeline_mode<synchronous>, transform_indices = @transform_11, window_bounds = array<i64: 1, 32>}, {pipeline_mode = #tpu.pipeline_mode<synchronous>, transform_indices = @transform_12, window_bounds = array<i64: 1, 32>}, {pipeline_mode = #tpu.pipeline_mode<synchronous>, transform_indices = @transform_13, window_bounds = array<i64: 1, 32>}, {transform_indices = @transform_14, window_bounds = array<i64: 1, 10, 32>}]} {
    %c0 = arith.constant 0 : index
    %c0_0 = arith.constant 0 : index
    %c0_1 = arith.constant 0 : index
    %0 = vector.load %arg1[%c0, %c0_0, %c0_1] : memref<1x10x32xf32, #tpu.memory_space<vmem>>, vector<1x10x32xf32>
    %1 = vector.shape_cast %0 : vector<1x10x32xf32> to vector<10x32xf32>
    %2 = arith.truncf %1 : vector<10x32xf32> to vector<10x32xbf16>
    %c0_2 = arith.constant 0 : index
    %c0_3 = arith.constant 0 : index
    %3 = vector.load %arg4[%c0_2, %c0_3] : memref<32x96xbf16, #tpu.memory_space<vmem>>, vector<32x96xbf16>
    %cst = arith.constant dense<0.000000e+00> : vector<10x96xf32>
    %4 = tpu.matmul %2, %3, %cst {dimension_numbers = #tpu.dot_dimension_numbers<[1], [0], [0], [1], [0, 0, 1, 1], [], []>} : vector<10x32xbf16>, vector<32x96xbf16>, vector<10x96xf32> -> vector<10x96xf32>
    %5 = vector.extract_strided_slice %4 {offsets = [0, 0], sizes = [10, 32], strides = [1, 1]} : vector<10x96xf32> to vector<10x32xf32>
    %6 = vector.extract_strided_slice %4 {offsets = [0, 32], sizes = [10, 32], strides = [1, 1]} : vector<10x96xf32> to vector<10x32xf32>
    %7 = vector.extract_strided_slice %4 {offsets = [0, 64], sizes = [10, 32], strides = [1, 1]} : vector<10x96xf32> to vector<10x32xf32>
    %c0_4 = arith.constant 0 : index
    %c0_5 = arith.constant 0 : index
    %c0_6 = arith.constant 0 : index
    %8 = vector.load %arg2[%c0_4, %c0_5, %c0_6] : memref<1x1x10xf32, #tpu.memory_space<vmem>>, vector<1x1x10xf32>
    %9 = vector.shape_cast %8 : vector<1x1x10xf32> to vector<1x10xf32>
    %cst_7 = arith.constant 0.000000e+00 : f32
    %10 = vector.broadcast %cst_7 : f32 to vector<1x10xf32>
    %11 = arith.cmpf oeq, %9, %10 : vector<1x10xf32>
    %12 = arith.truncf %5 : vector<10x32xf32> to vector<10x32xbf16>
    %13 = arith.truncf %6 : vector<10x32xf32> to vector<10x32xbf16>
    %14 = arith.truncf %7 : vector<10x32xf32> to vector<10x32xbf16>
    %15 = vector.extract_strided_slice %12 {offsets = [0, 0], sizes = [10, 8], strides = [1, 1]} : vector<10x32xbf16> to vector<10x8xbf16>
    %16 = vector.extract_strided_slice %13 {offsets = [0, 0], sizes = [10, 8], strides = [1, 1]} : vector<10x32xbf16> to vector<10x8xbf16>
    %cst_8 = arith.constant dense<0.000000e+00> : vector<10x10xf32>
    %17 = tpu.matmul %15, %16, %cst_8 {dimension_numbers = #tpu.dot_dimension_numbers<[1], [1], [0], [0], [0, 0, 1, 0], [], []>} : vector<10x8xbf16>, vector<10x8xbf16>, vector<10x10xf32> -> vector<10x10xf32>
    %cst_9 = arith.constant -1.000000e+20 : f32
    %18 = vector.shape_cast %11 : vector<1x10xi1> to vector<1x10xi1>
    %19 = vector.broadcast %18 : vector<1x10xi1> to vector<10x10xi1>
    %20 = vector.broadcast %cst_9 : f32 to vector<10x10xf32>
    %21 = arith.select %19, %20, %17 : vector<10x10xi1>, vector<10x10xf32>
    %cst_10 = arith.constant 0.176776692 : f32
    %22 = vector.broadcast %cst_10 : f32 to vector<10x10xf32>
    %23 = arith.mulf %21, %22 : vector<10x10xf32>
    %cst_11 = arith.constant dense<0xFF800000> : vector<10xf32>
    %24 = vector.multi_reduction <maximumf>, %23, %cst_11 [1] : vector<10x10xf32> to vector<10xf32>
    %25 = vector.shape_cast %24 : vector<10xf32> to vector<10x1xf32>
    %26 = vector.broadcast %25 : vector<10x1xf32> to vector<10x10xf32>
    %27 = arith.subf %23, %26 : vector<10x10xf32>
    %28 = math.exp %27 : vector<10x10xf32>
    %cst_12 = arith.constant dense<0.000000e+00> : vector<10xf32>
    %29 = vector.multi_reduction <add>, %28, %cst_12 [1] : vector<10x10xf32> to vector<10xf32>
    %30 = vector.shape_cast %29 : vector<10xf32> to vector<10x1xf32>
    %31 = tpu.reciprocal %30 {approx = true} : vector<10x1xf32> -> vector<10x1xf32>
    %32 = vector.broadcast %31 : vector<10x1xf32> to vector<10x10xf32>
    %33 = arith.mulf %28, %32 : vector<10x10xf32>
    %34 = arith.truncf %33 : vector<10x10xf32> to vector<10x10xbf16>
    %35 = vector.extract_strided_slice %14 {offsets = [0, 0], sizes = [10, 8], strides = [1, 1]} : vector<10x32xbf16> to vector<10x8xbf16>
    %cst_13 = arith.constant dense<0.000000e+00> : vector<10x8xf32>
    %36 = tpu.matmul %34, %35, %cst_13 {dimension_numbers = #tpu.dot_dimension_numbers<[1], [0], [0], [1], [0, 0, 1, 1], [], []>} : vector<10x10xbf16>, vector<10x8xbf16>, vector<10x8xf32> -> vector<10x8xf32>
    %37 = vector.extract_strided_slice %12 {offsets = [0, 8], sizes = [10, 8], strides = [1, 1]} : vector<10x32xbf16> to vector<10x8xbf16>
    %38 = vector.extract_strided_slice %13 {offsets = [0, 8], sizes = [10, 8], strides = [1, 1]} : vector<10x32xbf16> to vector<10x8xbf16>
    %cst_14 = arith.constant dense<0.000000e+00> : vector<10x10xf32>
    %39 = tpu.matmul %37, %38, %cst_14 {dimension_numbers = #tpu.dot_dimension_numbers<[1], [1], [0], [0], [0, 0, 1, 0], [], []>} : vector<10x8xbf16>, vector<10x8xbf16>, vector<10x10xf32> -> vector<10x10xf32>
    %cst_15 = arith.constant -1.000000e+20 : f32
    %40 = vector.shape_cast %11 : vector<1x10xi1> to vector<1x10xi1>
    %41 = vector.broadcast %40 : vector<1x10xi1> to vector<10x10xi1>
    %42 = vector.broadcast %cst_15 : f32 to vector<10x10xf32>
    %43 = arith.select %41, %42, %39 : vector<10x10xi1>, vector<10x10xf32>
    %cst_16 = arith.constant 0.176776692 : f32
    %44 = vector.broadcast %cst_16 : f32 to vector<10x10xf32>
    %45 = arith.mulf %43, %44 : vector<10x10xf32>
    %cst_17 = arith.constant dense<0xFF800000> : vector<10xf32>
    %46 = vector.multi_reduction <maximumf>, %45, %cst_17 [1] : vector<10x10xf32> to vector<10xf32>
    %47 = vector.shape_cast %46 : vector<10xf32> to vector<10x1xf32>
    %48 = vector.broadcast %47 : vector<10x1xf32> to vector<10x10xf32>
    %49 = arith.subf %45, %48 : vector<10x10xf32>
    %50 = math.exp %49 : vector<10x10xf32>
    %cst_18 = arith.constant dense<0.000000e+00> : vector<10xf32>
    %51 = vector.multi_reduction <add>, %50, %cst_18 [1] : vector<10x10xf32> to vector<10xf32>
    %52 = vector.shape_cast %51 : vector<10xf32> to vector<10x1xf32>
    %53 = tpu.reciprocal %52 {approx = true} : vector<10x1xf32> -> vector<10x1xf32>
    %54 = vector.broadcast %53 : vector<10x1xf32> to vector<10x10xf32>
    %55 = arith.mulf %50, %54 : vector<10x10xf32>
    %56 = arith.truncf %55 : vector<10x10xf32> to vector<10x10xbf16>
    %57 = vector.extract_strided_slice %14 {offsets = [0, 8], sizes = [10, 8], strides = [1, 1]} : vector<10x32xbf16> to vector<10x8xbf16>
    %cst_19 = arith.constant dense<0.000000e+00> : vector<10x8xf32>
    %58 = tpu.matmul %56, %57, %cst_19 {dimension_numbers = #tpu.dot_dimension_numbers<[1], [0], [0], [1], [0, 0, 1, 1], [], []>} : vector<10x10xbf16>, vector<10x8xbf16>, vector<10x8xf32> -> vector<10x8xf32>
    %59 = vector.extract_strided_slice %12 {offsets = [0, 16], sizes = [10, 8], strides = [1, 1]} : vector<10x32xbf16> to vector<10x8xbf16>
    %60 = vector.extract_strided_slice %13 {offsets = [0, 16], sizes = [10, 8], strides = [1, 1]} : vector<10x32xbf16> to vector<10x8xbf16>
    %cst_20 = arith.constant dense<0.000000e+00> : vector<10x10xf32>
    %61 = tpu.matmul %59, %60, %cst_20 {dimension_numbers = #tpu.dot_dimension_numbers<[1], [1], [0], [0], [0, 0, 1, 0], [], []>} : vector<10x8xbf16>, vector<10x8xbf16>, vector<10x10xf32> -> vector<10x10xf32>
    %cst_21 = arith.constant -1.000000e+20 : f32
    %62 = vector.shape_cast %11 : vector<1x10xi1> to vector<1x10xi1>
    %63 = vector.broadcast %62 : vector<1x10xi1> to vector<10x10xi1>
    %64 = vector.broadcast %cst_21 : f32 to vector<10x10xf32>
    %65 = arith.select %63, %64, %61 : vector<10x10xi1>, vector<10x10xf32>
    %cst_22 = arith.constant 0.176776692 : f32
    %66 = vector.broadcast %cst_22 : f32 to vector<10x10xf32>
    %67 = arith.mulf %65, %66 : vector<10x10xf32>
    %cst_23 = arith.constant dense<0xFF800000> : vector<10xf32>
    %68 = vector.multi_reduction <maximumf>, %67, %cst_23 [1] : vector<10x10xf32> to vector<10xf32>
    %69 = vector.shape_cast %68 : vector<10xf32> to vector<10x1xf32>
    %70 = vector.broadcast %69 : vector<10x1xf32> to vector<10x10xf32>
    %71 = arith.subf %67, %70 : vector<10x10xf32>
    %72 = math.exp %71 : vector<10x10xf32>
    %cst_24 = arith.constant dense<0.000000e+00> : vector<10xf32>
    %73 = vector.multi_reduction <add>, %72, %cst_24 [1] : vector<10x10xf32> to vector<10xf32>
    %74 = vector.shape_cast %73 : vector<10xf32> to vector<10x1xf32>
    %75 = tpu.reciprocal %74 {approx = true} : vector<10x1xf32> -> vector<10x1xf32>
    %76 = vector.broadcast %75 : vector<10x1xf32> to vector<10x10xf32>
    %77 = arith.mulf %72, %76 : vector<10x10xf32>
    %78 = arith.truncf %77 : vector<10x10xf32> to vector<10x10xbf16>
    %79 = vector.extract_strided_slice %14 {offsets = [0, 16], sizes = [10, 8], strides = [1, 1]} : vector<10x32xbf16> to vector<10x8xbf16>
    %cst_25 = arith.constant dense<0.000000e+00> : vector<10x8xf32>
    %80 = tpu.matmul %78, %79, %cst_25 {dimension_numbers = #tpu.dot_dimension_numbers<[1], [0], [0], [1], [0, 0, 1, 1], [], []>} : vector<10x10xbf16>, vector<10x8xbf16>, vector<10x8xf32> -> vector<10x8xf32>
    %81 = vector.extract_strided_slice %12 {offsets = [0, 24], sizes = [10, 8], strides = [1, 1]} : vector<10x32xbf16> to vector<10x8xbf16>
    %82 = vector.extract_strided_slice %13 {offsets = [0, 24], sizes = [10, 8], strides = [1, 1]} : vector<10x32xbf16> to vector<10x8xbf16>
    %cst_26 = arith.constant dense<0.000000e+00> : vector<10x10xf32>
    %83 = tpu.matmul %81, %82, %cst_26 {dimension_numbers = #tpu.dot_dimension_numbers<[1], [1], [0], [0], [0, 0, 1, 0], [], []>} : vector<10x8xbf16>, vector<10x8xbf16>, vector<10x10xf32> -> vector<10x10xf32>
    %cst_27 = arith.constant -1.000000e+20 : f32
    %84 = vector.shape_cast %11 : vector<1x10xi1> to vector<1x10xi1>
    %85 = vector.broadcast %84 : vector<1x10xi1> to vector<10x10xi1>
    %86 = vector.broadcast %cst_27 : f32 to vector<10x10xf32>
    %87 = arith.select %85, %86, %83 : vector<10x10xi1>, vector<10x10xf32>
    %cst_28 = arith.constant 0.176776692 : f32
    %88 = vector.broadcast %cst_28 : f32 to vector<10x10xf32>
    %89 = arith.mulf %87, %88 : vector<10x10xf32>
    %cst_29 = arith.constant dense<0xFF800000> : vector<10xf32>
    %90 = vector.multi_reduction <maximumf>, %89, %cst_29 [1] : vector<10x10xf32> to vector<10xf32>
    %91 = vector.shape_cast %90 : vector<10xf32> to vector<10x1xf32>
    %92 = vector.broadcast %91 : vector<10x1xf32> to vector<10x10xf32>
    %93 = arith.subf %89, %92 : vector<10x10xf32>
    %94 = math.exp %93 : vector<10x10xf32>
    %cst_30 = arith.constant dense<0.000000e+00> : vector<10xf32>
    %95 = vector.multi_reduction <add>, %94, %cst_30 [1] : vector<10x10xf32> to vector<10xf32>
    %96 = vector.shape_cast %95 : vector<10xf32> to vector<10x1xf32>
    %97 = tpu.reciprocal %96 {approx = true} : vector<10x1xf32> -> vector<10x1xf32>
    %98 = vector.broadcast %97 : vector<10x1xf32> to vector<10x10xf32>
    %99 = arith.mulf %94, %98 : vector<10x10xf32>
    %100 = arith.truncf %99 : vector<10x10xf32> to vector<10x10xbf16>
    %101 = vector.extract_strided_slice %14 {offsets = [0, 24], sizes = [10, 8], strides = [1, 1]} : vector<10x32xbf16> to vector<10x8xbf16>
    %cst_31 = arith.constant dense<0.000000e+00> : vector<10x8xf32>
    %102 = tpu.matmul %100, %101, %cst_31 {dimension_numbers = #tpu.dot_dimension_numbers<[1], [0], [0], [1], [0, 0, 1, 1], [], []>} : vector<10x10xbf16>, vector<10x8xbf16>, vector<10x8xf32> -> vector<10x8xf32>
    %c0_32 = arith.constant 0 : index
    %c0_33 = arith.constant 0 : index
    %c0_34 = arith.constant 0 : index
    %c0_35 = arith.constant 0 : index
    %103 = vector.load %arg3[%c0_32, %c0_33, %c0_34, %c0_35] : memref<4x4x10x10xf32, #tpu.memory_space<vmem>>, vector<1x1x10x10xf32>
    %104 = vector.shape_cast %103 : vector<1x1x10x10xf32> to vector<10x10xf32>
    %cst_36 = arith.constant dense<0.000000e+00> : vector<10x8xf32>
    %105 = tpu.matmul %104, %36, %cst_36 {dimension_numbers = #tpu.dot_dimension_numbers<[1], [0], [0], [1], [0, 0, 1, 1], [], []>} : vector<10x10xf32>, vector<10x8xf32>, vector<10x8xf32> -> vector<10x8xf32>
    %c0_37 = arith.constant 0 : index
    %c1 = arith.constant 1 : index
    %c0_38 = arith.constant 0 : index
    %c0_39 = arith.constant 0 : index
    %106 = vector.load %arg3[%c0_37, %c1, %c0_38, %c0_39] : memref<4x4x10x10xf32, #tpu.memory_space<vmem>>, vector<1x1x10x10xf32>
    %107 = vector.shape_cast %106 : vector<1x1x10x10xf32> to vector<10x10xf32>
    %cst_40 = arith.constant dense<0.000000e+00> : vector<10x8xf32>
    %108 = tpu.matmul %107, %58, %cst_40 {dimension_numbers = #tpu.dot_dimension_numbers<[1], [0], [0], [1], [0, 0, 1, 1], [], []>} : vector<10x10xf32>, vector<10x8xf32>, vector<10x8xf32> -> vector<10x8xf32>
    %109 = arith.addf %105, %108 : vector<10x8xf32>
    %c0_41 = arith.constant 0 : index
    %c2 = arith.constant 2 : index
    %c0_42 = arith.constant 0 : index
    %c0_43 = arith.constant 0 : index
    %110 = vector.load %arg3[%c0_41, %c2, %c0_42, %c0_43] : memref<4x4x10x10xf32, #tpu.memory_space<vmem>>, vector<1x1x10x10xf32>
    %111 = vector.shape_cast %110 : vector<1x1x10x10xf32> to vector<10x10xf32>
    %cst_44 = arith.constant dense<0.000000e+00> : vector<10x8xf32>
    %112 = tpu.matmul %111, %80, %cst_44 {dimension_numbers = #tpu.dot_dimension_numbers<[1], [0], [0], [1], [0, 0, 1, 1], [], []>} : vector<10x10xf32>, vector<10x8xf32>, vector<10x8xf32> -> vector<10x8xf32>
    %113 = arith.addf %109, %112 : vector<10x8xf32>
    %c0_45 = arith.constant 0 : index
    %c3 = arith.constant 3 : index
    %c0_46 = arith.constant 0 : index
    %c0_47 = arith.constant 0 : index
    %114 = vector.load %arg3[%c0_45, %c3, %c0_46, %c0_47] : memref<4x4x10x10xf32, #tpu.memory_space<vmem>>, vector<1x1x10x10xf32>
    %115 = vector.shape_cast %114 : vector<1x1x10x10xf32> to vector<10x10xf32>
    %cst_48 = arith.constant dense<0.000000e+00> : vector<10x8xf32>
    %116 = tpu.matmul %115, %102, %cst_48 {dimension_numbers = #tpu.dot_dimension_numbers<[1], [0], [0], [1], [0, 0, 1, 1], [], []>} : vector<10x10xf32>, vector<10x8xf32>, vector<10x8xf32> -> vector<10x8xf32>
    %117 = arith.addf %113, %116 : vector<10x8xf32>
    %c1_49 = arith.constant 1 : index
    %c0_50 = arith.constant 0 : index
    %c0_51 = arith.constant 0 : index
    %c0_52 = arith.constant 0 : index
    %118 = vector.load %arg3[%c1_49, %c0_50, %c0_51, %c0_52] : memref<4x4x10x10xf32, #tpu.memory_space<vmem>>, vector<1x1x10x10xf32>
    %119 = vector.shape_cast %118 : vector<1x1x10x10xf32> to vector<10x10xf32>
    %cst_53 = arith.constant dense<0.000000e+00> : vector<10x8xf32>
    %120 = tpu.matmul %119, %36, %cst_53 {dimension_numbers = #tpu.dot_dimension_numbers<[1], [0], [0], [1], [0, 0, 1, 1], [], []>} : vector<10x10xf32>, vector<10x8xf32>, vector<10x8xf32> -> vector<10x8xf32>
    %c1_54 = arith.constant 1 : index
    %c1_55 = arith.constant 1 : index
    %c0_56 = arith.constant 0 : index
    %c0_57 = arith.constant 0 : index
    %121 = vector.load %arg3[%c1_54, %c1_55, %c0_56, %c0_57] : memref<4x4x10x10xf32, #tpu.memory_space<vmem>>, vector<1x1x10x10xf32>
    %122 = vector.shape_cast %121 : vector<1x1x10x10xf32> to vector<10x10xf32>
    %cst_58 = arith.constant dense<0.000000e+00> : vector<10x8xf32>
    %123 = tpu.matmul %122, %58, %cst_58 {dimension_numbers = #tpu.dot_dimension_numbers<[1], [0], [0], [1], [0, 0, 1, 1], [], []>} : vector<10x10xf32>, vector<10x8xf32>, vector<10x8xf32> -> vector<10x8xf32>
    %124 = arith.addf %120, %123 : vector<10x8xf32>
    %c1_59 = arith.constant 1 : index
    %c2_60 = arith.constant 2 : index
    %c0_61 = arith.constant 0 : index
    %c0_62 = arith.constant 0 : index
    %125 = vector.load %arg3[%c1_59, %c2_60, %c0_61, %c0_62] : memref<4x4x10x10xf32, #tpu.memory_space<vmem>>, vector<1x1x10x10xf32>
    %126 = vector.shape_cast %125 : vector<1x1x10x10xf32> to vector<10x10xf32>
    %cst_63 = arith.constant dense<0.000000e+00> : vector<10x8xf32>
    %127 = tpu.matmul %126, %80, %cst_63 {dimension_numbers = #tpu.dot_dimension_numbers<[1], [0], [0], [1], [0, 0, 1, 1], [], []>} : vector<10x10xf32>, vector<10x8xf32>, vector<10x8xf32> -> vector<10x8xf32>
    %128 = arith.addf %124, %127 : vector<10x8xf32>
    %c1_64 = arith.constant 1 : index
    %c3_65 = arith.constant 3 : index
    %c0_66 = arith.constant 0 : index
    %c0_67 = arith.constant 0 : index
    %129 = vector.load %arg3[%c1_64, %c3_65, %c0_66, %c0_67] : memref<4x4x10x10xf32, #tpu.memory_space<vmem>>, vector<1x1x10x10xf32>
    %130 = vector.shape_cast %129 : vector<1x1x10x10xf32> to vector<10x10xf32>
    %cst_68 = arith.constant dense<0.000000e+00> : vector<10x8xf32>
    %131 = tpu.matmul %130, %102, %cst_68 {dimension_numbers = #tpu.dot_dimension_numbers<[1], [0], [0], [1], [0, 0, 1, 1], [], []>} : vector<10x10xf32>, vector<10x8xf32>, vector<10x8xf32> -> vector<10x8xf32>
    %132 = arith.addf %128, %131 : vector<10x8xf32>
    %c2_69 = arith.constant 2 : index
    %c0_70 = arith.constant 0 : index
    %c0_71 = arith.constant 0 : index
    %c0_72 = arith.constant 0 : index
    %133 = vector.load %arg3[%c2_69, %c0_70, %c0_71, %c0_72] : memref<4x4x10x10xf32, #tpu.memory_space<vmem>>, vector<1x1x10x10xf32>
    %134 = vector.shape_cast %133 : vector<1x1x10x10xf32> to vector<10x10xf32>
    %cst_73 = arith.constant dense<0.000000e+00> : vector<10x8xf32>
    %135 = tpu.matmul %134, %36, %cst_73 {dimension_numbers = #tpu.dot_dimension_numbers<[1], [0], [0], [1], [0, 0, 1, 1], [], []>} : vector<10x10xf32>, vector<10x8xf32>, vector<10x8xf32> -> vector<10x8xf32>
    %c2_74 = arith.constant 2 : index
    %c1_75 = arith.constant 1 : index
    %c0_76 = arith.constant 0 : index
    %c0_77 = arith.constant 0 : index
    %136 = vector.load %arg3[%c2_74, %c1_75, %c0_76, %c0_77] : memref<4x4x10x10xf32, #tpu.memory_space<vmem>>, vector<1x1x10x10xf32>
    %137 = vector.shape_cast %136 : vector<1x1x10x10xf32> to vector<10x10xf32>
    %cst_78 = arith.constant dense<0.000000e+00> : vector<10x8xf32>
    %138 = tpu.matmul %137, %58, %cst_78 {dimension_numbers = #tpu.dot_dimension_numbers<[1], [0], [0], [1], [0, 0, 1, 1], [], []>} : vector<10x10xf32>, vector<10x8xf32>, vector<10x8xf32> -> vector<10x8xf32>
    %139 = arith.addf %135, %138 : vector<10x8xf32>
    %c2_79 = arith.constant 2 : index
    %c2_80 = arith.constant 2 : index
    %c0_81 = arith.constant 0 : index
    %c0_82 = arith.constant 0 : index
    %140 = vector.load %arg3[%c2_79, %c2_80, %c0_81, %c0_82] : memref<4x4x10x10xf32, #tpu.memory_space<vmem>>, vector<1x1x10x10xf32>
    %141 = vector.shape_cast %140 : vector<1x1x10x10xf32> to vector<10x10xf32>
    %cst_83 = arith.constant dense<0.000000e+00> : vector<10x8xf32>
    %142 = tpu.matmul %141, %80, %cst_83 {dimension_numbers = #tpu.dot_dimension_numbers<[1], [0], [0], [1], [0, 0, 1, 1], [], []>} : vector<10x10xf32>, vector<10x8xf32>, vector<10x8xf32> -> vector<10x8xf32>
    %143 = arith.addf %139, %142 : vector<10x8xf32>
    %c2_84 = arith.constant 2 : index
    %c3_85 = arith.constant 3 : index
    %c0_86 = arith.constant 0 : index
    %c0_87 = arith.constant 0 : index
    %144 = vector.load %arg3[%c2_84, %c3_85, %c0_86, %c0_87] : memref<4x4x10x10xf32, #tpu.memory_space<vmem>>, vector<1x1x10x10xf32>
    %145 = vector.shape_cast %144 : vector<1x1x10x10xf32> to vector<10x10xf32>
    %cst_88 = arith.constant dense<0.000000e+00> : vector<10x8xf32>
    %146 = tpu.matmul %145, %102, %cst_88 {dimension_numbers = #tpu.dot_dimension_numbers<[1], [0], [0], [1], [0, 0, 1, 1], [], []>} : vector<10x10xf32>, vector<10x8xf32>, vector<10x8xf32> -> vector<10x8xf32>
    %147 = arith.addf %143, %146 : vector<10x8xf32>
    %c3_89 = arith.constant 3 : index
    %c0_90 = arith.constant 0 : index
    %c0_91 = arith.constant 0 : index
    %c0_92 = arith.constant 0 : index
    %148 = vector.load %arg3[%c3_89, %c0_90, %c0_91, %c0_92] : memref<4x4x10x10xf32, #tpu.memory_space<vmem>>, vector<1x1x10x10xf32>
    %149 = vector.shape_cast %148 : vector<1x1x10x10xf32> to vector<10x10xf32>
    %cst_93 = arith.constant dense<0.000000e+00> : vector<10x8xf32>
    %150 = tpu.matmul %149, %36, %cst_93 {dimension_numbers = #tpu.dot_dimension_numbers<[1], [0], [0], [1], [0, 0, 1, 1], [], []>} : vector<10x10xf32>, vector<10x8xf32>, vector<10x8xf32> -> vector<10x8xf32>
    %c3_94 = arith.constant 3 : index
    %c1_95 = arith.constant 1 : index
    %c0_96 = arith.constant 0 : index
    %c0_97 = arith.constant 0 : index
    %151 = vector.load %arg3[%c3_94, %c1_95, %c0_96, %c0_97] : memref<4x4x10x10xf32, #tpu.memory_space<vmem>>, vector<1x1x10x10xf32>
    %152 = vector.shape_cast %151 : vector<1x1x10x10xf32> to vector<10x10xf32>
    %cst_98 = arith.constant dense<0.000000e+00> : vector<10x8xf32>
    %153 = tpu.matmul %152, %58, %cst_98 {dimension_numbers = #tpu.dot_dimension_numbers<[1], [0], [0], [1], [0, 0, 1, 1], [], []>} : vector<10x10xf32>, vector<10x8xf32>, vector<10x8xf32> -> vector<10x8xf32>
    %154 = arith.addf %150, %153 : vector<10x8xf32>
    %c3_99 = arith.constant 3 : index
    %c2_100 = arith.constant 2 : index
    %c0_101 = arith.constant 0 : index
    %c0_102 = arith.constant 0 : index
    %155 = vector.load %arg3[%c3_99, %c2_100, %c0_101, %c0_102] : memref<4x4x10x10xf32, #tpu.memory_space<vmem>>, vector<1x1x10x10xf32>
    %156 = vector.shape_cast %155 : vector<1x1x10x10xf32> to vector<10x10xf32>
    %cst_103 = arith.constant dense<0.000000e+00> : vector<10x8xf32>
    %157 = tpu.matmul %156, %80, %cst_103 {dimension_numbers = #tpu.dot_dimension_numbers<[1], [0], [0], [1], [0, 0, 1, 1], [], []>} : vector<10x10xf32>, vector<10x8xf32>, vector<10x8xf32> -> vector<10x8xf32>
    %158 = arith.addf %154, %157 : vector<10x8xf32>
    %c3_104 = arith.constant 3 : index
    %c3_105 = arith.constant 3 : index
    %c0_106 = arith.constant 0 : index
    %c0_107 = arith.constant 0 : index
    %159 = vector.load %arg3[%c3_104, %c3_105, %c0_106, %c0_107] : memref<4x4x10x10xf32, #tpu.memory_space<vmem>>, vector<1x1x10x10xf32>
    %160 = vector.shape_cast %159 : vector<1x1x10x10xf32> to vector<10x10xf32>
    %cst_108 = arith.constant dense<0.000000e+00> : vector<10x8xf32>
    %161 = tpu.matmul %160, %102, %cst_108 {dimension_numbers = #tpu.dot_dimension_numbers<[1], [0], [0], [1], [0, 0, 1, 1], [], []>} : vector<10x10xf32>, vector<10x8xf32>, vector<10x8xf32> -> vector<10x8xf32>
    %162 = arith.addf %158, %161 : vector<10x8xf32>
    %163 = tpu.concatenate %117, %132, %147, %162 in 1 : vector<10x8xf32>, vector<10x8xf32>, vector<10x8xf32>, vector<10x8xf32> -> vector<10x32xf32>
    %c0_109 = arith.constant 0 : index
    %c0_110 = arith.constant 0 : index
    %164 = vector.load %arg5[%c0_109, %c0_110] : memref<32x32xbf16, #tpu.memory_space<vmem>>, vector<32x32xbf16>
    %c0_111 = arith.constant 0 : index
    %c0_112 = arith.constant 0 : index
    %165 = vector.load %arg6[%c0_111, %c0_112] : memref<1x32xf32, #tpu.memory_space<vmem>>, vector<1x32xf32>
    %c0_113 = arith.constant 0 : index
    %c0_114 = arith.constant 0 : index
    %166 = vector.load %arg7[%c0_113, %c0_114] : memref<1x32xf32, #tpu.memory_space<vmem>>, vector<1x32xf32>
    %c0_115 = arith.constant 0 : index
    %c0_116 = arith.constant 0 : index
    %167 = vector.load %arg8[%c0_115, %c0_116] : memref<1x32xf32, #tpu.memory_space<vmem>>, vector<1x32xf32>
    %168 = arith.truncf %163 : vector<10x32xf32> to vector<10x32xbf16>
    %cst_117 = arith.constant dense<0.000000e+00> : vector<10x32xf32>
    %169 = tpu.matmul %168, %164, %cst_117 {dimension_numbers = #tpu.dot_dimension_numbers<[1], [0], [0], [1], [0, 0, 1, 1], [], []>} : vector<10x32xbf16>, vector<32x32xbf16>, vector<10x32xf32> -> vector<10x32xf32>
    %170 = vector.broadcast %165 : vector<1x32xf32> to vector<10x32xf32>
    %171 = arith.addf %169, %170 : vector<10x32xf32>
    %172 = arith.addf %171, %1 : vector<10x32xf32>
    %cst_118 = arith.constant dense<0.000000e+00> : vector<10xf32>
    %173 = vector.multi_reduction <add>, %172, %cst_118 [1] : vector<10x32xf32> to vector<10xf32>
    %174 = vector.shape_cast %173 : vector<10xf32> to vector<10x1xf32>
    %cst_119 = arith.constant 3.200000e+01 : f32
    %175 = vector.broadcast %cst_119 : f32 to vector<10x1xf32>
    %176 = arith.divf %174, %175 : vector<10x1xf32>
    %177 = vector.broadcast %176 : vector<10x1xf32> to vector<10x32xf32>
    %178 = arith.subf %172, %177 : vector<10x32xf32>
    %179 = arith.mulf %178, %178 : vector<10x32xf32>
    %cst_120 = arith.constant dense<0.000000e+00> : vector<10xf32>
    %180 = vector.multi_reduction <add>, %179, %cst_120 [1] : vector<10x32xf32> to vector<10xf32>
    %181 = vector.shape_cast %180 : vector<10xf32> to vector<10x1xf32>
    %cst_121 = arith.constant 3.200000e+01 : f32
    %182 = vector.broadcast %cst_121 : f32 to vector<10x1xf32>
    %183 = arith.divf %181, %182 : vector<10x1xf32>
    %184 = vector.broadcast %176 : vector<10x1xf32> to vector<10x32xf32>
    %185 = arith.subf %172, %184 : vector<10x32xf32>
    %cst_122 = arith.constant 9.99999974E-6 : f32
    %186 = vector.broadcast %cst_122 : f32 to vector<10x1xf32>
    %187 = arith.addf %183, %186 : vector<10x1xf32>
    %188 = math.rsqrt %187 : vector<10x1xf32>
    %189 = vector.broadcast %188 : vector<10x1xf32> to vector<10x32xf32>
    %190 = arith.mulf %185, %189 : vector<10x32xf32>
    %191 = vector.broadcast %166 : vector<1x32xf32> to vector<10x32xf32>
    %192 = arith.mulf %190, %191 : vector<10x32xf32>
    %193 = vector.broadcast %167 : vector<1x32xf32> to vector<10x32xf32>
    %194 = arith.addf %192, %193 : vector<10x32xf32>
    %c0_123 = arith.constant 0 : index
    %c0_124 = arith.constant 0 : index
    %195 = vector.load %arg9[%c0_123, %c0_124] : memref<32x64xbf16, #tpu.memory_space<vmem>>, vector<32x64xbf16>
    %c0_125 = arith.constant 0 : index
    %c0_126 = arith.constant 0 : index
    %196 = vector.load %arg10[%c0_125, %c0_126] : memref<1x64xf32, #tpu.memory_space<vmem>>, vector<1x64xf32>
    %c0_127 = arith.constant 0 : index
    %c0_128 = arith.constant 0 : index
    %197 = vector.load %arg11[%c0_127, %c0_128] : memref<64x32xbf16, #tpu.memory_space<vmem>>, vector<64x32xbf16>
    %c0_129 = arith.constant 0 : index
    %c0_130 = arith.constant 0 : index
    %198 = vector.load %arg12[%c0_129, %c0_130] : memref<1x32xf32, #tpu.memory_space<vmem>>, vector<1x32xf32>
    %c0_131 = arith.constant 0 : index
    %c0_132 = arith.constant 0 : index
    %199 = vector.load %arg13[%c0_131, %c0_132] : memref<1x32xf32, #tpu.memory_space<vmem>>, vector<1x32xf32>
    %c0_133 = arith.constant 0 : index
    %c0_134 = arith.constant 0 : index
    %200 = vector.load %arg14[%c0_133, %c0_134] : memref<1x32xf32, #tpu.memory_space<vmem>>, vector<1x32xf32>
    %201 = arith.truncf %194 : vector<10x32xf32> to vector<10x32xbf16>
    %cst_135 = arith.constant dense<0.000000e+00> : vector<10x64xf32>
    %202 = tpu.matmul %201, %195, %cst_135 {dimension_numbers = #tpu.dot_dimension_numbers<[1], [0], [0], [1], [0, 0, 1, 1], [], []>} : vector<10x32xbf16>, vector<32x64xbf16>, vector<10x64xf32> -> vector<10x64xf32>
    %203 = vector.broadcast %196 : vector<1x64xf32> to vector<10x64xf32>
    %204 = arith.addf %202, %203 : vector<10x64xf32>
    %cst_136 = arith.constant 0.000000e+00 : f32
    %205 = vector.broadcast %cst_136 : f32 to vector<10x64xf32>
    %206 = arith.maximumf %204, %205 : vector<10x64xf32>
    %207 = arith.truncf %206 : vector<10x64xf32> to vector<10x64xbf16>
    %cst_137 = arith.constant dense<0.000000e+00> : vector<10x32xf32>
    %208 = tpu.matmul %207, %197, %cst_137 {dimension_numbers = #tpu.dot_dimension_numbers<[1], [0], [0], [1], [0, 0, 1, 1], [], []>} : vector<10x64xbf16>, vector<64x32xbf16>, vector<10x32xf32> -> vector<10x32xf32>
    %209 = vector.broadcast %198 : vector<1x32xf32> to vector<10x32xf32>
    %210 = arith.addf %208, %209 : vector<10x32xf32>
    %211 = arith.addf %210, %194 : vector<10x32xf32>
    %cst_138 = arith.constant dense<0.000000e+00> : vector<10xf32>
    %212 = vector.multi_reduction <add>, %211, %cst_138 [1] : vector<10x32xf32> to vector<10xf32>
    %213 = vector.shape_cast %212 : vector<10xf32> to vector<10x1xf32>
    %cst_139 = arith.constant 3.200000e+01 : f32
    %214 = vector.broadcast %cst_139 : f32 to vector<10x1xf32>
    %215 = arith.divf %213, %214 : vector<10x1xf32>
    %216 = vector.broadcast %215 : vector<10x1xf32> to vector<10x32xf32>
    %217 = arith.subf %211, %216 : vector<10x32xf32>
    %218 = arith.mulf %217, %217 : vector<10x32xf32>
    %cst_140 = arith.constant dense<0.000000e+00> : vector<10xf32>
    %219 = vector.multi_reduction <add>, %218, %cst_140 [1] : vector<10x32xf32> to vector<10xf32>
    %220 = vector.shape_cast %219 : vector<10xf32> to vector<10x1xf32>
    %cst_141 = arith.constant 3.200000e+01 : f32
    %221 = vector.broadcast %cst_141 : f32 to vector<10x1xf32>
    %222 = arith.divf %220, %221 : vector<10x1xf32>
    %223 = vector.broadcast %215 : vector<10x1xf32> to vector<10x32xf32>
    %224 = arith.subf %211, %223 : vector<10x32xf32>
    %cst_142 = arith.constant 9.99999974E-6 : f32
    %225 = vector.broadcast %cst_142 : f32 to vector<10x1xf32>
    %226 = arith.addf %222, %225 : vector<10x1xf32>
    %227 = math.rsqrt %226 : vector<10x1xf32>
    %228 = vector.broadcast %227 : vector<10x1xf32> to vector<10x32xf32>
    %229 = arith.mulf %224, %228 : vector<10x32xf32>
    %230 = vector.broadcast %199 : vector<1x32xf32> to vector<10x32xf32>
    %231 = arith.mulf %229, %230 : vector<10x32xf32>
    %232 = vector.broadcast %200 : vector<1x32xf32> to vector<10x32xf32>
    %233 = arith.addf %231, %232 : vector<10x32xf32>
    %c0_143 = arith.constant 0 : index
    %c0_144 = arith.constant 0 : index
    %c0_145 = arith.constant 0 : index
    %234 = vector.load %arg15[%c0_143, %c0_144, %c0_145] : memref<1x10x32xf32, #tpu.memory_space<vmem>>, vector<1x10x32xf32>
    %235 = vector.shape_cast %234 : vector<1x10x32xf32> to vector<10x32xf32>
    %236 = vector.shape_cast %233 : vector<10x32xf32> to vector<1x10x32xf32>
    tpu.vector_store %arg15[%c0_143, %c0_144, %c0_145], %236 {strides = array<i32>} : memref<1x10x32xf32, #tpu.memory_space<vmem>>, vector<1x10x32xf32>,
    return
  }
  func.func @transform_0(%arg0: i32) -> (i32, i32, i32) {
    %c0_i32 = arith.constant 0 : i32
    %c0_i32_0 = arith.constant 0 : i32
    %c0_i32_1 = arith.constant 0 : i32
    return %arg0, %c0_i32, %c0_i32_0 : i32, i32, i32
  }
  func.func @transform_1(%arg0: i32) -> (i32, i32, i32) {
    %c0_i32 = arith.constant 0 : i32
    %c0_i32_0 = arith.constant 0 : i32
    %c0_i32_1 = arith.constant 0 : i32
    return %arg0, %c0_i32, %c0_i32_0 : i32, i32, i32
  }
  func.func @transform_2(%arg0: i32) -> (i32, i32, i32, i32) {
    %c0_i32 = arith.constant 0 : i32
    %c0_i32_0 = arith.constant 0 : i32
    %c0_i32_1 = arith.constant 0 : i32
    %c0_i32_2 = arith.constant 0 : i32
    %c0_i32_3 = arith.constant 0 : i32
    return %c0_i32, %c0_i32_0, %c0_i32_1, %c0_i32_2 : i32, i32, i32, i32
  }
  func.func @transform_3(%arg0: i32) -> (i32, i32) {
    %c0_i32 = arith.constant 0 : i32
    %c0_i32_0 = arith.constant 0 : i32
    %c0_i32_1 = arith.constant 0 : i32
    return %c0_i32, %c0_i32_0 : i32, i32
  }
  func.func @transform_4(%arg0: i32) -> (i32, i32) {
    %c0_i32 = arith.constant 0 : i32
    %c0_i32_0 = arith.constant 0 : i32
    %c0_i32_1 = arith.constant 0 : i32
    return %c0_i32, %c0_i32_0 : i32, i32
  }
  func.func @transform_5(%arg0: i32) -> (i32, i32) {
    %c0_i32 = arith.constant 0 : i32
    %c0_i32_0 = arith.constant 0 : i32
    %c0_i32_1 = arith.constant 0 : i32
    return %c0_i32, %c0_i32_0 : i32, i32
  }
  func.func @transform_6(%arg0: i32) -> (i32, i32) {
    %c0_i32 = arith.constant 0 : i32
    %c0_i32_0 = arith.constant 0 : i32
    %c0_i32_1 = arith.constant 0 : i32
    return %c0_i32, %c0_i32_0 : i32, i32
  }
  func.func @transform_7(%arg0: i32) -> (i32, i32) {
    %c0_i32 = arith.constant 0 : i32
    %c0_i32_0 = arith.constant 0 : i32
    %c0_i32_1 = arith.constant 0 : i32
    return %c0_i32, %c0_i32_0 : i32, i32
  }
  func.func @transform_8(%arg0: i32) -> (i32, i32) {
    %c0_i32 = arith.constant 0 : i32
    %c0_i32_0 = arith.constant 0 : i32
    %c0_i32_1 = arith.constant 0 : i32
    return %c0_i32, %c0_i32_0 : i32, i32
  }
  func.func @transform_9(%arg0: i32) -> (i32, i32) {
    %c0_i32 = arith.constant 0 : i32
    %c0_i32_0 = arith.constant 0 : i32
    %c0_i32_1 = arith.constant 0 : i32
    return %c0_i32, %c0_i32_0 : i32, i32
  }
  func.func @transform_10(%arg0: i32) -> (i32, i32) {
    %c0_i32 = arith.constant 0 : i32
    %c0_i32_0 = arith.constant 0 : i32
    %c0_i32_1 = arith.constant 0 : i32
    return %c0_i32, %c0_i32_0 : i32, i32
  }
  func.func @transform_11(%arg0: i32) -> (i32, i32) {
    %c0_i32 = arith.constant 0 : i32
    %c0_i32_0 = arith.constant 0 : i32
    %c0_i32_1 = arith.constant 0 : i32
    return %c0_i32, %c0_i32_0 : i32, i32
  }
  func.func @transform_12(%arg0: i32) -> (i32, i32) {
    %c0_i32 = arith.constant 0 : i32
    %c0_i32_0 = arith.constant 0 : i32
    %c0_i32_1 = arith.constant 0 : i32
    return %c0_i32, %c0_i32_0 : i32, i32
  }
  func.func @transform_13(%arg0: i32) -> (i32, i32) {
    %c0_i32 = arith.constant 0 : i32
    %c0_i32_0 = arith.constant 0 : i32
    %c0_i32_1 = arith.constant 0 : i32
    return %c0_i32, %c0_i32_0 : i32, i32
  }
  func.func @transform_14(%arg0: i32) -> (i32, i32, i32) {
    %c0_i32 = arith.constant 0 : i32
    %c0_i32_0 = arith.constant 0 : i32
    %c0_i32_1 = arith.constant 0 : i32
    return %arg0, %c0_i32, %c0_i32_0 : i32, i32, i32
  }
}

module attributes {stable_mosaic.version = 11 : i64} {
  func.func @_cross_block_kernel(%arg0: i32, %arg1: memref<1x8x32xf32, #tpu.memory_space<vmem>>, %arg2: memref<1x10x32xf32, #tpu.memory_space<vmem>>, %arg3: memref<1x1x10xf32, #tpu.memory_space<vmem>>, %arg4: memref<4x4x8x8xf32, #tpu.memory_space<vmem>>, %arg5: memref<32x32xbf16, #tpu.memory_space<vmem>>, %arg6: memref<32x64xbf16, #tpu.memory_space<vmem>>, %arg7: memref<32x32xbf16, #tpu.memory_space<vmem>>, %arg8: memref<1x32xf32, #tpu.memory_space<vmem>>, %arg9: memref<1x32xf32, #tpu.memory_space<vmem>>, %arg10: memref<1x32xf32, #tpu.memory_space<vmem>>, %arg11: memref<32x64xbf16, #tpu.memory_space<vmem>>, %arg12: memref<1x64xf32, #tpu.memory_space<vmem>>, %arg13: memref<64x32xbf16, #tpu.memory_space<vmem>>, %arg14: memref<1x32xf32, #tpu.memory_space<vmem>>, %arg15: memref<1x32xf32, #tpu.memory_space<vmem>>, %arg16: memref<1x32xf32, #tpu.memory_space<vmem>>, %arg17: memref<1x8x32xf32, #tpu.memory_space<vmem>>) attributes {dimension_semantics = [#tpu.dimension_semantics<parallel>], iteration_bounds = array<i64: 2>, scalar_prefetch = 0 : i64, scratch_operands = 0 : i64, tpu.core_type = #tpu.core_type<tc>, window_params = [{transform_indices = @transform_0, window_bounds = array<i64: 1, 8, 32>}, {transform_indices = @transform_1, window_bounds = array<i64: 1, 10, 32>}, {transform_indices = @transform_2, window_bounds = array<i64: 1, 1, 10>}, {pipeline_mode = #tpu.pipeline_mode<synchronous>, transform_indices = @transform_3, window_bounds = array<i64: 4, 4, 8, 8>}, {pipeline_mode = #tpu.pipeline_mode<synchronous>, transform_indices = @transform_4, window_bounds = array<i64: 32, 32>}, {pipeline_mode = #tpu.pipeline_mode<synchronous>, transform_indices = @transform_5, window_bounds = array<i64: 32, 64>}, {pipeline_mode = #tpu.pipeline_mode<synchronous>, transform_indices = @transform_6, window_bounds = array<i64: 32, 32>}, {pipeline_mode = #tpu.pipeline_mode<synchronous>, transform_indices = @transform_7, window_bounds = array<i64: 1, 32>}, {pipeline_mode = #tpu.pipeline_mode<synchronous>, transform_indices = @transform_8, window_bounds = array<i64: 1, 32>}, {pipeline_mode = #tpu.pipeline_mode<synchronous>, transform_indices = @transform_9, window_bounds = array<i64: 1, 32>}, {pipeline_mode = #tpu.pipeline_mode<synchronous>, transform_indices = @transform_10, window_bounds = array<i64: 32, 64>}, {pipeline_mode = #tpu.pipeline_mode<synchronous>, transform_indices = @transform_11, window_bounds = array<i64: 1, 64>}, {pipeline_mode = #tpu.pipeline_mode<synchronous>, transform_indices = @transform_12, window_bounds = array<i64: 64, 32>}, {pipeline_mode = #tpu.pipeline_mode<synchronous>, transform_indices = @transform_13, window_bounds = array<i64: 1, 32>}, {pipeline_mode = #tpu.pipeline_mode<synchronous>, transform_indices = @transform_14, window_bounds = array<i64: 1, 32>}, {pipeline_mode = #tpu.pipeline_mode<synchronous>, transform_indices = @transform_15, window_bounds = array<i64: 1, 32>}, {transform_indices = @transform_16, window_bounds = array<i64: 1, 8, 32>}]} {
    %c0 = arith.constant 0 : index
    %c0_0 = arith.constant 0 : index
    %c0_1 = arith.constant 0 : index
    %0 = vector.load %arg1[%c0, %c0_0, %c0_1] : memref<1x8x32xf32, #tpu.memory_space<vmem>>, vector<1x8x32xf32>
    %1 = vector.shape_cast %0 : vector<1x8x32xf32> to vector<8x32xf32>
    %2 = arith.truncf %1 : vector<8x32xf32> to vector<8x32xbf16>
    %c0_2 = arith.constant 0 : index
    %c0_3 = arith.constant 0 : index
    %3 = vector.load %arg5[%c0_2, %c0_3] : memref<32x32xbf16, #tpu.memory_space<vmem>>, vector<32x32xbf16>
    %cst = arith.constant dense<0.000000e+00> : vector<8x32xf32>
    %4 = tpu.matmul %2, %3, %cst {dimension_numbers = #tpu.dot_dimension_numbers<[1], [0], [0], [1], [0, 0, 1, 1], [], []>} : vector<8x32xbf16>, vector<32x32xbf16>, vector<8x32xf32> -> vector<8x32xf32>
    %c0_4 = arith.constant 0 : index
    %c0_5 = arith.constant 0 : index
    %c0_6 = arith.constant 0 : index
    %5 = vector.load %arg2[%c0_4, %c0_5, %c0_6] : memref<1x10x32xf32, #tpu.memory_space<vmem>>, vector<1x10x32xf32>
    %6 = vector.shape_cast %5 : vector<1x10x32xf32> to vector<10x32xf32>
    %7 = arith.truncf %6 : vector<10x32xf32> to vector<10x32xbf16>
    %c0_7 = arith.constant 0 : index
    %c0_8 = arith.constant 0 : index
    %8 = vector.load %arg6[%c0_7, %c0_8] : memref<32x64xbf16, #tpu.memory_space<vmem>>, vector<32x64xbf16>
    %cst_9 = arith.constant dense<0.000000e+00> : vector<10x64xf32>
    %9 = tpu.matmul %7, %8, %cst_9 {dimension_numbers = #tpu.dot_dimension_numbers<[1], [0], [0], [1], [0, 0, 1, 1], [], []>} : vector<10x32xbf16>, vector<32x64xbf16>, vector<10x64xf32> -> vector<10x64xf32>
    %10 = vector.extract_strided_slice %9 {offsets = [0, 0], sizes = [10, 32], strides = [1, 1]} : vector<10x64xf32> to vector<10x32xf32>
    %11 = vector.extract_strided_slice %9 {offsets = [0, 32], sizes = [10, 32], strides = [1, 1]} : vector<10x64xf32> to vector<10x32xf32>
    %c0_10 = arith.constant 0 : index
    %c0_11 = arith.constant 0 : index
    %c0_12 = arith.constant 0 : index
    %12 = vector.load %arg3[%c0_10, %c0_11, %c0_12] : memref<1x1x10xf32, #tpu.memory_space<vmem>>, vector<1x1x10xf32>
    %13 = vector.shape_cast %12 : vector<1x1x10xf32> to vector<1x10xf32>
    %cst_13 = arith.constant 0.000000e+00 : f32
    %14 = vector.broadcast %cst_13 : f32 to vector<1x10xf32>
    %15 = arith.cmpf oeq, %13, %14 : vector<1x10xf32>
    %16 = arith.truncf %4 : vector<8x32xf32> to vector<8x32xbf16>
    %17 = arith.truncf %10 : vector<10x32xf32> to vector<10x32xbf16>
    %18 = arith.truncf %11 : vector<10x32xf32> to vector<10x32xbf16>
    %19 = vector.extract_strided_slice %16 {offsets = [0, 0], sizes = [8, 8], strides = [1, 1]} : vector<8x32xbf16> to vector<8x8xbf16>
    %20 = vector.extract_strided_slice %17 {offsets = [0, 0], sizes = [10, 8], strides = [1, 1]} : vector<10x32xbf16> to vector<10x8xbf16>
    %cst_14 = arith.constant dense<0.000000e+00> : vector<8x10xf32>
    %21 = tpu.matmul %19, %20, %cst_14 {dimension_numbers = #tpu.dot_dimension_numbers<[1], [1], [0], [0], [0, 0, 1, 0], [], []>} : vector<8x8xbf16>, vector<10x8xbf16>, vector<8x10xf32> -> vector<8x10xf32>
    %cst_15 = arith.constant -1.000000e+20 : f32
    %22 = vector.shape_cast %15 : vector<1x10xi1> to vector<1x10xi1>
    %23 = vector.broadcast %22 : vector<1x10xi1> to vector<8x10xi1>
    %24 = vector.broadcast %cst_15 : f32 to vector<8x10xf32>
    %25 = arith.select %23, %24, %21 : vector<8x10xi1>, vector<8x10xf32>
    %cst_16 = arith.constant 0.176776692 : f32
    %26 = vector.broadcast %cst_16 : f32 to vector<8x10xf32>
    %27 = arith.mulf %25, %26 : vector<8x10xf32>
    %cst_17 = arith.constant dense<0xFF800000> : vector<8xf32>
    %28 = vector.multi_reduction <maximumf>, %27, %cst_17 [1] : vector<8x10xf32> to vector<8xf32>
    %29 = vector.shape_cast %28 : vector<8xf32> to vector<8x1xf32>
    %30 = vector.broadcast %29 : vector<8x1xf32> to vector<8x10xf32>
    %31 = arith.subf %27, %30 : vector<8x10xf32>
    %32 = math.exp %31 : vector<8x10xf32>
    %cst_18 = arith.constant dense<0.000000e+00> : vector<8xf32>
    %33 = vector.multi_reduction <add>, %32, %cst_18 [1] : vector<8x10xf32> to vector<8xf32>
    %34 = vector.shape_cast %33 : vector<8xf32> to vector<8x1xf32>
    %35 = tpu.reciprocal %34 {approx = true} : vector<8x1xf32> -> vector<8x1xf32>
    %36 = vector.broadcast %35 : vector<8x1xf32> to vector<8x10xf32>
    %37 = arith.mulf %32, %36 : vector<8x10xf32>
    %38 = arith.truncf %37 : vector<8x10xf32> to vector<8x10xbf16>
    %39 = vector.extract_strided_slice %18 {offsets = [0, 0], sizes = [10, 8], strides = [1, 1]} : vector<10x32xbf16> to vector<10x8xbf16>
    %cst_19 = arith.constant dense<0.000000e+00> : vector<8x8xf32>
    %40 = tpu.matmul %38, %39, %cst_19 {dimension_numbers = #tpu.dot_dimension_numbers<[1], [0], [0], [1], [0, 0, 1, 1], [], []>} : vector<8x10xbf16>, vector<10x8xbf16>, vector<8x8xf32> -> vector<8x8xf32>
    %41 = vector.extract_strided_slice %16 {offsets = [0, 8], sizes = [8, 8], strides = [1, 1]} : vector<8x32xbf16> to vector<8x8xbf16>
    %42 = vector.extract_strided_slice %17 {offsets = [0, 8], sizes = [10, 8], strides = [1, 1]} : vector<10x32xbf16> to vector<10x8xbf16>
    %cst_20 = arith.constant dense<0.000000e+00> : vector<8x10xf32>
    %43 = tpu.matmul %41, %42, %cst_20 {dimension_numbers = #tpu.dot_dimension_numbers<[1], [1], [0], [0], [0, 0, 1, 0], [], []>} : vector<8x8xbf16>, vector<10x8xbf16>, vector<8x10xf32> -> vector<8x10xf32>
    %cst_21 = arith.constant -1.000000e+20 : f32
    %44 = vector.shape_cast %15 : vector<1x10xi1> to vector<1x10xi1>
    %45 = vector.broadcast %44 : vector<1x10xi1> to vector<8x10xi1>
    %46 = vector.broadcast %cst_21 : f32 to vector<8x10xf32>
    %47 = arith.select %45, %46, %43 : vector<8x10xi1>, vector<8x10xf32>
    %cst_22 = arith.constant 0.176776692 : f32
    %48 = vector.broadcast %cst_22 : f32 to vector<8x10xf32>
    %49 = arith.mulf %47, %48 : vector<8x10xf32>
    %cst_23 = arith.constant dense<0xFF800000> : vector<8xf32>
    %50 = vector.multi_reduction <maximumf>, %49, %cst_23 [1] : vector<8x10xf32> to vector<8xf32>
    %51 = vector.shape_cast %50 : vector<8xf32> to vector<8x1xf32>
    %52 = vector.broadcast %51 : vector<8x1xf32> to vector<8x10xf32>
    %53 = arith.subf %49, %52 : vector<8x10xf32>
    %54 = math.exp %53 : vector<8x10xf32>
    %cst_24 = arith.constant dense<0.000000e+00> : vector<8xf32>
    %55 = vector.multi_reduction <add>, %54, %cst_24 [1] : vector<8x10xf32> to vector<8xf32>
    %56 = vector.shape_cast %55 : vector<8xf32> to vector<8x1xf32>
    %57 = tpu.reciprocal %56 {approx = true} : vector<8x1xf32> -> vector<8x1xf32>
    %58 = vector.broadcast %57 : vector<8x1xf32> to vector<8x10xf32>
    %59 = arith.mulf %54, %58 : vector<8x10xf32>
    %60 = arith.truncf %59 : vector<8x10xf32> to vector<8x10xbf16>
    %61 = vector.extract_strided_slice %18 {offsets = [0, 8], sizes = [10, 8], strides = [1, 1]} : vector<10x32xbf16> to vector<10x8xbf16>
    %cst_25 = arith.constant dense<0.000000e+00> : vector<8x8xf32>
    %62 = tpu.matmul %60, %61, %cst_25 {dimension_numbers = #tpu.dot_dimension_numbers<[1], [0], [0], [1], [0, 0, 1, 1], [], []>} : vector<8x10xbf16>, vector<10x8xbf16>, vector<8x8xf32> -> vector<8x8xf32>
    %63 = vector.extract_strided_slice %16 {offsets = [0, 16], sizes = [8, 8], strides = [1, 1]} : vector<8x32xbf16> to vector<8x8xbf16>
    %64 = vector.extract_strided_slice %17 {offsets = [0, 16], sizes = [10, 8], strides = [1, 1]} : vector<10x32xbf16> to vector<10x8xbf16>
    %cst_26 = arith.constant dense<0.000000e+00> : vector<8x10xf32>
    %65 = tpu.matmul %63, %64, %cst_26 {dimension_numbers = #tpu.dot_dimension_numbers<[1], [1], [0], [0], [0, 0, 1, 0], [], []>} : vector<8x8xbf16>, vector<10x8xbf16>, vector<8x10xf32> -> vector<8x10xf32>
    %cst_27 = arith.constant -1.000000e+20 : f32
    %66 = vector.shape_cast %15 : vector<1x10xi1> to vector<1x10xi1>
    %67 = vector.broadcast %66 : vector<1x10xi1> to vector<8x10xi1>
    %68 = vector.broadcast %cst_27 : f32 to vector<8x10xf32>
    %69 = arith.select %67, %68, %65 : vector<8x10xi1>, vector<8x10xf32>
    %cst_28 = arith.constant 0.176776692 : f32
    %70 = vector.broadcast %cst_28 : f32 to vector<8x10xf32>
    %71 = arith.mulf %69, %70 : vector<8x10xf32>
    %cst_29 = arith.constant dense<0xFF800000> : vector<8xf32>
    %72 = vector.multi_reduction <maximumf>, %71, %cst_29 [1] : vector<8x10xf32> to vector<8xf32>
    %73 = vector.shape_cast %72 : vector<8xf32> to vector<8x1xf32>
    %74 = vector.broadcast %73 : vector<8x1xf32> to vector<8x10xf32>
    %75 = arith.subf %71, %74 : vector<8x10xf32>
    %76 = math.exp %75 : vector<8x10xf32>
    %cst_30 = arith.constant dense<0.000000e+00> : vector<8xf32>
    %77 = vector.multi_reduction <add>, %76, %cst_30 [1] : vector<8x10xf32> to vector<8xf32>
    %78 = vector.shape_cast %77 : vector<8xf32> to vector<8x1xf32>
    %79 = tpu.reciprocal %78 {approx = true} : vector<8x1xf32> -> vector<8x1xf32>
    %80 = vector.broadcast %79 : vector<8x1xf32> to vector<8x10xf32>
    %81 = arith.mulf %76, %80 : vector<8x10xf32>
    %82 = arith.truncf %81 : vector<8x10xf32> to vector<8x10xbf16>
    %83 = vector.extract_strided_slice %18 {offsets = [0, 16], sizes = [10, 8], strides = [1, 1]} : vector<10x32xbf16> to vector<10x8xbf16>
    %cst_31 = arith.constant dense<0.000000e+00> : vector<8x8xf32>
    %84 = tpu.matmul %82, %83, %cst_31 {dimension_numbers = #tpu.dot_dimension_numbers<[1], [0], [0], [1], [0, 0, 1, 1], [], []>} : vector<8x10xbf16>, vector<10x8xbf16>, vector<8x8xf32> -> vector<8x8xf32>
    %85 = vector.extract_strided_slice %16 {offsets = [0, 24], sizes = [8, 8], strides = [1, 1]} : vector<8x32xbf16> to vector<8x8xbf16>
    %86 = vector.extract_strided_slice %17 {offsets = [0, 24], sizes = [10, 8], strides = [1, 1]} : vector<10x32xbf16> to vector<10x8xbf16>
    %cst_32 = arith.constant dense<0.000000e+00> : vector<8x10xf32>
    %87 = tpu.matmul %85, %86, %cst_32 {dimension_numbers = #tpu.dot_dimension_numbers<[1], [1], [0], [0], [0, 0, 1, 0], [], []>} : vector<8x8xbf16>, vector<10x8xbf16>, vector<8x10xf32> -> vector<8x10xf32>
    %cst_33 = arith.constant -1.000000e+20 : f32
    %88 = vector.shape_cast %15 : vector<1x10xi1> to vector<1x10xi1>
    %89 = vector.broadcast %88 : vector<1x10xi1> to vector<8x10xi1>
    %90 = vector.broadcast %cst_33 : f32 to vector<8x10xf32>
    %91 = arith.select %89, %90, %87 : vector<8x10xi1>, vector<8x10xf32>
    %cst_34 = arith.constant 0.176776692 : f32
    %92 = vector.broadcast %cst_34 : f32 to vector<8x10xf32>
    %93 = arith.mulf %91, %92 : vector<8x10xf32>
    %cst_35 = arith.constant dense<0xFF800000> : vector<8xf32>
    %94 = vector.multi_reduction <maximumf>, %93, %cst_35 [1] : vector<8x10xf32> to vector<8xf32>
    %95 = vector.shape_cast %94 : vector<8xf32> to vector<8x1xf32>
    %96 = vector.broadcast %95 : vector<8x1xf32> to vector<8x10xf32>
    %97 = arith.subf %93, %96 : vector<8x10xf32>
    %98 = math.exp %97 : vector<8x10xf32>
    %cst_36 = arith.constant dense<0.000000e+00> : vector<8xf32>
    %99 = vector.multi_reduction <add>, %98, %cst_36 [1] : vector<8x10xf32> to vector<8xf32>
    %100 = vector.shape_cast %99 : vector<8xf32> to vector<8x1xf32>
    %101 = tpu.reciprocal %100 {approx = true} : vector<8x1xf32> -> vector<8x1xf32>
    %102 = vector.broadcast %101 : vector<8x1xf32> to vector<8x10xf32>
    %103 = arith.mulf %98, %102 : vector<8x10xf32>
    %104 = arith.truncf %103 : vector<8x10xf32> to vector<8x10xbf16>
    %105 = vector.extract_strided_slice %18 {offsets = [0, 24], sizes = [10, 8], strides = [1, 1]} : vector<10x32xbf16> to vector<10x8xbf16>
    %cst_37 = arith.constant dense<0.000000e+00> : vector<8x8xf32>
    %106 = tpu.matmul %104, %105, %cst_37 {dimension_numbers = #tpu.dot_dimension_numbers<[1], [0], [0], [1], [0, 0, 1, 1], [], []>} : vector<8x10xbf16>, vector<10x8xbf16>, vector<8x8xf32> -> vector<8x8xf32>
    %c0_38 = arith.constant 0 : index
    %c0_39 = arith.constant 0 : index
    %c0_40 = arith.constant 0 : index
    %c0_41 = arith.constant 0 : index
    %107 = vector.load %arg4[%c0_38, %c0_39, %c0_40, %c0_41] : memref<4x4x8x8xf32, #tpu.memory_space<vmem>>, vector<1x1x8x8xf32>
    %108 = vector.shape_cast %107 : vector<1x1x8x8xf32> to vector<8x8xf32>
    %cst_42 = arith.constant dense<0.000000e+00> : vector<8x8xf32>
    %109 = tpu.matmul %108, %40, %cst_42 {dimension_numbers = #tpu.dot_dimension_numbers<[1], [0], [0], [1], [0, 0, 1, 1], [], []>} : vector<8x8xf32>, vector<8x8xf32>, vector<8x8xf32> -> vector<8x8xf32>
    %c0_43 = arith.constant 0 : index
    %c1 = arith.constant 1 : index
    %c0_44 = arith.constant 0 : index
    %c0_45 = arith.constant 0 : index
    %110 = vector.load %arg4[%c0_43, %c1, %c0_44, %c0_45] : memref<4x4x8x8xf32, #tpu.memory_space<vmem>>, vector<1x1x8x8xf32>
    %111 = vector.shape_cast %110 : vector<1x1x8x8xf32> to vector<8x8xf32>
    %cst_46 = arith.constant dense<0.000000e+00> : vector<8x8xf32>
    %112 = tpu.matmul %111, %62, %cst_46 {dimension_numbers = #tpu.dot_dimension_numbers<[1], [0], [0], [1], [0, 0, 1, 1], [], []>} : vector<8x8xf32>, vector<8x8xf32>, vector<8x8xf32> -> vector<8x8xf32>
    %113 = arith.addf %109, %112 : vector<8x8xf32>
    %c0_47 = arith.constant 0 : index
    %c2 = arith.constant 2 : index
    %c0_48 = arith.constant 0 : index
    %c0_49 = arith.constant 0 : index
    %114 = vector.load %arg4[%c0_47, %c2, %c0_48, %c0_49] : memref<4x4x8x8xf32, #tpu.memory_space<vmem>>, vector<1x1x8x8xf32>
    %115 = vector.shape_cast %114 : vector<1x1x8x8xf32> to vector<8x8xf32>
    %cst_50 = arith.constant dense<0.000000e+00> : vector<8x8xf32>
    %116 = tpu.matmul %115, %84, %cst_50 {dimension_numbers = #tpu.dot_dimension_numbers<[1], [0], [0], [1], [0, 0, 1, 1], [], []>} : vector<8x8xf32>, vector<8x8xf32>, vector<8x8xf32> -> vector<8x8xf32>
    %117 = arith.addf %113, %116 : vector<8x8xf32>
    %c0_51 = arith.constant 0 : index
    %c3 = arith.constant 3 : index
    %c0_52 = arith.constant 0 : index
    %c0_53 = arith.constant 0 : index
    %118 = vector.load %arg4[%c0_51, %c3, %c0_52, %c0_53] : memref<4x4x8x8xf32, #tpu.memory_space<vmem>>, vector<1x1x8x8xf32>
    %119 = vector.shape_cast %118 : vector<1x1x8x8xf32> to vector<8x8xf32>
    %cst_54 = arith.constant dense<0.000000e+00> : vector<8x8xf32>
    %120 = tpu.matmul %119, %106, %cst_54 {dimension_numbers = #tpu.dot_dimension_numbers<[1], [0], [0], [1], [0, 0, 1, 1], [], []>} : vector<8x8xf32>, vector<8x8xf32>, vector<8x8xf32> -> vector<8x8xf32>
    %121 = arith.addf %117, %120 : vector<8x8xf32>
    %c1_55 = arith.constant 1 : index
    %c0_56 = arith.constant 0 : index
    %c0_57 = arith.constant 0 : index
    %c0_58 = arith.constant 0 : index
    %122 = vector.load %arg4[%c1_55, %c0_56, %c0_57, %c0_58] : memref<4x4x8x8xf32, #tpu.memory_space<vmem>>, vector<1x1x8x8xf32>
    %123 = vector.shape_cast %122 : vector<1x1x8x8xf32> to vector<8x8xf32>
    %cst_59 = arith.constant dense<0.000000e+00> : vector<8x8xf32>
    %124 = tpu.matmul %123, %40, %cst_59 {dimension_numbers = #tpu.dot_dimension_numbers<[1], [0], [0], [1], [0, 0, 1, 1], [], []>} : vector<8x8xf32>, vector<8x8xf32>, vector<8x8xf32> -> vector<8x8xf32>
    %c1_60 = arith.constant 1 : index
    %c1_61 = arith.constant 1 : index
    %c0_62 = arith.constant 0 : index
    %c0_63 = arith.constant 0 : index
    %125 = vector.load %arg4[%c1_60, %c1_61, %c0_62, %c0_63] : memref<4x4x8x8xf32, #tpu.memory_space<vmem>>, vector<1x1x8x8xf32>
    %126 = vector.shape_cast %125 : vector<1x1x8x8xf32> to vector<8x8xf32>
    %cst_64 = arith.constant dense<0.000000e+00> : vector<8x8xf32>
    %127 = tpu.matmul %126, %62, %cst_64 {dimension_numbers = #tpu.dot_dimension_numbers<[1], [0], [0], [1], [0, 0, 1, 1], [], []>} : vector<8x8xf32>, vector<8x8xf32>, vector<8x8xf32> -> vector<8x8xf32>
    %128 = arith.addf %124, %127 : vector<8x8xf32>
    %c1_65 = arith.constant 1 : index
    %c2_66 = arith.constant 2 : index
    %c0_67 = arith.constant 0 : index
    %c0_68 = arith.constant 0 : index
    %129 = vector.load %arg4[%c1_65, %c2_66, %c0_67, %c0_68] : memref<4x4x8x8xf32, #tpu.memory_space<vmem>>, vector<1x1x8x8xf32>
    %130 = vector.shape_cast %129 : vector<1x1x8x8xf32> to vector<8x8xf32>
    %cst_69 = arith.constant dense<0.000000e+00> : vector<8x8xf32>
    %131 = tpu.matmul %130, %84, %cst_69 {dimension_numbers = #tpu.dot_dimension_numbers<[1], [0], [0], [1], [0, 0, 1, 1], [], []>} : vector<8x8xf32>, vector<8x8xf32>, vector<8x8xf32> -> vector<8x8xf32>
    %132 = arith.addf %128, %131 : vector<8x8xf32>
    %c1_70 = arith.constant 1 : index
    %c3_71 = arith.constant 3 : index
    %c0_72 = arith.constant 0 : index
    %c0_73 = arith.constant 0 : index
    %133 = vector.load %arg4[%c1_70, %c3_71, %c0_72, %c0_73] : memref<4x4x8x8xf32, #tpu.memory_space<vmem>>, vector<1x1x8x8xf32>
    %134 = vector.shape_cast %133 : vector<1x1x8x8xf32> to vector<8x8xf32>
    %cst_74 = arith.constant dense<0.000000e+00> : vector<8x8xf32>
    %135 = tpu.matmul %134, %106, %cst_74 {dimension_numbers = #tpu.dot_dimension_numbers<[1], [0], [0], [1], [0, 0, 1, 1], [], []>} : vector<8x8xf32>, vector<8x8xf32>, vector<8x8xf32> -> vector<8x8xf32>
    %136 = arith.addf %132, %135 : vector<8x8xf32>
    %c2_75 = arith.constant 2 : index
    %c0_76 = arith.constant 0 : index
    %c0_77 = arith.constant 0 : index
    %c0_78 = arith.constant 0 : index
    %137 = vector.load %arg4[%c2_75, %c0_76, %c0_77, %c0_78] : memref<4x4x8x8xf32, #tpu.memory_space<vmem>>, vector<1x1x8x8xf32>
    %138 = vector.shape_cast %137 : vector<1x1x8x8xf32> to vector<8x8xf32>
    %cst_79 = arith.constant dense<0.000000e+00> : vector<8x8xf32>
    %139 = tpu.matmul %138, %40, %cst_79 {dimension_numbers = #tpu.dot_dimension_numbers<[1], [0], [0], [1], [0, 0, 1, 1], [], []>} : vector<8x8xf32>, vector<8x8xf32>, vector<8x8xf32> -> vector<8x8xf32>
    %c2_80 = arith.constant 2 : index
    %c1_81 = arith.constant 1 : index
    %c0_82 = arith.constant 0 : index
    %c0_83 = arith.constant 0 : index
    %140 = vector.load %arg4[%c2_80, %c1_81, %c0_82, %c0_83] : memref<4x4x8x8xf32, #tpu.memory_space<vmem>>, vector<1x1x8x8xf32>
    %141 = vector.shape_cast %140 : vector<1x1x8x8xf32> to vector<8x8xf32>
    %cst_84 = arith.constant dense<0.000000e+00> : vector<8x8xf32>
    %142 = tpu.matmul %141, %62, %cst_84 {dimension_numbers = #tpu.dot_dimension_numbers<[1], [0], [0], [1], [0, 0, 1, 1], [], []>} : vector<8x8xf32>, vector<8x8xf32>, vector<8x8xf32> -> vector<8x8xf32>
    %143 = arith.addf %139, %142 : vector<8x8xf32>
    %c2_85 = arith.constant 2 : index
    %c2_86 = arith.constant 2 : index
    %c0_87 = arith.constant 0 : index
    %c0_88 = arith.constant 0 : index
    %144 = vector.load %arg4[%c2_85, %c2_86, %c0_87, %c0_88] : memref<4x4x8x8xf32, #tpu.memory_space<vmem>>, vector<1x1x8x8xf32>
    %145 = vector.shape_cast %144 : vector<1x1x8x8xf32> to vector<8x8xf32>
    %cst_89 = arith.constant dense<0.000000e+00> : vector<8x8xf32>
    %146 = tpu.matmul %145, %84, %cst_89 {dimension_numbers = #tpu.dot_dimension_numbers<[1], [0], [0], [1], [0, 0, 1, 1], [], []>} : vector<8x8xf32>, vector<8x8xf32>, vector<8x8xf32> -> vector<8x8xf32>
    %147 = arith.addf %143, %146 : vector<8x8xf32>
    %c2_90 = arith.constant 2 : index
    %c3_91 = arith.constant 3 : index
    %c0_92 = arith.constant 0 : index
    %c0_93 = arith.constant 0 : index
    %148 = vector.load %arg4[%c2_90, %c3_91, %c0_92, %c0_93] : memref<4x4x8x8xf32, #tpu.memory_space<vmem>>, vector<1x1x8x8xf32>
    %149 = vector.shape_cast %148 : vector<1x1x8x8xf32> to vector<8x8xf32>
    %cst_94 = arith.constant dense<0.000000e+00> : vector<8x8xf32>
    %150 = tpu.matmul %149, %106, %cst_94 {dimension_numbers = #tpu.dot_dimension_numbers<[1], [0], [0], [1], [0, 0, 1, 1], [], []>} : vector<8x8xf32>, vector<8x8xf32>, vector<8x8xf32> -> vector<8x8xf32>
    %151 = arith.addf %147, %150 : vector<8x8xf32>
    %c3_95 = arith.constant 3 : index
    %c0_96 = arith.constant 0 : index
    %c0_97 = arith.constant 0 : index
    %c0_98 = arith.constant 0 : index
    %152 = vector.load %arg4[%c3_95, %c0_96, %c0_97, %c0_98] : memref<4x4x8x8xf32, #tpu.memory_space<vmem>>, vector<1x1x8x8xf32>
    %153 = vector.shape_cast %152 : vector<1x1x8x8xf32> to vector<8x8xf32>
    %cst_99 = arith.constant dense<0.000000e+00> : vector<8x8xf32>
    %154 = tpu.matmul %153, %40, %cst_99 {dimension_numbers = #tpu.dot_dimension_numbers<[1], [0], [0], [1], [0, 0, 1, 1], [], []>} : vector<8x8xf32>, vector<8x8xf32>, vector<8x8xf32> -> vector<8x8xf32>
    %c3_100 = arith.constant 3 : index
    %c1_101 = arith.constant 1 : index
    %c0_102 = arith.constant 0 : index
    %c0_103 = arith.constant 0 : index
    %155 = vector.load %arg4[%c3_100, %c1_101, %c0_102, %c0_103] : memref<4x4x8x8xf32, #tpu.memory_space<vmem>>, vector<1x1x8x8xf32>
    %156 = vector.shape_cast %155 : vector<1x1x8x8xf32> to vector<8x8xf32>
    %cst_104 = arith.constant dense<0.000000e+00> : vector<8x8xf32>
    %157 = tpu.matmul %156, %62, %cst_104 {dimension_numbers = #tpu.dot_dimension_numbers<[1], [0], [0], [1], [0, 0, 1, 1], [], []>} : vector<8x8xf32>, vector<8x8xf32>, vector<8x8xf32> -> vector<8x8xf32>
    %158 = arith.addf %154, %157 : vector<8x8xf32>
    %c3_105 = arith.constant 3 : index
    %c2_106 = arith.constant 2 : index
    %c0_107 = arith.constant 0 : index
    %c0_108 = arith.constant 0 : index
    %159 = vector.load %arg4[%c3_105, %c2_106, %c0_107, %c0_108] : memref<4x4x8x8xf32, #tpu.memory_space<vmem>>, vector<1x1x8x8xf32>
    %160 = vector.shape_cast %159 : vector<1x1x8x8xf32> to vector<8x8xf32>
    %cst_109 = arith.constant dense<0.000000e+00> : vector<8x8xf32>
    %161 = tpu.matmul %160, %84, %cst_109 {dimension_numbers = #tpu.dot_dimension_numbers<[1], [0], [0], [1], [0, 0, 1, 1], [], []>} : vector<8x8xf32>, vector<8x8xf32>, vector<8x8xf32> -> vector<8x8xf32>
    %162 = arith.addf %158, %161 : vector<8x8xf32>
    %c3_110 = arith.constant 3 : index
    %c3_111 = arith.constant 3 : index
    %c0_112 = arith.constant 0 : index
    %c0_113 = arith.constant 0 : index
    %163 = vector.load %arg4[%c3_110, %c3_111, %c0_112, %c0_113] : memref<4x4x8x8xf32, #tpu.memory_space<vmem>>, vector<1x1x8x8xf32>
    %164 = vector.shape_cast %163 : vector<1x1x8x8xf32> to vector<8x8xf32>
    %cst_114 = arith.constant dense<0.000000e+00> : vector<8x8xf32>
    %165 = tpu.matmul %164, %106, %cst_114 {dimension_numbers = #tpu.dot_dimension_numbers<[1], [0], [0], [1], [0, 0, 1, 1], [], []>} : vector<8x8xf32>, vector<8x8xf32>, vector<8x8xf32> -> vector<8x8xf32>
    %166 = arith.addf %162, %165 : vector<8x8xf32>
    %167 = tpu.concatenate %121, %136, %151, %166 in 1 : vector<8x8xf32>, vector<8x8xf32>, vector<8x8xf32>, vector<8x8xf32> -> vector<8x32xf32>
    %c0_115 = arith.constant 0 : index
    %c0_116 = arith.constant 0 : index
    %168 = vector.load %arg7[%c0_115, %c0_116] : memref<32x32xbf16, #tpu.memory_space<vmem>>, vector<32x32xbf16>
    %c0_117 = arith.constant 0 : index
    %c0_118 = arith.constant 0 : index
    %169 = vector.load %arg8[%c0_117, %c0_118] : memref<1x32xf32, #tpu.memory_space<vmem>>, vector<1x32xf32>
    %c0_119 = arith.constant 0 : index
    %c0_120 = arith.constant 0 : index
    %170 = vector.load %arg9[%c0_119, %c0_120] : memref<1x32xf32, #tpu.memory_space<vmem>>, vector<1x32xf32>
    %c0_121 = arith.constant 0 : index
    %c0_122 = arith.constant 0 : index
    %171 = vector.load %arg10[%c0_121, %c0_122] : memref<1x32xf32, #tpu.memory_space<vmem>>, vector<1x32xf32>
    %172 = arith.truncf %167 : vector<8x32xf32> to vector<8x32xbf16>
    %cst_123 = arith.constant dense<0.000000e+00> : vector<8x32xf32>
    %173 = tpu.matmul %172, %168, %cst_123 {dimension_numbers = #tpu.dot_dimension_numbers<[1], [0], [0], [1], [0, 0, 1, 1], [], []>} : vector<8x32xbf16>, vector<32x32xbf16>, vector<8x32xf32> -> vector<8x32xf32>
    %174 = vector.broadcast %169 : vector<1x32xf32> to vector<8x32xf32>
    %175 = arith.addf %173, %174 : vector<8x32xf32>
    %176 = arith.addf %175, %1 : vector<8x32xf32>
    %cst_124 = arith.constant dense<0.000000e+00> : vector<8xf32>
    %177 = vector.multi_reduction <add>, %176, %cst_124 [1] : vector<8x32xf32> to vector<8xf32>
    %178 = vector.shape_cast %177 : vector<8xf32> to vector<8x1xf32>
    %cst_125 = arith.constant 3.200000e+01 : f32
    %179 = vector.broadcast %cst_125 : f32 to vector<8x1xf32>
    %180 = arith.divf %178, %179 : vector<8x1xf32>
    %181 = vector.broadcast %180 : vector<8x1xf32> to vector<8x32xf32>
    %182 = arith.subf %176, %181 : vector<8x32xf32>
    %183 = arith.mulf %182, %182 : vector<8x32xf32>
    %cst_126 = arith.constant dense<0.000000e+00> : vector<8xf32>
    %184 = vector.multi_reduction <add>, %183, %cst_126 [1] : vector<8x32xf32> to vector<8xf32>
    %185 = vector.shape_cast %184 : vector<8xf32> to vector<8x1xf32>
    %cst_127 = arith.constant 3.200000e+01 : f32
    %186 = vector.broadcast %cst_127 : f32 to vector<8x1xf32>
    %187 = arith.divf %185, %186 : vector<8x1xf32>
    %188 = vector.broadcast %180 : vector<8x1xf32> to vector<8x32xf32>
    %189 = arith.subf %176, %188 : vector<8x32xf32>
    %cst_128 = arith.constant 9.99999974E-6 : f32
    %190 = vector.broadcast %cst_128 : f32 to vector<8x1xf32>
    %191 = arith.addf %187, %190 : vector<8x1xf32>
    %192 = math.rsqrt %191 : vector<8x1xf32>
    %193 = vector.broadcast %192 : vector<8x1xf32> to vector<8x32xf32>
    %194 = arith.mulf %189, %193 : vector<8x32xf32>
    %195 = vector.broadcast %170 : vector<1x32xf32> to vector<8x32xf32>
    %196 = arith.mulf %194, %195 : vector<8x32xf32>
    %197 = vector.broadcast %171 : vector<1x32xf32> to vector<8x32xf32>
    %198 = arith.addf %196, %197 : vector<8x32xf32>
    %c0_129 = arith.constant 0 : index
    %c0_130 = arith.constant 0 : index
    %199 = vector.load %arg11[%c0_129, %c0_130] : memref<32x64xbf16, #tpu.memory_space<vmem>>, vector<32x64xbf16>
    %c0_131 = arith.constant 0 : index
    %c0_132 = arith.constant 0 : index
    %200 = vector.load %arg12[%c0_131, %c0_132] : memref<1x64xf32, #tpu.memory_space<vmem>>, vector<1x64xf32>
    %c0_133 = arith.constant 0 : index
    %c0_134 = arith.constant 0 : index
    %201 = vector.load %arg13[%c0_133, %c0_134] : memref<64x32xbf16, #tpu.memory_space<vmem>>, vector<64x32xbf16>
    %c0_135 = arith.constant 0 : index
    %c0_136 = arith.constant 0 : index
    %202 = vector.load %arg14[%c0_135, %c0_136] : memref<1x32xf32, #tpu.memory_space<vmem>>, vector<1x32xf32>
    %c0_137 = arith.constant 0 : index
    %c0_138 = arith.constant 0 : index
    %203 = vector.load %arg15[%c0_137, %c0_138] : memref<1x32xf32, #tpu.memory_space<vmem>>, vector<1x32xf32>
    %c0_139 = arith.constant 0 : index
    %c0_140 = arith.constant 0 : index
    %204 = vector.load %arg16[%c0_139, %c0_140] : memref<1x32xf32, #tpu.memory_space<vmem>>, vector<1x32xf32>
    %205 = arith.truncf %198 : vector<8x32xf32> to vector<8x32xbf16>
    %cst_141 = arith.constant dense<0.000000e+00> : vector<8x64xf32>
    %206 = tpu.matmul %205, %199, %cst_141 {dimension_numbers = #tpu.dot_dimension_numbers<[1], [0], [0], [1], [0, 0, 1, 1], [], []>} : vector<8x32xbf16>, vector<32x64xbf16>, vector<8x64xf32> -> vector<8x64xf32>
    %207 = vector.broadcast %200 : vector<1x64xf32> to vector<8x64xf32>
    %208 = arith.addf %206, %207 : vector<8x64xf32>
    %cst_142 = arith.constant 0.000000e+00 : f32
    %209 = vector.broadcast %cst_142 : f32 to vector<8x64xf32>
    %210 = arith.maximumf %208, %209 : vector<8x64xf32>
    %211 = arith.truncf %210 : vector<8x64xf32> to vector<8x64xbf16>
    %cst_143 = arith.constant dense<0.000000e+00> : vector<8x32xf32>
    %212 = tpu.matmul %211, %201, %cst_143 {dimension_numbers = #tpu.dot_dimension_numbers<[1], [0], [0], [1], [0, 0, 1, 1], [], []>} : vector<8x64xbf16>, vector<64x32xbf16>, vector<8x32xf32> -> vector<8x32xf32>
    %213 = vector.broadcast %202 : vector<1x32xf32> to vector<8x32xf32>
    %214 = arith.addf %212, %213 : vector<8x32xf32>
    %215 = arith.addf %214, %198 : vector<8x32xf32>
    %cst_144 = arith.constant dense<0.000000e+00> : vector<8xf32>
    %216 = vector.multi_reduction <add>, %215, %cst_144 [1] : vector<8x32xf32> to vector<8xf32>
    %217 = vector.shape_cast %216 : vector<8xf32> to vector<8x1xf32>
    %cst_145 = arith.constant 3.200000e+01 : f32
    %218 = vector.broadcast %cst_145 : f32 to vector<8x1xf32>
    %219 = arith.divf %217, %218 : vector<8x1xf32>
    %220 = vector.broadcast %219 : vector<8x1xf32> to vector<8x32xf32>
    %221 = arith.subf %215, %220 : vector<8x32xf32>
    %222 = arith.mulf %221, %221 : vector<8x32xf32>
    %cst_146 = arith.constant dense<0.000000e+00> : vector<8xf32>
    %223 = vector.multi_reduction <add>, %222, %cst_146 [1] : vector<8x32xf32> to vector<8xf32>
    %224 = vector.shape_cast %223 : vector<8xf32> to vector<8x1xf32>
    %cst_147 = arith.constant 3.200000e+01 : f32
    %225 = vector.broadcast %cst_147 : f32 to vector<8x1xf32>
    %226 = arith.divf %224, %225 : vector<8x1xf32>
    %227 = vector.broadcast %219 : vector<8x1xf32> to vector<8x32xf32>
    %228 = arith.subf %215, %227 : vector<8x32xf32>
    %cst_148 = arith.constant 9.99999974E-6 : f32
    %229 = vector.broadcast %cst_148 : f32 to vector<8x1xf32>
    %230 = arith.addf %226, %229 : vector<8x1xf32>
    %231 = math.rsqrt %230 : vector<8x1xf32>
    %232 = vector.broadcast %231 : vector<8x1xf32> to vector<8x32xf32>
    %233 = arith.mulf %228, %232 : vector<8x32xf32>
    %234 = vector.broadcast %203 : vector<1x32xf32> to vector<8x32xf32>
    %235 = arith.mulf %233, %234 : vector<8x32xf32>
    %236 = vector.broadcast %204 : vector<1x32xf32> to vector<8x32xf32>
    %237 = arith.addf %235, %236 : vector<8x32xf32>
    %c0_149 = arith.constant 0 : index
    %c0_150 = arith.constant 0 : index
    %c0_151 = arith.constant 0 : index
    %238 = vector.load %arg17[%c0_149, %c0_150, %c0_151] : memref<1x8x32xf32, #tpu.memory_space<vmem>>, vector<1x8x32xf32>
    %239 = vector.shape_cast %238 : vector<1x8x32xf32> to vector<8x32xf32>
    %240 = vector.shape_cast %237 : vector<8x32xf32> to vector<1x8x32xf32>
    tpu.vector_store %arg17[%c0_149, %c0_150, %c0_151], %240 {strides = array<i32>} : memref<1x8x32xf32, #tpu.memory_space<vmem>>, vector<1x8x32xf32>,
    return
  }
  func.func @transform_0(%arg0: i32) -> (i32, i32, i32) {
    %c0_i32 = arith.constant 0 : i32
    %c0_i32_0 = arith.constant 0 : i32
    %c0_i32_1 = arith.constant 0 : i32
    return %arg0, %c0_i32, %c0_i32_0 : i32, i32, i32
  }
  func.func @transform_1(%arg0: i32) -> (i32, i32, i32) {
    %c0_i32 = arith.constant 0 : i32
    %c0_i32_0 = arith.constant 0 : i32
    %c0_i32_1 = arith.constant 0 : i32
    return %arg0, %c0_i32, %c0_i32_0 : i32, i32, i32
  }
  func.func @transform_2(%arg0: i32) -> (i32, i32, i32) {
    %c0_i32 = arith.constant 0 : i32
    %c0_i32_0 = arith.constant 0 : i32
    %c0_i32_1 = arith.constant 0 : i32
    return %arg0, %c0_i32, %c0_i32_0 : i32, i32, i32
  }
  func.func @transform_3(%arg0: i32) -> (i32, i32, i32, i32) {
    %c0_i32 = arith.constant 0 : i32
    %c0_i32_0 = arith.constant 0 : i32
    %c0_i32_1 = arith.constant 0 : i32
    %c0_i32_2 = arith.constant 0 : i32
    %c0_i32_3 = arith.constant 0 : i32
    return %c0_i32, %c0_i32_0, %c0_i32_1, %c0_i32_2 : i32, i32, i32, i32
  }
  func.func @transform_4(%arg0: i32) -> (i32, i32) {
    %c0_i32 = arith.constant 0 : i32
    %c0_i32_0 = arith.constant 0 : i32
    %c0_i32_1 = arith.constant 0 : i32
    return %c0_i32, %c0_i32_0 : i32, i32
  }
  func.func @transform_5(%arg0: i32) -> (i32, i32) {
    %c0_i32 = arith.constant 0 : i32
    %c0_i32_0 = arith.constant 0 : i32
    %c0_i32_1 = arith.constant 0 : i32
    return %c0_i32, %c0_i32_0 : i32, i32
  }
  func.func @transform_6(%arg0: i32) -> (i32, i32) {
    %c0_i32 = arith.constant 0 : i32
    %c0_i32_0 = arith.constant 0 : i32
    %c0_i32_1 = arith.constant 0 : i32
    return %c0_i32, %c0_i32_0 : i32, i32
  }
  func.func @transform_7(%arg0: i32) -> (i32, i32) {
    %c0_i32 = arith.constant 0 : i32
    %c0_i32_0 = arith.constant 0 : i32
    %c0_i32_1 = arith.constant 0 : i32
    return %c0_i32, %c0_i32_0 : i32, i32
  }
  func.func @transform_8(%arg0: i32) -> (i32, i32) {
    %c0_i32 = arith.constant 0 : i32
    %c0_i32_0 = arith.constant 0 : i32
    %c0_i32_1 = arith.constant 0 : i32
    return %c0_i32, %c0_i32_0 : i32, i32
  }
  func.func @transform_9(%arg0: i32) -> (i32, i32) {
    %c0_i32 = arith.constant 0 : i32
    %c0_i32_0 = arith.constant 0 : i32
    %c0_i32_1 = arith.constant 0 : i32
    return %c0_i32, %c0_i32_0 : i32, i32
  }
  func.func @transform_10(%arg0: i32) -> (i32, i32) {
    %c0_i32 = arith.constant 0 : i32
    %c0_i32_0 = arith.constant 0 : i32
    %c0_i32_1 = arith.constant 0 : i32
    return %c0_i32, %c0_i32_0 : i32, i32
  }
  func.func @transform_11(%arg0: i32) -> (i32, i32) {
    %c0_i32 = arith.constant 0 : i32
    %c0_i32_0 = arith.constant 0 : i32
    %c0_i32_1 = arith.constant 0 : i32
    return %c0_i32, %c0_i32_0 : i32, i32
  }
  func.func @transform_12(%arg0: i32) -> (i32, i32) {
    %c0_i32 = arith.constant 0 : i32
    %c0_i32_0 = arith.constant 0 : i32
    %c0_i32_1 = arith.constant 0 : i32
    return %c0_i32, %c0_i32_0 : i32, i32
  }
  func.func @transform_13(%arg0: i32) -> (i32, i32) {
    %c0_i32 = arith.constant 0 : i32
    %c0_i32_0 = arith.constant 0 : i32
    %c0_i32_1 = arith.constant 0 : i32
    return %c0_i32, %c0_i32_0 : i32, i32
  }
  func.func @transform_14(%arg0: i32) -> (i32, i32) {
    %c0_i32 = arith.constant 0 : i32
    %c0_i32_0 = arith.constant 0 : i32
    %c0_i32_1 = arith.constant 0 : i32
    return %c0_i32, %c0_i32_0 : i32, i32
  }
  func.func @transform_15(%arg0: i32) -> (i32, i32) {
    %c0_i32 = arith.constant 0 : i32
    %c0_i32_0 = arith.constant 0 : i32
    %c0_i32_1 = arith.constant 0 : i32
    return %c0_i32, %c0_i32_0 : i32, i32
  }
  func.func @transform_16(%arg0: i32) -> (i32, i32, i32) {
    %c0_i32 = arith.constant 0 : i32
    %c0_i32_0 = arith.constant 0 : i32
    %c0_i32_1 = arith.constant 0 : i32
    return %arg0, %c0_i32, %c0_i32_0 : i32, i32, i32
  }
}

</mosaic_0001>

<bundles_post_ra>
// kernel: transformer_fwd.13
= control target key start
LH: loop header
LB: loop body
LE: loop exit
PB: predicated region body
PF: predicated region fallthrough
CT: control target
= control target key end

     0   :  { %8 = vsyncpa [#allocation3], 0  ;;  %s575_s0 = inlined_call_operand.vmem [shape: f32[2,8,32], index: 0, kind: input, shape index: {}]   ;;  %s576_s1 = inlined_call_operand.vmem [shape: bf16[32,50], index: 1, kind: input, shape index: {}]   ;;  %s577_s2 = inlined_call_operand.vmem [shape: f32[1,50], index: 2, kind: input, shape index: {}]   ;;  %s578_s3 = inlined_call_operand.hbm [shape: f32[2,8,50], index: 3, kind: output, shape index: {}]  }
   0x1   :  { %10 = vsyncpa [#allocation3 + $0x1], 0  ;;  %s466_s12 = smov 0   ;;  %s468_s13 = smov 0  }
   0x2   :  { %s470_s14 = smov 0   ;;  %s472_s15 = smov 0  }
   0x3 LB: > { %s487_s16 = sadd.s32 4294967295, %s441_s15   ;;  %s311_s17 = sadd.s32 4294967294, %s441_s15   ;;  %s441_s15 = sphi %s472_s15, %s584_s15   ;;  %s437_s14 = sphi %s470_s14, %s583_s14   ;;  %s433_s13 = sphi %s468_s13, %s582_s13   ;;  %s429_s12 = sphi %s466_s12, %s581_s12  }
   0x4   : > { %s491_s18 = sadd.s32 1, %s441_s15   ;;  %s91_s19 = sadd.s32 1, %s437_s14 }
   0x5   : > { %s88_s20 = ssub.s32 %s441_s15, %s491_s18  ;;  %p101_p0 = scmp.ne.s32.totalorder %s437_s14, %s433_s13 }
   0x6   : > { %p89_p1 = scmp.eq.s32.totalorder %s88_s20, 0  ;;  %p102_p2 = scmp.eq.s32.totalorder %s487_s16, 1 }
   0x7   : > { %p107_p3 = scmp.ne.s32.totalorder %s433_s13, %s429_s12  ;;  %p108_p4 = scmp.eq.s32.totalorder %s311_s17, 1 }
   0x8   : > { %s502_s21 = scalar_select %p89_p1, %s437_s14, %s91_s19  }
   0x9   : > { %p504_p5 = por %p102_p2, %p101_p0  ;;  %p508_p6 = por %p108_p4, %p107_p3 }
   0xa   : > { %p314_p7 = scmp.ge.s32.totalorder %s441_s15, 1  ;;  %p139_p8 = scmp.lt.s32.totalorder %s441_s15, 3 }
   0xc   : > { %p140_p9 = pnand %p314_p7, %p139_p8 }
   0xd   : > { %v377_v0 = vld [vmem:[%s576_s1] sm:$0xff] (!%p140_p9)   ;;  %v443_v1 = vmov (!%p140_p9), 0.0   ;;  %v378_v2 = vld [vmem:[%s576_s1 + $0x8] sm:$0xff] (!%p140_p9)   ;;  %vm444_vm0 = vmmov (!%p140_p9), 0   ;;  %p162_p10 = scmp.lt.s32.totalorder (!%p140_p9), %s487_s16, 1  ;;  %vm192_vm1 = vcmask (!%p140_p9), 261120  }
   0xe   : > { %143 = sbr.rel (%p140_p9) target bundleno = 256 (0x100), region = 32  ;;  %328 = vmatprep.subr.bf16.mxu0 (!%p140_p9), %v443_v1  ;;  %332 = vmatprep.mubr.msk.bf16.mxu0 (!%p140_p9), %vm444_vm0, %v443_v1  ;;  %s159_s6 = sand.u32 (!%p140_p9), 1, %s433_s13   ;;  %v317_v5 = vld [vmem:[%s577_s2] ss:$0 sm:$0xff] (!%p140_p9)  ;;  %vm236_vm2 = vcmask (!%p140_p9), 408576  }
   0xf   : > { %329 = vmatpush3.bf16.msra.mxu0 (!%p140_p9), %v377_v0  ;;  %s315_s7 = sshll.u32 (!%p140_p9), %s159_s6, 3  ;;  %s322_s10 = sshll.u32 (!%p140_p9), %s487_s16, 7 }
  0x10   : > { %330 = vmatprep.subr.bf16.mxu0 (!%p140_p9), %v443_v1  ;;  %s161_s11 = scalar_lea.vmem (!%p140_p9), [#allocation2], %s315_s7  ;;  %s533_s24 = scalar_lea.hbm (!%p140_p9), %s578_s3, %s322_s10 }
  0x11   : > { %s252_s17 = sshll.u32 (!%p140_p9), %s161_s11, 4  ;;  %s445_s26 = smov (!%p140_p9), [#allocation2]   ;;  %s535_s17 = int_to_ptr.vmem [resolvable:$true] %s252_s17 }
  0x12   : > { %s379_s25 = scalar_lea.vmem (!%p140_p9), %s535_s17, 128  ;;  %s383_s27 = sshll.u32 (!%p140_p9), %s445_s26, 4  ;;  %s384_s27 = int_to_ptr.vmem [resolvable:$false] %s383_s27 }
  0x13   : > { %331 = vmatpush3.bf16.msra.mxu0 (!%p140_p9), %v378_v2  ;;  %p380_p11 = scmp.ne.s32.totalorder (!%p140_p9), %s535_s17, %s379_s25  ;;  %p386_p0 = scmp.lt.s32.totalorder (!%p140_p9), %s535_s17, %s384_s27 }
  0x15   : > { %s163_s28 = scalar_select %p162_p10, %s487_s16, 1 }
  0x16   : > { %s239_s16 = scalar_lea.sflag [#allocation3], %s159_s6  ;;  %p381_p12 = pnand %p380_p11, %p504_p5 }
  0x17   : > { %s316_s29 = sshll.u32 %s163_s28, 3  ;;  %s385_s28 = scalar_lea.vmem %s384_s27, 256 }
  0x18   : > { %s165_s5 = scalar_lea.vmem %s575_s0, %s316_s29  ;;  %p382_p13 = pneg %p381_p12 }
  0x19   : > { %v167_v3 = vld [vmem:[%s165_s5] sm:$0xff]  ;;  %p387_p1 = scmp.lt.s32.totalorder %s385_s28, %s379_s25 }
  0x1a   : > { %v168_v4 = vpack.c.bf16 %v167_v3, %v167_v3 }
  0x1b   : > { %p388_p2 = por %p387_p1, %p386_p0 }
  0x1c   : > { %333 = vmatmul.mubr.msk.bf16.vlgmr.msra.gmra.mrb[0].mxu0 %vm192_vm1, %v168_v4 }
  0x1d   : > { %p389_p3 = pnand %p388_p2, %p382_p13 }
  0xef   : > { %v230_v6 = vpop.f32.mrb[0].mxu0 }
  0xf0   : > { %v231_v7 = vadd.f32 %v317_v5, %v230_v6  ;;  %v334_v8 = vpop.f32.mrb[1].mxu0 }
  0xf1   : > { %v233_v9 = vpop.f32.mrb[2].mxu0 }
  0xf2   : > { %v335_v10 = vpop.f32.mrb[3].mxu0  ;;  %237 = vst.msk [vmem:[%s161_s11] sm:$0xff] %vm236_vm2, %v231_v7 }
  0xf3   : > { %392 = shalt.err (!%p389_p3)
}
  0xf4   : > { %s393_s29 = scalar_lea.hbm %s533_s24, 128  ;;  %s397_s5 = scalar_lea.hbm %s578_s3, 256 }
  0xf5   : > { %p394_p4 = scmp.ne.s32.totalorder %s533_s24, %s393_s29  ;;  %p398_p9 = scmp.lt.u32.totalorder %s533_s24, %s578_s3 }
  0xf6   : > { %p399_p10 = scmp.lt.u32.totalorder %s397_s5, %s393_s29  ;;  %p401_p12 = scmp.lt.u32.totalorder %s393_s29, %s533_s24 }
  0xf7   : > { %p395_p7 = pnand %p394_p4, %p504_p5 }
  0xf8   : > { %p400_p11 = por %p399_p10, %p398_p9 }
  0xf9   : > { %p396_p8 = pneg %p395_p7 }
  0xfa   : > { %p402_p13 = por %p401_p12, %p400_p11 }
  0xfc   : > { %p403_p0 = pnand %p402_p13, %p396_p8 }
  0xfe   : > { %406 = shalt.err (!%p403_p0)
}
  0xff   : > { %336 = dma.vmem_to_hbm [thread:$0]  (%p504_p5), %s535_s17, 128, %s533_s24, %s239_s16  }
 0x100 PF: > { %p342_p1 = scmp.ge.s32.totalorder %s441_s15, 2  ;;  %s264_s8 = sand.u32 1, %s429_s12  }
 0x101   : > { %s265_s9 = scalar_lea.sflag [#allocation3], %s264_s8 }
 0x102   : > { %p339_p2 = pnand %p342_p1, %p508_p6 }
 0x104   : > { %424 = dma.done.wait (!%p339_p2), %s265_s9, 128  }
 0x105   : > { %426 = vsyncadd (!%p339_p2), %s265_s9, 4294967168  ;;  %p13_p3 = scmp.ge.s32.totalorder %s491_s18, 4   ;;  %s581_s12 = smov %s433_s13 }
 0x106   : > { %s582_s13 = smov %s437_s14  ;;  %s583_s14 = smov %s502_s21 }
 0x107   : > { %s584_s15 = smov %s491_s18  ;;  %15 = sbr.rel (!%p13_p3) target bundleno = 3 (0x3), region = 67 }
 0x10e   :  { %270 = vsyncpa [#allocation3], 1 }
 0x10f   :  { %272 = vsyncpa [#allocation3 + $0x1], 1 }

// kernel: transformer_fwd.9
= control target key start
LH: loop header
LB: loop body
LE: loop exit
PB: predicated region body
PF: predicated region fallthrough
CT: control target
= control target key end

     0   :  { %s2557_s24 = smov 0   ;;  %s2805_s0 = inlined_call_operand.vmem [shape: f32[2,8,32], index: 0, kind: input, shape index: {}]   ;;  %s2806_s1 = inlined_call_operand.vmem [shape: f32[4,4,8,8], index: 1, kind: input, shape index: {}]   ;;  %s2807_s2 = inlined_call_operand.vmem [shape: bf16[32,96], index: 2, kind: input, shape index: {}]   ;;  %s2808_s3 = inlined_call_operand.vmem [shape: bf16[32,32], index: 3, kind: input, shape index: {}]   ;;  %s2809_s4 = inlined_call_operand.vmem [shape: f32[1,32], index: 4, kind: input, shape index: {}]   ;;  %s2810_s5 = inlined_call_operand.vmem [shape: f32[1,32], index: 5, kind: input, shape index: {}]   ;;  %s2811_s6 = inlined_call_operand.vmem [shape: f32[1,32], index: 6, kind: input, shape index: {}]   ;;  %s2812_s7 = inlined_call_operand.vmem [shape: f32[2,8,32], index: 7, kind: output, shape index: {}]  }
   0x1 LB: > { %s2168_s25 = sadd.s32 4294967295, %s2499_s24   ;;  %p2172_p0 = scmp.ge.s32.totalorder %s2499_s24, 1  ;;  %s2499_s24 = sphi %s2557_s24, %s17_s24  }
   0x2   : > { %p236_p1 = scmp.lt.s32.totalorder %s2499_s24, 3 }
   0x4   : > { %p237_p2 = pnand %p2172_p0, %p236_p1 }
   0x5   : > { %v2471_v0 = vld [vmem:[%s2807_s2] sm:$0xff] (!%p237_p2)   ;;  %v2501_v1 = vmov (!%p237_p2), 0.0   ;;  %v2472_v2 = vld [vmem:[%s2807_s2 + $0x8] sm:$0xff] (!%p237_p2)   ;;  %vm2502_vm0 = vmmov (!%p237_p2), 0   ;;  %p266_p3 = scmp.lt.s32.totalorder (!%p237_p2), %s2168_s25, 1  ;;  %vm293_vm1 = vcmask (!%p237_p2), 261120   ;;  %v337_v21 = vlaneseq (!%p237_p2) }
   0x6   : > { %240 = sbr.rel (%p237_p2) target bundleno = 2030 (0x7ee), region = 48  ;;  %2279 = vmatprep.subr.bf16.mxu0 (!%p237_p2), %v2501_v1  ;;  %2287 = vmatprep.subr.bf16.mxu1 (!%p237_p2), %v2501_v1  ;;  %s2503_s11 = smov (!%p237_p2), 120   ;;  %vm346_vm2 = vcmask (!%p237_p2), 64512   ;;  %vm412_vm4 = vcmask (!%p237_p2), 1043456   ;;  %vm2012_vm5 = vcmask (!%p237_p2), 130048   ;;  %vm2014_vm6 = vcmask (!%p237_p2), 195584  }
   0x7   : > { %2280 = vmatpush3.bf16.msra.mxu0 (!%p237_p2), %v2471_v0  ;;  %2283 = vmatprep.mubr.msk.bf16.mxu0 (!%p237_p2), %vm2502_vm0, %v2501_v1  ;;  %s2504_s12 = smov (!%p237_p2), 96   ;;  %s2505_s13 = smov (!%p237_p2), 80   ;;  %v338_v22 = vshrl.u32 (!%p237_p2), %v337_v21, 7  ;;  %v340_v23 = vand.u32 (!%p237_p2), 127, %v337_v21 }
   0x8   : > { %2281 = vmatprep.subr.bf16.mxu0 (!%p237_p2), %v2501_v1  ;;  %2289 = vmatprep.mubr.msk.bf16.mxu1 (!%p237_p2), %vm2502_vm0, %v2501_v1  ;;  %s2506_s14 = smov (!%p237_p2), 88   ;;  %s2507_s15 = smov (!%p237_p2), 72  }
   0x9   : > { %s2508_s16 = smov (!%p237_p2), 112   ;;  %s2509_s17 = smov (!%p237_p2), 104   ;;  %vm341_vm3 = vcmp.lt.s32.totalorder (!%p237_p2), %v338_v22, %v340_v23 }
   0xa   : > { %s2510_s18 = smov (!%p237_p2), 64   ;;  %s2511_s19 = smov (!%p237_p2), 48  }
   0xb   : > { %2282 = vmatpush3.bf16.msra.mxu0 (!%p237_p2), %v2472_v2  ;;  %s2512_s20 = smov (!%p237_p2), 40   ;;  %s2513_s21 = smov (!%p237_p2), 56  }
   0xc   : > { %2293 = vmatprep.subr.bf16.mxu0 (!%p237_p2), %v2501_v1 }
   0xd   : > { %s2814_s25 = smov (!%p266_p3, %s2168_s25), 1 }
   0xe   : > { %s2173_s30 = sshll.u32 %s2814_s25, 3 }
   0xf   : > { %s269_s10 = scalar_lea.vmem %s2805_s0, %s2173_s30  ;;  %s273_s9 = scalar_lea.vmem %s2812_s7, %s2173_s30 }
  0x10   : > { %v2587_v3 = vld [vmem:[%s269_s10] sm:$0xff] }
  0x11   : > { %v276_v4 = vpack.c.bf16 %v2587_v3, %v2587_v3 }
  0x13   : > { %2284 = vmatmul.mubr.msk.bf16.vlgmr.msra.gmra.mrb[0].mxu0 %vm293_vm1, %v276_v4 }
  0x14   : > { %2295 = vmatprep.mubr.msk.bf16.mxu0 %vm2502_vm0, %v2501_v1 }
  0xe6   : > { %v331_v5 = vpop.f32.mrb[0].mxu0 }
  0xe7   : > { %v2594_v6 = vpack.c.bf16 %v331_v5, %v331_v5  ;;  %v2285_v7 = vpop.f32.mrb[1].mxu0 }
  0xe8   : > { %v334_v8 = vpop.f32.mrb[2].mxu0 }
  0xe9   : > { %456 = vrot.lane.b32.xlu1 %v2594_v6, %s2503_s11  ;;  %344 = vrot.lane.b32.xlu0 %v2594_v6, %s2504_s12  ;;  %v2286_v9 = vpop.f32.mrb[3].mxu0 }
  0xed   : > { %570 = vrot.lane.b32.xlu1 %v2594_v6, %s2505_s13  ;;  %458 = vrot.lane.b32.xlu0 %v2594_v6, %s2506_s14 }
  0xf1   : > { %682 = vrot.lane.b32.xlu1 %v2594_v6, %s2507_s15  ;;  %568 = vrot.lane.b32.xlu0 %v2594_v6, %s2508_s16  ;;  %s2514_s16 = smov 8  }
  0xf5   : > { %680 = vrot.lane.b32.xlu0 %v2594_v6, %s2509_s17 }
 0x15b   : > { %v345_v10 = vpop.permute.xlu0 %344  ;;  %v457_v13 = vpop.permute.xlu1 %456 }
 0x15c   : > { %v351_v11 = vsel %vm346_vm2, %v345_v10, 0 }
 0x15d   : > { %2288 = vmatpush3.bf16.xpose.msra.mxu1 %v351_v11 }
 0x15e   : > { %2299 = vmatprep.subr.bf16.mxu1 %v2501_v1 }
 0x15f   : > { %v459_v12 = vpop.permute.xlu0 %458  ;;  %v571_v15 = vpop.permute.xlu1 %570 }
 0x160   : > { %v464_v14 = vsel %vm346_vm2, %v459_v12, 0  ;;  %v576_v16 = vsel %vm346_vm2, %v571_v15, 0 }
 0x163   : > { %v683_v17 = vpop.permute.xlu1 %682  ;;  %v569_v18 = vpop.permute.xlu0 %568 }
 0x164   : > { %2290 = vmatmul.mubr.msk.bf16.vlgmr.msra.gmra.mrb[0].mxu1 %vm346_vm2, %v2594_v6  ;;  %v688_v19 = vsel %vm346_vm2, %v683_v17, 0 }
 0x165   : > { %2300 = vmatpush3.bf16.xpose.msra.mxu1 %v464_v14  ;;  %2301 = vmatprep.mubr.msk.bf16.mxu1 %vm2502_vm0, %v2501_v1 }
 0x166   : > { %2311 = vmatprep.subr.bf16.mxu1 %v2501_v1 }
 0x167   : > { %v681_v20 = vpop.permute.xlu0 %680 }
 0x16c   : > { %2302 = vmatmul.mubr.msk.bf16.vlgmr.msra.gmra.mrb[4].mxu1 %vm346_vm2, %v457_v13 }
 0x16d   : > { %2312 = vmatpush3.bf16.xpose.msra.mxu1 %v576_v16  ;;  %2313 = vmatprep.mubr.msk.bf16.mxu1 %vm2502_vm0, %v2501_v1 }
 0x16e   : > { %2323 = vmatprep.subr.bf16.mxu1 %v2501_v1 }
 0x174   : > { %2314 = vmatmul.mubr.msk.bf16.vlgmr.msra.gmra.mrb[8].mxu1 %vm346_vm2, %v569_v18 }
 0x175   : > { %2324 = vmatpush3.bf16.xpose.msra.mxu1 %v688_v19  ;;  %2325 = vmatprep.mubr.msk.bf16.mxu1 %vm2502_vm0, %v2501_v1 }
 0x176   : > { %2335 = vmatprep.subr.mxu1 %v2501_v1 }
 0x17c   : > { %2326 = vmatmul.mubr.msk.bf16.vlgmr.msra.gmra.mrb[12].mxu1 %vm346_vm2, %v681_v20 }
 0x17d   : > { %2337 = vmatprep.mubr.msk.f32.mxu1 %vm2502_vm0, %v2501_v1 }
 0x237   : > { %v387_v24 = vpop.f32.mrb[0].mxu1 }
 0x238   : > { %v393_v25 = vsel %vm341_vm3, -1e+20, %v387_v24  ;;  %v2291_v26 = vpop.f32.mrb[1].mxu1 }
 0x239   : > { %v394_v27 = vmul.f32 0.17677669, %v393_v25  ;;  %v390_v28 = vpop.f32.mrb[2].mxu1 }
 0x23a   : > { %v2292_v29 = vpop.f32.mrb[3].mxu1 }
 0x23b   : > { %v395_v30 = vsel %vm346_vm2, %v394_v27, -inf }
 0x23c   : > { %396 = vmax.xlane.f32.xlu1 %v395_v30 }
 0x23f   : > { %v500_v31 = vpop.f32.mrb[4].mxu1 }
 0x240   : > { %v506_v32 = vsel %vm341_vm3, -1e+20, %v500_v31  ;;  %v2303_v33 = vpop.f32.mrb[5].mxu1 }
 0x241   : > { %v507_v34 = vmul.f32 0.17677669, %v506_v32  ;;  %v503_v35 = vpop.f32.mrb[6].mxu1 }
 0x242   : > { %v2304_v36 = vpop.f32.mrb[7].mxu1 }
 0x243   : > { %v508_v37 = vsel %vm346_vm2, %v507_v34, -inf }
 0x244   : > { %509 = vmax.xlane.f32.xlu0 %v508_v37 }
 0x247   : > { %v612_v38 = vpop.f32.mrb[8].mxu1 }
 0x248   : > { %v618_v39 = vsel %vm341_vm3, -1e+20, %v612_v38  ;;  %v2315_v40 = vpop.f32.mrb[9].mxu1  ;;  %v2186_v38 = vld [vmem:[%s2806_s1 + $0x8] sm:$0xff] }
 0x249   : > { %v619_v41 = vmul.f32 0.17677669, %v618_v39  ;;  %v615_v42 = vpop.f32.mrb[10].mxu1  ;;  %v2194_v40 = vld [vmem:[%s2806_s1 + $0x28] sm:$0xff] }
 0x24a   : > { %v2316_v43 = vpop.f32.mrb[11].mxu1 }
 0x24b   : > { %v620_v44 = vsel %vm346_vm2, %v619_v41, -inf }
 0x24c   : > { %621 = vmax.xlane.f32.xlu0 %v620_v44  ;;  %v792_v44 = vld [vmem:[%s2806_s1] sm:$0xff] }
 0x24f   : > { %v724_v45 = vpop.f32.mrb[12].mxu1 }
 0x250   : > { %v730_v46 = vsel %vm341_vm3, -1e+20, %v724_v45  ;;  %v2327_v47 = vpop.f32.mrb[13].mxu1 }
 0x251   : > { %v731_v48 = vmul.f32 0.17677669, %v730_v46  ;;  %v727_v49 = vpop.f32.mrb[14].mxu1  ;;  %v2193_v46 = vld [vmem:[%s2806_s1 + $0x20] sm:$0xff] }
 0x252   : > { %v2328_v50 = vpop.f32.mrb[15].mxu1 }
 0x253   : > { %v732_v51 = vsel %vm346_vm2, %v731_v48, -inf  ;;  %v2189_v50 = vld [vmem:[%s2806_s1 + $0x10] sm:$0xff] }
 0x254   : > { %733 = vmax.xlane.f32.xlu1 %v732_v51 }
 0x2c9   : > { %v397_v52 = vpop.xlane.xlu1 %396 }
 0x2ca   : > { %v398_v53 = vsub.f32 %v394_v27, %v397_v52  ;;  %v2197_v52 = vld [vmem:[%s2806_s1 + $0x30] sm:$0xff] }
 0x2cc   : > { %v399_v54 = vmul.f32 1.442695, %v398_v53 }
 0x2ce   : > { %2475 = vpow2.f32 %v399_v54 }
 0x2d1   : > { %v510_v55 = vpop.xlane.xlu0 %509 }
 0x2d2   : > { %v511_v56 = vsub.f32 %v507_v34, %v510_v55 }
 0x2d4   : > { %v512_v57 = vmul.f32 1.442695, %v511_v56  ;;  %v2191_v56 = vld [vmem:[%s2806_s1 + $0x18] sm:$0xff] }
 0x2d6   : > { %2477 = vpow2.f32 %v512_v57  ;;  %v2199_v57 = vld [vmem:[%s2806_s1 + $0x38] sm:$0xff] }
 0x2d8   : > { %v2476_v58 = vpop.eup %2475 }
 0x2d9   : > { %v622_v59 = vpop.xlane.xlu0 %621  ;;  %v401_v60 = vsel %vm346_vm2, %v2476_v58, 0.0 }
 0x2da   : > { %v623_v61 = vsub.f32 %v619_v41, %v622_v59  ;;  %402 = vadd.xlane.f32.xlu0 %v401_v60  ;;  %v2210_v59 = vld [vmem:[%s2806_s1 + $0x68] sm:$0xff]  ;;  %v2201_v60 = vld [vmem:[%s2806_s1 + $0x40] sm:$0xff] }
 0x2dc   : > { %v624_v62 = vmul.f32 1.442695, %v623_v61  ;;  %v2209_v61 = vld [vmem:[%s2806_s1 + $0x60] sm:$0xff] }
 0x2de   : > { %2479 = vpow2.f32 %v624_v62  ;;  %v2205_v62 = vld [vmem:[%s2806_s1 + $0x50] sm:$0xff] }
 0x2e0   : > { %v2478_v63 = vpop.eup %2477 }
 0x2e1   : > { %v734_v0 = vpop.xlane.xlu1 %733  ;;  %v514_v2 = vsel %vm346_vm2, %v2478_v63, 0.0 }
 0x2e2   : > { %v735_v4 = vsub.f32 %v731_v48, %v734_v0  ;;  %515 = vadd.xlane.f32.xlu1 %v514_v2  ;;  %v2207_v0 = vld [vmem:[%s2806_s1 + $0x58] sm:$0xff] }
 0x2e3   : > { %v2215_v2 = vld [vmem:[%s2806_s1 + $0x78] sm:$0xff] }
 0x2e4   : > { %v736_v5 = vmul.f32 1.442695, %v735_v4  ;;  %v2473_v4 = vld [vmem:[%s2808_s3] sm:$0xff]  }
 0x2e6   : > { %2481 = vpow2.f32 %v736_v5 }
 0x2e8   : > { %v2480_v7 = vpop.eup %2479 }
 0x2e9   : > { %v626_v8 = vsel %vm346_vm2, %v2480_v7, 0.0 }
 0x2ea   : > { %627 = vadd.xlane.f32.xlu0 %v626_v8 }
 0x2f0   : > { %v2482_v9 = vpop.eup %2481 }
 0x2f1   : > { %v738_v10 = vsel %vm346_vm2, %v2482_v9, 0.0 }
 0x2f2   : > { %739 = vadd.xlane.f32.xlu0 %v738_v10  ;;  %v2474_v10 = vld [vmem:[%s2808_s3 + $0x8] sm:$0xff]  }
 0x2f3   : > { %407 = vrot.lane.b32.xlu1 %v2594_v6, %s2510_s18 }
 0x2f7   : > { %632 = vrot.lane.b32.xlu1 %v2594_v6, %s2511_s19  ;;  %s2515_s19 = smov 16  }
 0x2fb   : > { %744 = vrot.lane.b32.xlu1 %v2594_v6, %s2512_s20  ;;  %s2516_s20 = smov 24  }
 0x308   : > { %520 = vrot.lane.b32.xlu0 %v2594_v6, %s2513_s21 }
 0x367   : > { %v403_v11 = vpop.xlane.xlu0 %402 }
 0x368   : > { %2483 = vrcp.f32 %v403_v11 }
 0x36f   : > { %v516_v12 = vpop.xlane.xlu1 %515 }
 0x370   : > { %2485 = vrcp.f32 %v516_v12 }
 0x372   : > { %v2484_v13 = vpop.eup %2483 }
 0x373   : > { %v405_v14 = vmul.f32 %v2484_v13, %v2476_v58  ;;  %v408_v15 = vpop.permute.xlu1 %407  ;;  %v2202_v58 = vld [vmem:[%s2806_s1 + $0x48] sm:$0xff] }
 0x374   : > { %v414_v16 = vsel %vm412_vm4, %v408_v15, 0 }
 0x375   : > { %2294 = vmatpush3.bf16.msra.mxu0 %v414_v16  ;;  %v406_v17 = vpack.c.bf16 %v405_v14, %v405_v14 }
 0x376   : > { %2305 = vmatprep.subr.bf16.mxu0 %v2501_v1 }
 0x377   : > { %v628_v6 = vpop.xlane.xlu0 %627  ;;  %v633_v23 = vpop.permute.xlu1 %632 }
 0x378   : > { %2296 = vmatmul.mubr.msk.bf16.vlgmr.msra.gmra.mrb[4].mxu0 %vm346_vm2, %v406_v17  ;;  %2487 = vrcp.f32 %v628_v6  ;;  %v638_v26 = vsel %vm412_vm4, %v633_v23, 0 }
 0x379   : > { %2307 = vmatprep.mubr.msk.bf16.mxu0 %vm2502_vm0, %v2501_v1 }
 0x37a   : > { %v2486_v18 = vpop.eup %2485 }
 0x37b   : > { %v518_v20 = vmul.f32 %v2486_v18, %v2478_v63  ;;  %v745_v28 = vpop.permute.xlu1 %744  ;;  %v2213_v63 = vld [vmem:[%s2806_s1 + $0x70] sm:$0xff] }
 0x37c   : > { %v750_v31 = vsel %vm412_vm4, %v745_v28, 0 }
 0x37d   : > { %v519_v24 = vpack.c.bf16 %v518_v20, %v518_v20  ;;  %v2217_v20 = vld [vmem:[%s2809_s4] ss:$0 sm:$0xff] }
 0x37f   : > { %v740_v19 = vpop.xlane.xlu0 %739 }
 0x380   : > { %2489 = vrcp.f32 %v740_v19 }
 0x382   : > { %v2488_v25 = vpop.eup %2487 }
 0x383   : > { %v521_v21 = vpop.permute.xlu0 %520  ;;  %v630_v27 = vmul.f32 %v2488_v25, %v2480_v7 }
 0x384   : > { %v526_v22 = vsel %vm412_vm4, %v521_v21, 0 }
 0x385   : > { %2306 = vmatpush3.bf16.msra.mxu0 %v526_v22  ;;  %v631_v29 = vpack.c.bf16 %v630_v27, %v630_v27 }
 0x386   : > { %2317 = vmatprep.subr.bf16.mxu0 %v2501_v1 }
 0x388   : > { %2308 = vmatmul.mubr.msk.bf16.vlgmr.msra.gmra.mrb[8].mxu0 %vm346_vm2, %v519_v24 }
 0x389   : > { %2318 = vmatpush3.bf16.msra.mxu0 %v638_v26  ;;  %2319 = vmatprep.mubr.msk.bf16.mxu0 %vm2502_vm0, %v2501_v1 }
 0x38a   : > { %2329 = vmatprep.subr.bf16.mxu0 %v2501_v1  ;;  %v2490_v30 = vpop.eup %2489 }
 0x38b   : > { %v742_v32 = vmul.f32 %v2490_v30, %v2482_v9 }
 0x38d   : > { %v743_v33 = vpack.c.bf16 %v742_v32, %v742_v32 }
 0x390   : > { %2320 = vmatmul.mubr.msk.bf16.vlgmr.msra.gmra.mrb[12].mxu0 %vm346_vm2, %v631_v29 }
 0x391   : > { %2330 = vmatpush3.bf16.msra.mxu0 %v750_v31  ;;  %2331 = vmatprep.mubr.msk.bf16.mxu0 %vm2502_vm0, %v2501_v1 }
 0x392   : > { %2355 = vmatprep.subr.mxu0 %v2501_v1 }
 0x398   : > { %2332 = vmatmul.mubr.msk.bf16.vlgmr.msra.gmra.mrb[16].mxu0 %vm346_vm2, %v743_v33 }
 0x399   : > { %2357 = vmatprep.mubr.msk.f32.mxu0 %vm2502_vm0, %v2501_v1 }
 0x44b   : > { %v2660_v34 = vpop.f32.mrb[4].mxu0 }
 0x44c   : > { %v2297_v35 = vpop.f32.mrb[5].mxu0 }
 0x44d   : > { %v453_v36 = vpop.f32.mrb[6].mxu0 }
 0x44e   : > { %v2298_v37 = vpop.f32.mrb[7].mxu0 }
 0x45b   : > { %v562_v39 = vpop.f32.mrb[8].mxu0 }
 0x45c   : > { %v2309_v41 = vpop.f32.mrb[9].mxu0  ;;  %2336 = vmatpush3.msra.mxu1 %v562_v39  ;;  %2356 = vmatpush3.msra.mxu0 %v562_v39 }
 0x45d   : > { %v565_v42 = vpop.f32.mrb[10].mxu0  ;;  %2338 = vmatmul.mubr.msk.f32.vlgmr.msra.gmra.mrb[16].mxu1 %vm346_vm2, %v2186_v38  ;;  %2340 = vmatprep.subr.mxu1 %v2501_v1  ;;  %v2222_v38 = vld [vmem:[%s2811_s6] ss:$0 sm:$0xff] }
 0x45e   : > { %2358 = vmatmul.mubr.msk.f32.vlgmr.msra.gmra.mrb[20].mxu0 %vm346_vm2, %v2194_v40  ;;  %2360 = vmatprep.subr.mxu0 %v2501_v1  ;;  %v2310_v43 = vpop.f32.mrb[11].mxu0 }
 0x45f   : > { %2341 = vmatpush3.msra.mxu1 %v2660_v34  ;;  %2361 = vmatpush3.msra.mxu0 %v2660_v34 }
 0x460   : > { %2342 = vmatprep.mubr.msk.f32.mxu1 %vm2502_vm0, %v2501_v1  ;;  %2345 = vmatprep.subr.mxu1 %v2501_v1 }
 0x461   : > { %2362 = vmatprep.mubr.msk.f32.mxu0 %vm2502_vm0, %v2501_v1  ;;  %2365 = vmatprep.subr.mxu0 %v2501_v1 }
 0x463   : > { %v674_v45 = vpop.f32.mrb[12].mxu0 }
 0x464   : > { %v2321_v47 = vpop.f32.mrb[13].mxu0 }
 0x465   : > { %v677_v48 = vpop.f32.mrb[14].mxu0  ;;  %2343 = vmatmul.mubr.msk.f32.vlgmr.msra.gmra.mrb[16].mxu1 %vm346_vm2, %v792_v44 }
 0x466   : > { %2346 = vmatpush3.msra.mxu1 %v674_v45  ;;  %2363 = vmatmul.mubr.msk.f32.vlgmr.msra.gmra.mrb[20].mxu0 %vm346_vm2, %v2193_v46  ;;  %v2322_v49 = vpop.f32.mrb[15].mxu0 }
 0x467   : > { %2366 = vmatpush3.msra.mxu0 %v674_v45  ;;  %2347 = vmatprep.mubr.msk.f32.mxu1 %vm2502_vm0, %v2501_v1 }
 0x468   : > { %2350 = vmatprep.subr.mxu1 %v2501_v1  ;;  %2367 = vmatprep.mubr.msk.f32.mxu0 %vm2502_vm0, %v2501_v1 }
 0x469   : > { %2370 = vmatprep.subr.mxu0 %v2501_v1 }
 0x46b   : > { %v786_v51 = vpop.f32.mrb[16].mxu0 }
 0x46c   : > { %v2333_v53 = vpop.f32.mrb[17].mxu0 }
 0x46d   : > { %v789_v54 = vpop.f32.mrb[18].mxu0  ;;  %2348 = vmatmul.mubr.msk.f32.vlgmr.msra.gmra.mrb[16].mxu1 %vm346_vm2, %v2189_v50 }
 0x46e   : > { %2351 = vmatpush3.msra.mxu1 %v786_v51  ;;  %2368 = vmatmul.mubr.msk.f32.vlgmr.msra.gmra.mrb[20].mxu0 %vm346_vm2, %v2197_v52  ;;  %v2334_v55 = vpop.f32.mrb[19].mxu0 }
 0x46f   : > { %2371 = vmatpush3.msra.mxu0 %v786_v51  ;;  %2352 = vmatprep.mubr.msk.f32.mxu1 %vm2502_vm0, %v2501_v1 }
 0x470   : > { %2372 = vmatprep.mubr.msk.f32.mxu0 %vm2502_vm0, %v2501_v1  ;;  %2375 = vmatprep.subr.mxu1 %v2501_v1 }
 0x471   : > { %2395 = vmatprep.subr.mxu0 %v2501_v1 }
 0x475   : > { %2353 = vmatmul.mubr.msk.f32.vlgmr.msra.gmra.mrb[16].mxu1 %vm346_vm2, %v2191_v56 }
 0x476   : > { %2373 = vmatmul.mubr.msk.f32.vlgmr.msra.gmra.mrb[20].mxu0 %vm346_vm2, %v2199_v57  ;;  %2376 = vmatpush3.msra.mxu1 %v562_v39 }
 0x477   : > { %2396 = vmatpush3.msra.mxu0 %v562_v39  ;;  %2377 = vmatprep.mubr.msk.f32.mxu1 %vm2502_vm0, %v2501_v1 }
 0x478   : > { %2380 = vmatprep.subr.mxu1 %v2501_v1  ;;  %2397 = vmatprep.mubr.msk.f32.mxu0 %vm2502_vm0, %v2501_v1 }
 0x479   : > { %2400 = vmatprep.subr.mxu0 %v2501_v1  ;;  %2378 = vmatmul.mubr.msk.f32.vlgmr.msra.gmra.mrb[18].mxu1 %vm346_vm2, %v2202_v58 }
 0x47a   : > { %2381 = vmatpush3.msra.mxu1 %v2660_v34  ;;  %2398 = vmatmul.mubr.msk.f32.vlgmr.msra.gmra.mrb[22].mxu0 %vm346_vm2, %v2210_v59 }
 0x47b   : > { %2401 = vmatpush3.msra.mxu0 %v2660_v34  ;;  %2382 = vmatprep.mubr.msk.f32.mxu1 %vm2502_vm0, %v2501_v1 }
 0x47c   : > { %2385 = vmatprep.subr.mxu1 %v2501_v1  ;;  %2402 = vmatprep.mubr.msk.f32.mxu0 %vm2502_vm0, %v2501_v1 }
 0x47d   : > { %2405 = vmatprep.subr.mxu0 %v2501_v1 }
 0x481   : > { %2383 = vmatmul.mubr.msk.f32.vlgmr.msra.gmra.mrb[18].mxu1 %vm346_vm2, %v2201_v60 }
 0x482   : > { %2386 = vmatpush3.msra.mxu1 %v674_v45  ;;  %2403 = vmatmul.mubr.msk.f32.vlgmr.msra.gmra.mrb[22].mxu0 %vm346_vm2, %v2209_v61 }
 0x483   : > { %2406 = vmatpush3.msra.mxu0 %v674_v45  ;;  %2387 = vmatprep.mubr.msk.f32.mxu1 %vm2502_vm0, %v2501_v1 }
 0x484   : > { %2390 = vmatprep.subr.mxu1 %v2501_v1  ;;  %2407 = vmatprep.mubr.msk.f32.mxu0 %vm2502_vm0, %v2501_v1 }
 0x485   : > { %2410 = vmatprep.subr.mxu0 %v2501_v1 }
 0x489   : > { %2388 = vmatmul.mubr.msk.f32.vlgmr.msra.gmra.mrb[18].mxu1 %vm346_vm2, %v2205_v62 }
 0x48a   : > { %2391 = vmatpush3.msra.mxu1 %v786_v51  ;;  %2408 = vmatmul.mubr.msk.f32.vlgmr.msra.gmra.mrb[22].mxu0 %vm346_vm2, %v2213_v63 }
 0x48b   : > { %2411 = vmatpush3.msra.mxu0 %v786_v51  ;;  %2392 = vmatprep.mubr.msk.f32.mxu1 %vm2502_vm0, %v2501_v1 }
 0x48c   : > { %2412 = vmatprep.mubr.msk.f32.mxu0 %vm2502_vm0, %v2501_v1  ;;  %2415 = vmatprep.subr.bf16.mxu1 %v2501_v1 }
 0x491   : > { %2393 = vmatmul.mubr.msk.f32.vlgmr.msra.gmra.mrb[18].mxu1 %vm346_vm2, %v2207_v0 }
 0x492   : > { %2413 = vmatmul.mubr.msk.f32.vlgmr.msra.gmra.mrb[22].mxu0 %vm346_vm2, %v2215_v2  ;;  %2419 = vmatprep.mubr.msk.bf16.mxu1 %vm2502_vm0, %v2501_v1 }
 0x493   : > { %2416 = vmatpush3.bf16.msra.mxu1 %v2473_v4 }
 0x494   : > { %2417 = vmatprep.subr.bf16.mxu1 %v2501_v1 }
 0x497   : > { %2418 = vmatpush3.bf16.msra.mxu1 %v2474_v10 }
 0x548   : > { %v1088_v5 = vpop.f32.mrb[16].mxu1 }
 0x549   : > { %v1390_v7 = vpop.f32.mrb[20].mxu0  ;;  %v2354_v8 = vpop.f32.mrb[17].mxu1 }
 0x54a   : > { %2000 = vrot.lane.b32.xlu1 %v1390_v7, %s2514_s16  ;;  %v2374_v9 = vpop.f32.mrb[21].mxu0 }
 0x564   : > { %v1692_v11 = vpop.f32.mrb[18].mxu1 }
 0x565   : > { %v1994_v12 = vpop.f32.mrb[22].mxu0  ;;  %2004 = vrot.lane.b32.xlu0 %v1692_v11, %s2515_s19  ;;  %v2394_v13 = vpop.f32.mrb[19].mxu1 }
 0x566   : > { %2008 = vrot.lane.b32.xlu1 %v1994_v12, %s2516_s20  ;;  %v2414_v14 = vpop.f32.mrb[23].mxu0 }
 0x5bc   : > { %v2001_v1 = vpop.permute.xlu1 %2000 }
 0x5bd   : > { %v2011_v15 = vsel %vm346_vm2, %v1088_v5, %v2001_v1 }
 0x5d7   : > { %v2005_v16 = vpop.permute.xlu0 %2004 }
 0x5d8   : > { %v2013_v17 = vsel %vm2012_vm5, %v2011_v15, %v2005_v16  ;;  %v2009_v6 = vpop.permute.xlu1 %2008 }
 0x5d9   : > { %v2015_v18 = vsel %vm2014_vm6, %v2013_v17, %v2009_v6 }
 0x5da   : > { %v2023_v19 = vpack.c.bf16 %v2015_v18, %v2015_v18 }
 0x5dc   : > { %2420 = vmatmul.mubr.msk.bf16.vlgmr.msra.gmra.mrb[20].mxu1 %vm293_vm1, %v2023_v19 }
 0x6af   : > { %v2079_v21 = vpop.f32.mrb[20].mxu1 }
 0x6b0   : > { %v2080_v22 = vadd.f32 %v2217_v20, %v2079_v21  ;;  %v2421_v23 = vpop.f32.mrb[21].mxu1 }
 0x6b1   : > { %v2082_v24 = vpop.f32.mrb[22].mxu1 }
 0x6b2   : > { %v2422_v25 = vpop.f32.mrb[23].mxu1  ;;  %v2085_v26 = vadd.f32 %v2080_v22, %v2587_v3  ;;  %v2221_v3 = vld [vmem:[%s2810_s5] ss:$0 sm:$0xff] }
 0x6b4   : > { %v2086_v27 = vsel %vm293_vm1, %v2085_v26, 0.0 }
 0x6b5   : > { %2087 = vadd.xlane.f32.xlu0 %v2086_v27 }
 0x742   : > { %v2088_v28 = vpop.xlane.xlu0 %2087 }
 0x743   : > { %v2090_v29 = vmul.f32 0.03125, %v2088_v28 }
 0x745   : > { %v2091_v30 = vsub.f32 %v2085_v26, %v2090_v29 }
 0x747   : > { %v2092_v31 = vmul.f32 %v2091_v30, %v2091_v30 }
 0x749   : > { %v2093_v32 = vsel %vm293_vm1, %v2092_v31, 0.0 }
 0x74a   : > { %2094 = vadd.xlane.f32.xlu1 %v2093_v32 }
 0x7d7   : > { %v2095_v33 = vpop.xlane.xlu1 %2094 }
 0x7d8   : > { %v2096_v34 = vmul.f32 0.03125, %v2095_v33 }
 0x7da   : > { %v2097_v35 = vadd.f32 1e-05, %v2096_v34 }
 0x7dc   : > { %2491 = vrsqrt.f32 %v2097_v35 }
 0x7e6   : > { %v2492_v36 = vpop.eup %2491 }
 0x7e7   : > { %v2099_v37 = vmul.f32 %v2492_v36, %v2091_v30 }
 0x7e9   : > { %v2106_v39 = vmul.f32 %v2221_v3, %v2099_v37 }
 0x7eb   : > { %v2113_v40 = vadd.f32 %v2222_v38, %v2106_v39 }
 0x7ed   : > { %2114 = vst.msk [vmem:[%s273_s9] sm:$0xff] %vm293_vm1, %v2113_v40 }
 0x7ee PF: > { %s17_s24 = sadd.s32 1, %s2499_s24  }
 0x7ef   : > { %p14_p4 = scmp.ge.s32.totalorder %s17_s24, 4  }
 0x7f1   :  { %16 = sbr.rel (!%p14_p4) target bundleno = 1 (0x1), region = 93 }

// kernel: transformer_fwd.10
= control target key start
LH: loop header
LB: loop body
LE: loop exit
PB: predicated region body
PF: predicated region fallthrough
CT: control target
= control target key end

     0   :  { %s3210_s21 = smov 0   ;;  %s3516_s0 = inlined_call_operand.vmem [shape: f32[2,8,32], index: 0, kind: input, shape index: {}]   ;;  %s3517_s1 = inlined_call_operand.vmem [shape: f32[2,10,32], index: 1, kind: input, shape index: {}]   ;;  %s3518_s2 = inlined_call_operand.vmem [shape: f32[2,1,10], index: 2, kind: input, shape index: {}]   ;;  %s3519_s3 = inlined_call_operand.vmem [shape: f32[4,4,8,8], index: 3, kind: input, shape index: {}]   ;;  %s3520_s4 = inlined_call_operand.vmem [shape: bf16[32,32], index: 4, kind: input, shape index: {}]   ;;  %s3521_s5 = inlined_call_operand.vmem [shape: bf16[32,64], index: 5, kind: input, shape index: {}]   ;;  %s3522_s6 = inlined_call_operand.vmem [shape: bf16[32,32], index: 6, kind: input, shape index: {}]   ;;  %s3523_s7 = inlined_call_operand.vmem [shape: f32[1,32], index: 7, kind: input, shape index: {}]   ;;  %s3524_s8 = inlined_call_operand.vmem [shape: f32[1,32], index: 8, kind: input, shape index: {}]   ;;  %s3525_s9 = inlined_call_operand.vmem [shape: f32[1,32], index: 9, kind: input, shape index: {}]   ;;  %s3526_s10 = inlined_call_operand.vmem [shape: bf16[32,64], index: 10, kind: input, shape index: {}]   ;;  %s3527_s11 = inlined_call_operand.vmem [shape: f32[1,64], index: 11, kind: input, shape index: {}]   ;;  %s3528_s12 = inlined_call_operand.vmem [shape: bf16[64,32], index: 12, kind: input, shape index: {}]   ;;  %s3529_s13 = inlined_call_operand.vmem [shape: f32[1,32], index: 13, kind: input, shape index: {}]   ;;  %s3530_s14 = inlined_call_operand.vmem [shape: f32[1,32], index: 14, kind: input, shape index: {}]   ;;  %s3531_s15 = inlined_call_operand.vmem [shape: f32[1,32], index: 15, kind: input, shape index: {}]   ;;  %s3532_s16 = inlined_call_operand.vmem [shape: f32[2,8,32], index: 16, kind: output, shape index: {}]  }
   0x1   :  { %3533 = sst [smem:[#allocation2_spill]] %s3516_s0 }
   0x2 LB: > { %s2715_s22 = sadd.s32 4294967295, %s3110_s21   ;;  %p2719_p0 = scmp.ge.s32.totalorder %s3110_s21, 1  ;;  %s3110_s21 = sphi %s3210_s21, %s26_s21  }
   0x3   : > { %p479_p1 = scmp.lt.s32.totalorder %s3110_s21, 3 }
   0x5   : > { %p480_p2 = pnand %p2719_p0, %p479_p1 }
   0x6   : > { %v3072_v0 = vld [vmem:[%s3520_s4] sm:$0xff] (!%p480_p2)   ;;  %v3112_v1 = vmov (!%p480_p2), 0.0   ;;  %v3073_v2 = vld [vmem:[%s3520_s4 + $0x8] sm:$0xff] (!%p480_p2)   ;;  %vm3113_vm0 = vmmov (!%p480_p2), 0   ;;  %p535_p3 = scmp.lt.s32.totalorder (!%p480_p2), %s2715_s22, 1  ;;  %s3534_s18 = sld [smem:[#allocation2_spill]] (!%p480_p2)  ;;  %v729_v30 = vlaneseq (!%p480_p2) }
   0x7   : > { %483 = sbr.rel (%p480_p2) target bundleno = 2774 (0xad6), region = 84  ;;  %2855 = vmatprep.subr.bf16.mxu1 (!%p480_p2), %v3112_v1  ;;  %2871 = vmatprep.subr.bf16.mxu0 (!%p480_p2), %v3112_v1  ;;  %v3074_v3 = vld [vmem:[%s3521_s5] sm:$0xff] (!%p480_p2)   ;;  %vm570_vm1 = vcmask (!%p480_p2), 261120   ;;  %v3075_v6 = vld [vmem:[%s3521_s5 + $0x8] sm:$0xff] (!%p480_p2)   ;;  %vm681_vm2 = vcmask (!%p480_p2), 64512   ;;  %s3114_s28 = smov (!%p480_p2), 112  }
   0x8   : > { %2856 = vmatpush3.bf16.msra.mxu1 (!%p480_p2), %v3072_v0  ;;  %2859 = vmatprep.mubr.msk.bf16.mxu1 (!%p480_p2), %vm3113_vm0, %v3112_v1  ;;  %s3115_s29 = smov (!%p480_p2), 120   ;;  %v730_v32 = vshrl.u32 (!%p480_p2), %v729_v30, 7  ;;  %v3117_v34 = vmov (!%p480_p2), 0   ;;  %vm736_vm5 = vcmask (!%p480_p2), 80896   ;;  %s3119_s20 = smov (!%p480_p2), 96   ;;  %vm755_vm6 = vcmask (!%p480_p2), 1044480  }
   0x9   : > { %2857 = vmatprep.subr.bf16.mxu1 (!%p480_p2), %v3112_v1  ;;  %2873 = vmatprep.mubr.msk.bf16.mxu0 (!%p480_p2), %vm3113_vm0, %v3112_v1  ;;  %s3120_s23 = smov (!%p480_p2), 80   ;;  %s3123_s26 = smov (!%p480_p2), 16   ;;  %vm2356_vm7 = vcmask (!%p480_p2), 130048   ;;  %vm2358_vm8 = vcmask (!%p480_p2), 195584   ;;  %vm2568_vm9 = vcmask (!%p480_p2), 523264  }
   0xa   : > { %v731_v33 = vsub.s32 (!%p480_p2), 0, %v730_v32 }
   0xc   : > { %2858 = vmatpush3.bf16.msra.mxu1 (!%p480_p2), %v3073_v2 }
   0xd   : > { %2863 = vmatprep.subr.bf16.mxu1 (!%p480_p2), %v3112_v1 }
   0xe   : > { %s3536_s22 = smov (!%p535_p3, %s2715_s22), 1 }
   0xf   : > { %s2720_s27 = sshll.u32 %s3536_s22, 3  ;;  %s2789_s30 = sshll.u32 %s3536_s22, 4 }
  0x10   : > { %s538_s19 = scalar_lea.vmem %s3534_s18, %s2720_s27  ;;  %s543_s24 = scalar_lea.vmem %s3517_s1, %s2789_s30 }
  0x11   : > { %v3244_v4 = vld [vmem:[%s538_s19] sm:$0xff]  ;;  %v615_v8 = vld [vmem:[%s543_s24 + $0x8] sm:$0x3]  ;;  %s3116_s30 = smov 104   ;;  %s546_s18 = scalar_lea.vmem %s3518_s2, %s3536_s22 }
  0x12   : > { %v553_v5 = vpack.c.bf16 %v3244_v4, %v3244_v4  ;;  %v614_v7 = vld [vmem:[%s543_s24] sm:$0xff]  ;;  %s3118_s19 = smov 88   ;;  %s3121_s24 = smov 72  }
  0x13   : > { %v616_v9 = vpack.c.bf16 %v615_v8, %v614_v7  ;;  %v677_v31 = vld [vmem:[%s546_s18] sm:$0x1]  ;;  %s550_s18 = scalar_lea.vmem %s3532_s16, %s2720_s27 }
  0x14   : > { %2860 = vmatmul.mubr.msk.bf16.vlgmr.msra.gmra.mrb[0].mxu1 %vm570_vm1, %v553_v5  ;;  %vm678_vm3 = vcmp.eq.f32.partialorder %v677_v31, 0.0 }
  0x15   : > { %2864 = vmatpush3.bf16.msra.mxu1 %v3074_v3  ;;  %2867 = vmatprep.mubr.msk.bf16.mxu1 %vm3113_vm0, %v3112_v1  ;;  %v728_v35 = vsel %vm678_vm3, 1, %v3117_v34 }
  0x16   : > { %2865 = vmatprep.subr.bf16.mxu1 %v3112_v1  ;;  %v732_v36 = vrot.slane %v728_v35, %v731_v33 }
  0x18   : > { %vm733_vm4 = vcmp.eq.s32.totalorder %v732_v36, 1 }
  0x19   : > { %2866 = vmatpush3.bf16.msra.mxu1 %v3075_v6 }
  0x1a   : > { %2877 = vmatprep.subr.bf16.mxu1 %v3112_v1 }
  0x1c   : > { %2868 = vmatmul.mubr.msk.bf16.vlgmr.msra.gmra.mrb[4].mxu1 %vm570_vm1, %v616_v9 }
  0x1d   : > { %2879 = vmatprep.mubr.msk.bf16.mxu1 %vm3113_vm0, %v3112_v1 }
  0xe7   : > { %v608_v10 = vpop.f32.mrb[0].mxu1 }
  0xe8   : > { %v2861_v11 = vpop.f32.mrb[1].mxu1  ;;  %v679_v20 = vpack.c.bf16 %v608_v10, %v608_v10 }
  0xe9   : > { %v611_v12 = vpop.f32.mrb[2].mxu1 }
  0xea   : > { %v2862_v13 = vpop.f32.mrb[3].mxu1 }
  0xef   : > { %v670_v14 = vpop.f32.mrb[4].mxu1 }
  0xf0   : > { %v2869_v15 = vpop.f32.mrb[5].mxu1 }
  0xf1   : > { %v673_v16 = vpop.f32.mrb[6].mxu1 }
  0xf2   : > { %v3262_v17 = vpack.c.bf16 %v673_v16, %v670_v14  ;;  %v2870_v18 = vpop.f32.mrb[7].mxu1 }
  0xf4   : > { %914 = vrot.lane.b32.xlu1 %v3262_v17, %s3114_s28  ;;  %802 = vrot.lane.b32.xlu0 %v3262_v17, %s3115_s29  ;;  %v686_v19 = vsel %vm681_vm2, %v3262_v17, 0 }
  0xf5   : > { %2872 = vmatpush3.bf16.xpose.msra.mxu0 %v686_v19 }
  0xf6   : > { %2883 = vmatprep.subr.bf16.mxu0 %v3112_v1 }
  0xf8   : > { %912 = vrot.lane.b32.xlu1 %v679_v20, %s3114_s28  ;;  %800 = vrot.lane.b32.xlu0 %v679_v20, %s3115_s29  ;;  %s3124_s28 = smov 24  }
  0xfc   : > { %1024 = vrot.lane.b32.xlu1 %v679_v20, %s3116_s30  ;;  %1026 = vrot.lane.b32.xlu0 %v3262_v17, %s3116_s30 }
  0xfd   : > { %2874 = vmatmul.mubr.msk.bf16.vlgmr.msra.gmra.mrb[0].mxu0 %vm681_vm2, %v679_v20 }
  0xfe   : > { %2885 = vmatprep.mubr.msk.bf16.mxu0 %vm3113_vm0, %v3112_v1 }
 0x166   : > { %v803_v21 = vpop.permute.xlu0 %802  ;;  %v915_v23 = vpop.permute.xlu1 %914 }
 0x167   : > { %v808_v22 = vsel %vm681_vm2, %v803_v21, 0  ;;  %v920_v25 = vsel %vm681_vm2, %v915_v23, 0 }
 0x168   : > { %2884 = vmatpush3.bf16.xpose.msra.mxu0 %v808_v22 }
 0x169   : > { %2895 = vmatprep.subr.bf16.mxu0 %v3112_v1 }
 0x16a   : > { %v801_v24 = vpop.permute.xlu0 %800  ;;  %v913_v27 = vpop.permute.xlu1 %912 }
 0x16e   : > { %v1027_v26 = vpop.permute.xlu0 %1026  ;;  %v1025_v29 = vpop.permute.xlu1 %1024 }
 0x16f   : > { %2886 = vmatmul.mubr.msk.bf16.vlgmr.msra.gmra.mrb[4].mxu0 %vm681_vm2, %v801_v24  ;;  %v1032_v28 = vsel %vm681_vm2, %v1027_v26, 0 }
 0x170   : > { %2896 = vmatpush3.bf16.xpose.msra.mxu0 %v920_v25  ;;  %2897 = vmatprep.mubr.msk.bf16.mxu0 %vm3113_vm0, %v3112_v1 }
 0x171   : > { %2907 = vmatprep.subr.bf16.mxu0 %v3112_v1 }
 0x177   : > { %2898 = vmatmul.mubr.msk.bf16.vlgmr.msra.gmra.mrb[8].mxu0 %vm681_vm2, %v913_v27 }
 0x178   : > { %2908 = vmatpush3.bf16.xpose.msra.mxu0 %v1032_v28  ;;  %2909 = vmatprep.mubr.msk.bf16.mxu0 %vm3113_vm0, %v3112_v1 }
 0x179   : > { %2919 = vmatprep.subr.mxu0 %v3112_v1 }
 0x17f   : > { %2910 = vmatmul.mubr.msk.bf16.vlgmr.msra.gmra.mrb[12].mxu0 %vm681_vm2, %v1025_v29 }
 0x180   : > { %2921 = vmatprep.mubr.msk.f32.mxu0 %vm3113_vm0, %v3112_v1 }
 0x1d0   : > { %v722_v37 = vpop.f32.mrb[0].mxu0 }
 0x1d1   : > { %v734_v38 = vsel %vm733_vm4, -1e+20, %v722_v37  ;;  %v2875_v39 = vpop.f32.mrb[1].mxu0 }
 0x1d2   : > { %v735_v40 = vmul.f32 0.17677669, %v734_v38  ;;  %v725_v41 = vpop.f32.mrb[2].mxu0 }
 0x1d3   : > { %v2876_v42 = vpop.f32.mrb[3].mxu0 }
 0x1d4   : > { %v737_v43 = vsel %vm736_vm5, %v735_v40, -inf }
 0x1d5   : > { %738 = vmax.xlane.f32.xlu0 %v737_v43 }
 0x242   : > { %v844_v44 = vpop.f32.mrb[4].mxu0 }
 0x243   : > { %v850_v45 = vsel %vm733_vm4, -1e+20, %v844_v44  ;;  %v2887_v46 = vpop.f32.mrb[5].mxu0 }
 0x244   : > { %v851_v47 = vmul.f32 0.17677669, %v850_v45  ;;  %v847_v48 = vpop.f32.mrb[6].mxu0 }
 0x245   : > { %v2888_v49 = vpop.f32.mrb[7].mxu0 }
 0x246   : > { %v852_v50 = vsel %vm736_vm5, %v851_v47, -inf }
 0x247   : > { %853 = vmax.xlane.f32.xlu1 %v852_v50 }
 0x24a   : > { %v956_v51 = vpop.f32.mrb[8].mxu0 }
 0x24b   : > { %v962_v52 = vsel %vm733_vm4, -1e+20, %v956_v51  ;;  %v2899_v53 = vpop.f32.mrb[9].mxu0  ;;  %v2738_v51 = vld [vmem:[%s3519_s3 + $0x8] sm:$0xff] }
 0x24c   : > { %v963_v54 = vmul.f32 0.17677669, %v962_v52  ;;  %v959_v55 = vpop.f32.mrb[10].mxu0  ;;  %v2746_v53 = vld [vmem:[%s3519_s3 + $0x28] sm:$0xff] }
 0x24d   : > { %v2900_v56 = vpop.f32.mrb[11].mxu0 }
 0x24e   : > { %v964_v57 = vsel %vm736_vm5, %v963_v54, -inf }
 0x24f   : > { %965 = vmax.xlane.f32.xlu0 %v964_v57  ;;  %v1136_v57 = vld [vmem:[%s3519_s3] sm:$0xff] }
 0x252   : > { %v1068_v58 = vpop.f32.mrb[12].mxu0 }
 0x253   : > { %v1074_v59 = vsel %vm733_vm4, -1e+20, %v1068_v58  ;;  %v2911_v60 = vpop.f32.mrb[13].mxu0 }
 0x254   : > { %v1075_v61 = vmul.f32 0.17677669, %v1074_v59  ;;  %v1071_v62 = vpop.f32.mrb[14].mxu0  ;;  %v2745_v59 = vld [vmem:[%s3519_s3 + $0x20] sm:$0xff] }
 0x255   : > { %v2912_v63 = vpop.f32.mrb[15].mxu0 }
 0x256   : > { %v1076_v0 = vsel %vm736_vm5, %v1075_v61, -inf  ;;  %v2741_v63 = vld [vmem:[%s3519_s3 + $0x10] sm:$0xff] }
 0x257   : > { %1077 = vmax.xlane.f32.xlu0 %v1076_v0 }
 0x262   : > { %v739_v2 = vpop.xlane.xlu0 %738 }
 0x263   : > { %v740_v3 = vsub.f32 %v735_v40, %v739_v2  ;;  %v2749_v2 = vld [vmem:[%s3519_s3 + $0x30] sm:$0xff] }
 0x265   : > { %v741_v5 = vmul.f32 1.442695, %v740_v3 }
 0x267   : > { %3084 = vpow2.f32 %v741_v5 }
 0x271   : > { %v3085_v6 = vpop.eup %3084 }
 0x272   : > { %v743_v7 = vsel %vm736_vm5, %v3085_v6, 0.0 }
 0x273   : > { %744 = vadd.xlane.f32.xlu1 %v743_v7  ;;  %v2743_v7 = vld [vmem:[%s3519_s3 + $0x18] sm:$0xff] }
 0x284   : > { %864 = vrot.lane.b32.xlu1 %v3262_v17, %s3118_s19 }
 0x2d4   : > { %v854_v8 = vpop.xlane.xlu1 %853 }
 0x2d5   : > { %v855_v9 = vsub.f32 %v851_v47, %v854_v8  ;;  %v2751_v8 = vld [vmem:[%s3519_s3 + $0x38] sm:$0xff] }
 0x2d7   : > { %v856_v10 = vmul.f32 1.442695, %v855_v9  ;;  %v2754_v9 = vld [vmem:[%s3519_s3 + $0x48] sm:$0xff] }
 0x2d9   : > { %3086 = vpow2.f32 %v856_v10  ;;  %v2762_v10 = vld [vmem:[%s3519_s3 + $0x68] sm:$0xff] }
 0x2dc   : > { %v966_v11 = vpop.xlane.xlu0 %965 }
 0x2dd   : > { %v967_v12 = vsub.f32 %v963_v54, %v966_v11  ;;  %v2753_v11 = vld [vmem:[%s3519_s3 + $0x40] sm:$0xff] }
 0x2df   : > { %v968_v13 = vmul.f32 1.442695, %v967_v12  ;;  %v2761_v12 = vld [vmem:[%s3519_s3 + $0x60] sm:$0xff] }
 0x2e1   : > { %3088 = vpow2.f32 %v968_v13  ;;  %v2757_v13 = vld [vmem:[%s3519_s3 + $0x50] sm:$0xff] }
 0x2e3   : > { %v3087_v14 = vpop.eup %3086 }
 0x2e4   : > { %v1078_v15 = vpop.xlane.xlu0 %1077  ;;  %v858_v16 = vsel %vm736_vm5, %v3087_v14, 0.0 }
 0x2e5   : > { %v1079_v18 = vsub.f32 %v1075_v61, %v1078_v15  ;;  %859 = vadd.xlane.f32.xlu0 %v858_v16  ;;  %v2759_v15 = vld [vmem:[%s3519_s3 + $0x58] sm:$0xff] }
 0x2e6   : > { %v2767_v16 = vld [vmem:[%s3519_s3 + $0x78] sm:$0xff] }
 0x2e7   : > { %v1080_v19 = vmul.f32 1.442695, %v1079_v18  ;;  %v3076_v18 = vld [vmem:[%s3522_s6] sm:$0xff]  }
 0x2e9   : > { %3090 = vpow2.f32 %v1080_v19 }
 0x2eb   : > { %v3089_v20 = vpop.eup %3088 }
 0x2ec   : > { %v970_v21 = vsel %vm736_vm5, %v3089_v20, 0.0 }
 0x2ed   : > { %971 = vadd.xlane.f32.xlu1 %v970_v21 }
 0x2f3   : > { %v3091_v22 = vpop.eup %3090 }
 0x2f4   : > { %v1082_v23 = vsel %vm736_vm5, %v3091_v22, 0.0 }
 0x2f5   : > { %1083 = vadd.xlane.f32.xlu1 %v1082_v23  ;;  %v3077_v23 = vld [vmem:[%s3522_s6 + $0x8] sm:$0xff]  }
 0x2fb   : > { %750 = vrot.lane.b32.xlu0 %v3262_v17, %s3119_s20 }
 0x2ff   : > { %976 = vrot.lane.b32.xlu0 %v3262_v17, %s3120_s23  ;;  %s3122_s23 = smov 8  }
 0x300   : > { %v745_v24 = vpop.xlane.xlu1 %744 }
 0x301   : > { %3092 = vrcp.f32 %v745_v24 }
 0x304   : > { %v865_v28 = vpop.permute.xlu1 %864 }
 0x305   : > { %v870_v33 = vsel %vm755_vm6, %v865_v28, 0 }
 0x306   : > { %1088 = vrot.lane.b32.xlu1 %v3262_v17, %s3121_s24 }
 0x30b   : > { %v3093_v25 = vpop.eup %3092 }
 0x30c   : > { %v747_v27 = vmul.f32 %v3093_v25, %v3085_v6 }
 0x30e   : > { %v748_v31 = vpack.c.bf16 %v747_v27, %v747_v27 }
 0x372   : > { %v860_v26 = vpop.xlane.xlu0 %859 }
 0x373   : > { %3094 = vrcp.f32 %v860_v26 }
 0x376   : > { %v751_v29 = vpop.permute.xlu0 %750 }
 0x377   : > { %v757_v30 = vsel %vm755_vm6, %v751_v29, 0 }
 0x378   : > { %2878 = vmatpush3.bf16.msra.mxu1 %v757_v30 }
 0x379   : > { %2889 = vmatprep.subr.bf16.mxu1 %v3112_v1 }
 0x37a   : > { %v972_v32 = vpop.xlane.xlu1 %971  ;;  %v977_v35 = vpop.permute.xlu0 %976 }
 0x37b   : > { %3096 = vrcp.f32 %v972_v32  ;;  %2880 = vmatmul.mubr.msk.bf16.vlgmr.msra.gmra.mrb[8].mxu1 %vm736_vm5, %v748_v31  ;;  %v982_v38 = vsel %vm755_vm6, %v977_v35, 0 }
 0x37c   : > { %2890 = vmatpush3.bf16.msra.mxu1 %v870_v33  ;;  %2891 = vmatprep.mubr.msk.bf16.mxu1 %vm3113_vm0, %v3112_v1 }
 0x37d   : > { %v3095_v17 = vpop.eup %3094  ;;  %2901 = vmatprep.subr.bf16.mxu1 %v3112_v1 }
 0x37e   : > { %v862_v34 = vmul.f32 %v3095_v17, %v3087_v14  ;;  %v2765_v14 = vld [vmem:[%s3519_s3 + $0x70] sm:$0xff] }
 0x380   : > { %v863_v36 = vpack.c.bf16 %v862_v34, %v862_v34  ;;  %v2769_v34 = vld [vmem:[%s3523_s7] ss:$0 sm:$0xff] }
 0x382   : > { %v1084_v37 = vpop.xlane.xlu1 %1083 }
 0x383   : > { %3098 = vrcp.f32 %v1084_v37  ;;  %2892 = vmatmul.mubr.msk.bf16.vlgmr.msra.gmra.mrb[12].mxu1 %vm736_vm5, %v863_v36 }
 0x384   : > { %2902 = vmatpush3.bf16.msra.mxu1 %v982_v38  ;;  %2903 = vmatprep.mubr.msk.bf16.mxu1 %vm3113_vm0, %v3112_v1 }
 0x385   : > { %v3097_v39 = vpop.eup %3096  ;;  %2913 = vmatprep.subr.bf16.mxu1 %v3112_v1 }
 0x386   : > { %v974_v40 = vmul.f32 %v3097_v39, %v3089_v20  ;;  %v1089_v41 = vpop.permute.xlu1 %1088 }
 0x387   : > { %v1094_v43 = vsel %vm755_vm6, %v1089_v41, 0 }
 0x388   : > { %v975_v42 = vpack.c.bf16 %v974_v40, %v974_v40 }
 0x38b   : > { %2904 = vmatmul.mubr.msk.bf16.vlgmr.msra.gmra.mrb[16].mxu1 %vm736_vm5, %v975_v42 }
 0x38c   : > { %2914 = vmatpush3.bf16.msra.mxu1 %v1094_v43  ;;  %2915 = vmatprep.mubr.msk.bf16.mxu1 %vm3113_vm0, %v3112_v1 }
 0x38d   : > { %v3099_v44 = vpop.eup %3098  ;;  %2939 = vmatprep.subr.mxu1 %v3112_v1 }
 0x38e   : > { %v1086_v45 = vmul.f32 %v3099_v44, %v3091_v22 }
 0x390   : > { %v1087_v46 = vpack.c.bf16 %v1086_v45, %v1086_v45 }
 0x393   : > { %2916 = vmatmul.mubr.msk.bf16.vlgmr.msra.gmra.mrb[20].mxu1 %vm736_vm5, %v1087_v46 }
 0x394   : > { %2941 = vmatprep.mubr.msk.f32.mxu1 %vm3113_vm0, %v3112_v1 }
 0x44e   : > { %v3328_v47 = vpop.f32.mrb[8].mxu1 }
 0x44f   : > { %v2881_v48 = vpop.f32.mrb[9].mxu1 }
 0x450   : > { %v796_v49 = vpop.f32.mrb[10].mxu1  ;;  %v3079_v48 = vld [vmem:[%s3526_s10 + $0x8] sm:$0xff]  }
 0x451   : > { %v2882_v50 = vpop.f32.mrb[11].mxu1  ;;  %v3081_v49 = vld [vmem:[%s3528_s12 + $0x8] sm:$0xff]  }
 0x456   : > { %v906_v52 = vpop.f32.mrb[12].mxu1 }
 0x457   : > { %v2893_v54 = vpop.f32.mrb[13].mxu1  ;;  %2920 = vmatpush3.msra.mxu0 %v906_v52  ;;  %2940 = vmatpush3.msra.mxu1 %v906_v52 }
 0x458   : > { %v909_v55 = vpop.f32.mrb[14].mxu1  ;;  %2922 = vmatmul.mubr.msk.f32.vlgmr.msra.gmra.mrb[16].mxu0 %vm681_vm2, %v2738_v51  ;;  %2924 = vmatprep.subr.mxu0 %v3112_v1  ;;  %v2773_v54 = vld [vmem:[%s3524_s8] ss:$0 sm:$0xff] }
 0x459   : > { %2942 = vmatmul.mubr.msk.f32.vlgmr.msra.gmra.mrb[24].mxu1 %vm681_vm2, %v2746_v53  ;;  %2944 = vmatprep.subr.mxu1 %v3112_v1  ;;  %v2894_v56 = vpop.f32.mrb[15].mxu1 }
 0x45a   : > { %2925 = vmatpush3.msra.mxu0 %v3328_v47  ;;  %2945 = vmatpush3.msra.mxu1 %v3328_v47  ;;  %v2774_v56 = vld [vmem:[%s3525_s9] ss:$0 sm:$0xff] }
 0x45b   : > { %2926 = vmatprep.mubr.msk.f32.mxu0 %vm3113_vm0, %v3112_v1  ;;  %2929 = vmatprep.subr.mxu0 %v3112_v1 }
 0x45c   : > { %2946 = vmatprep.mubr.msk.f32.mxu1 %vm3113_vm0, %v3112_v1  ;;  %2949 = vmatprep.subr.mxu1 %v3112_v1 }
 0x45e   : > { %v1018_v58 = vpop.f32.mrb[16].mxu1 }
 0x45f   : > { %v2905_v60 = vpop.f32.mrb[17].mxu1 }
 0x460   : > { %v1021_v61 = vpop.f32.mrb[18].mxu1  ;;  %2927 = vmatmul.mubr.msk.f32.vlgmr.msra.gmra.mrb[16].mxu0 %vm681_vm2, %v1136_v57  ;;  %v3082_v60 = vld [vmem:[%s3528_s12 + $0x10] sm:$0xff]  }
 0x461   : > { %2930 = vmatpush3.msra.mxu0 %v1018_v58  ;;  %2947 = vmatmul.mubr.msk.f32.vlgmr.msra.gmra.mrb[24].mxu1 %vm681_vm2, %v2745_v59  ;;  %v2906_v62 = vpop.f32.mrb[19].mxu1  ;;  %v3083_v61 = vld [vmem:[%s3528_s12 + $0x18] sm:$0xff]  }
 0x462   : > { %2950 = vmatpush3.msra.mxu1 %v1018_v58  ;;  %2931 = vmatprep.mubr.msk.f32.mxu0 %vm3113_vm0, %v3112_v1  ;;  %v2775_v62 = vld [vmem:[%s3527_s11] ss:$0 sm:$0xff] }
 0x463   : > { %2934 = vmatprep.subr.mxu0 %v3112_v1  ;;  %2951 = vmatprep.mubr.msk.f32.mxu1 %vm3113_vm0, %v3112_v1 }
 0x464   : > { %2954 = vmatprep.subr.mxu1 %v3112_v1 }
 0x466   : > { %v1130_v0 = vpop.f32.mrb[20].mxu1 }
 0x467   : > { %v2917_v3 = vpop.f32.mrb[21].mxu1 }
 0x468   : > { %v1133_v5 = vpop.f32.mrb[22].mxu1  ;;  %2932 = vmatmul.mubr.msk.f32.vlgmr.msra.gmra.mrb[16].mxu0 %vm681_vm2, %v2741_v63 }
 0x469   : > { %2935 = vmatpush3.msra.mxu0 %v1130_v0  ;;  %2952 = vmatmul.mubr.msk.f32.vlgmr.msra.gmra.mrb[24].mxu1 %vm681_vm2, %v2749_v2  ;;  %v2918_v6 = vpop.f32.mrb[23].mxu1 }
 0x46a   : > { %2955 = vmatpush3.msra.mxu1 %v1130_v0  ;;  %2936 = vmatprep.mubr.msk.f32.mxu0 %vm3113_vm0, %v3112_v1 }
 0x46b   : > { %2956 = vmatprep.mubr.msk.f32.mxu1 %vm3113_vm0, %v3112_v1  ;;  %2959 = vmatprep.subr.mxu0 %v3112_v1 }
 0x46c   : > { %2979 = vmatprep.subr.mxu1 %v3112_v1 }
 0x470   : > { %2937 = vmatmul.mubr.msk.f32.vlgmr.msra.gmra.mrb[16].mxu0 %vm681_vm2, %v2743_v7 }
 0x471   : > { %2957 = vmatmul.mubr.msk.f32.vlgmr.msra.gmra.mrb[24].mxu1 %vm681_vm2, %v2751_v8  ;;  %2960 = vmatpush3.msra.mxu0 %v906_v52 }
 0x472   : > { %2980 = vmatpush3.msra.mxu1 %v906_v52  ;;  %2961 = vmatprep.mubr.msk.f32.mxu0 %vm3113_vm0, %v3112_v1 }
 0x473   : > { %2964 = vmatprep.subr.mxu0 %v3112_v1  ;;  %2981 = vmatprep.mubr.msk.f32.mxu1 %vm3113_vm0, %v3112_v1 }
 0x474   : > { %2984 = vmatprep.subr.mxu1 %v3112_v1  ;;  %2962 = vmatmul.mubr.msk.f32.vlgmr.msra.gmra.mrb[18].mxu0 %vm681_vm2, %v2754_v9 }
 0x475   : > { %2965 = vmatpush3.msra.mxu0 %v3328_v47  ;;  %2982 = vmatmul.mubr.msk.f32.vlgmr.msra.gmra.mrb[26].mxu1 %vm681_vm2, %v2762_v10 }
 0x476   : > { %2985 = vmatpush3.msra.mxu1 %v3328_v47  ;;  %2966 = vmatprep.mubr.msk.f32.mxu0 %vm3113_vm0, %v3112_v1  ;;  %v3078_v47 = vld [vmem:[%s3526_s10] sm:$0xff]  }
 0x477   : > { %2969 = vmatprep.subr.mxu0 %v3112_v1  ;;  %2986 = vmatprep.mubr.msk.f32.mxu1 %vm3113_vm0, %v3112_v1 }
 0x478   : > { %2989 = vmatprep.subr.mxu1 %v3112_v1 }
 0x47c   : > { %2967 = vmatmul.mubr.msk.f32.vlgmr.msra.gmra.mrb[18].mxu0 %vm681_vm2, %v2753_v11 }
 0x47d   : > { %2970 = vmatpush3.msra.mxu0 %v1018_v58  ;;  %2987 = vmatmul.mubr.msk.f32.vlgmr.msra.gmra.mrb[26].mxu1 %vm681_vm2, %v2761_v12 }
 0x47e   : > { %2990 = vmatpush3.msra.mxu1 %v1018_v58  ;;  %2971 = vmatprep.mubr.msk.f32.mxu0 %vm3113_vm0, %v3112_v1 }
 0x47f   : > { %2974 = vmatprep.subr.mxu0 %v3112_v1  ;;  %2991 = vmatprep.mubr.msk.f32.mxu1 %vm3113_vm0, %v3112_v1 }
 0x480   : > { %2994 = vmatprep.subr.mxu1 %v3112_v1 }
 0x484   : > { %2972 = vmatmul.mubr.msk.f32.vlgmr.msra.gmra.mrb[18].mxu0 %vm681_vm2, %v2757_v13 }
 0x485   : > { %2975 = vmatpush3.msra.mxu0 %v1130_v0  ;;  %2992 = vmatmul.mubr.msk.f32.vlgmr.msra.gmra.mrb[26].mxu1 %vm681_vm2, %v2765_v14 }
 0x486   : > { %2995 = vmatpush3.msra.mxu1 %v1130_v0  ;;  %2976 = vmatprep.mubr.msk.f32.mxu0 %vm3113_vm0, %v3112_v1 }
 0x487   : > { %2996 = vmatprep.mubr.msk.f32.mxu1 %vm3113_vm0, %v3112_v1  ;;  %2999 = vmatprep.subr.bf16.mxu0 %v3112_v1 }
 0x488   : > { %3007 = vmatprep.subr.bf16.mxu1 %v3112_v1 }
 0x48c   : > { %2977 = vmatmul.mubr.msk.f32.vlgmr.msra.gmra.mrb[18].mxu0 %vm681_vm2, %v2759_v15 }
 0x48d   : > { %2997 = vmatmul.mubr.msk.f32.vlgmr.msra.gmra.mrb[26].mxu1 %vm681_vm2, %v2767_v16  ;;  %3003 = vmatprep.mubr.msk.bf16.mxu0 %vm3113_vm0, %v3112_v1 }
 0x48e   : > { %3011 = vmatprep.mubr.msk.bf16.mxu1 %vm3113_vm0, %v3112_v1  ;;  %3000 = vmatpush3.bf16.msra.mxu0 %v3076_v18 }
 0x48f   : > { %3001 = vmatprep.subr.bf16.mxu0 %v3112_v1  ;;  %3008 = vmatpush3.bf16.msra.mxu1 %v3078_v47 }
 0x490   : > { %3009 = vmatprep.subr.bf16.mxu1 %v3112_v1 }
 0x492   : > { %3002 = vmatpush3.bf16.msra.mxu0 %v3077_v23 }
 0x493   : > { %3015 = vmatprep.subr.bf16.mxu0 %v3112_v1  ;;  %3010 = vmatpush3.bf16.msra.mxu1 %v3079_v48 }
 0x543   : > { %v1432_v19 = vpop.f32.mrb[16].mxu0 }
 0x544   : > { %v1734_v20 = vpop.f32.mrb[24].mxu1  ;;  %v2938_v21 = vpop.f32.mrb[17].mxu0 }
 0x545   : > { %2344 = vrot.lane.b32.xlu0 %v1734_v20, %s3122_s23  ;;  %v2958_v22 = vpop.f32.mrb[25].mxu1 }
 0x55f   : > { %v2036_v24 = vpop.f32.mrb[18].mxu0 }
 0x560   : > { %v2338_v25 = vpop.f32.mrb[26].mxu1  ;;  %2348 = vrot.lane.b32.xlu1 %v2036_v24, %s3123_s26  ;;  %v2978_v26 = vpop.f32.mrb[19].mxu0 }
 0x561   : > { %2352 = vrot.lane.b32.xlu0 %v2338_v25, %s3124_s28  ;;  %v2998_v27 = vpop.f32.mrb[27].mxu1  ;;  %v2785_v25 = vld [vmem:[%s3530_s14] ss:$0 sm:$0xff] }
 0x562   : > { %v2786_v27 = vld [vmem:[%s3531_s15] ss:$0 sm:$0xff] }
 0x5b7   : > { %v2345_v28 = vpop.permute.xlu0 %2344 }
 0x5b8   : > { %v2355_v29 = vsel %vm681_vm2, %v1432_v19, %v2345_v28 }
 0x5d2   : > { %v2349_v30 = vpop.permute.xlu1 %2348 }
 0x5d3   : > { %v2357_v31 = vsel %vm2356_vm7, %v2355_v29, %v2349_v30  ;;  %v2353_v32 = vpop.permute.xlu0 %2352 }
 0x5d4   : > { %v2359_v33 = vsel %vm2358_vm8, %v2357_v31, %v2353_v32 }
 0x5d5   : > { %v2367_v17 = vpack.c.bf16 %v2359_v33, %v2359_v33 }
 0x5d7   : > { %3004 = vmatmul.mubr.msk.bf16.vlgmr.msra.gmra.mrb[20].mxu0 %vm570_vm1, %v2367_v17 }
 0x5d8   : > { %3023 = vmatprep.mubr.msk.bf16.mxu0 %vm3113_vm0, %v3112_v1 }
 0x6aa   : > { %v2423_v35 = vpop.f32.mrb[20].mxu0 }
 0x6ab   : > { %v2424_v36 = vadd.f32 %v2769_v34, %v2423_v35  ;;  %v3005_v37 = vpop.f32.mrb[21].mxu0 }
 0x6ac   : > { %v2426_v38 = vpop.f32.mrb[22].mxu0 }
 0x6ad   : > { %v3006_v39 = vpop.f32.mrb[23].mxu0  ;;  %v2429_v40 = vadd.f32 %v2424_v36, %v3244_v4  ;;  %v3080_v4 = vld [vmem:[%s3528_s12] sm:$0xff]  }
 0x6ae   : > { %3016 = vmatpush3.bf16.msra.mxu0 %v3080_v4 }
 0x6af   : > { %v2430_v41 = vsel %vm570_vm1, %v2429_v40, 0.0  ;;  %3017 = vmatprep.subr.bf16.mxu0 %v3112_v1 }
 0x6b0   : > { %2431 = vadd.xlane.f32.xlu1 %v2430_v41 }
 0x6b2   : > { %3018 = vmatpush3.bf16.msra.mxu0 %v3081_v49 }
 0x6b3   : > { %3019 = vmatprep.subr.bf16.mxu0 %v3112_v1 }
 0x6b6   : > { %3020 = vmatpush3.bf16.msra.mxu0 %v3082_v60 }
 0x6b7   : > { %3021 = vmatprep.subr.bf16.mxu0 %v3112_v1  ;;  %v2779_v1 = vld [vmem:[%s3529_s13] ss:$0 sm:$0xff] }
 0x6ba   : > { %3022 = vmatpush3.bf16.msra.mxu0 %v3083_v61 }
 0x73d   : > { %v2432_v42 = vpop.xlane.xlu1 %2431 }
 0x73e   : > { %v2434_v43 = vmul.f32 0.03125, %v2432_v42 }
 0x740   : > { %v2435_v44 = vsub.f32 %v2429_v40, %v2434_v43 }
 0x742   : > { %v2436_v45 = vmul.f32 %v2435_v44, %v2435_v44 }
 0x744   : > { %v2437_v46 = vsel %vm570_vm1, %v2436_v45, 0.0 }
 0x745   : > { %2438 = vadd.xlane.f32.xlu0 %v2437_v46 }
 0x7d2   : > { %v2439_v50 = vpop.xlane.xlu0 %2438 }
 0x7d3   : > { %v2440_v51 = vmul.f32 0.03125, %v2439_v50 }
 0x7d5   : > { %v2441_v52 = vadd.f32 1e-05, %v2440_v51 }
 0x7d7   : > { %3100 = vrsqrt.f32 %v2441_v52 }
 0x7e1   : > { %v3101_v53 = vpop.eup %3100 }
 0x7e2   : > { %v2443_v55 = vmul.f32 %v3101_v53, %v2435_v44 }
 0x7e4   : > { %v2450_v57 = vmul.f32 %v2773_v54, %v2443_v55 }
 0x7e6   : > { %v2457_v58 = vadd.f32 %v2774_v56, %v2450_v57 }
 0x7e8   : > { %v2474_v59 = vpack.c.bf16 %v2457_v58, %v2457_v58 }
 0x7ea   : > { %3012 = vmatmul.mubr.msk.bf16.vlgmr.msra.gmra.mrb[28].mxu1 %vm570_vm1, %v2474_v59 }
 0x8bd   : > { %v2530_v63 = vpop.f32.mrb[28].mxu1 }
 0x8be   : > { %v2531_v0 = vadd.f32 %v2775_v62, %v2530_v63  ;;  %v3013_v2 = vpop.f32.mrb[29].mxu1 }
 0x8bf   : > { %v2533_v3 = vpop.f32.mrb[30].mxu1 }
 0x8c0   : > { %v2536_v5 = vmax.f32 %v2531_v0, 0.0  ;;  %v3014_v6 = vpop.f32.mrb[31].mxu1 }
 0x8c2   : > { %v2537_v7 = vpack.c.bf16 %v2536_v5, %v2536_v5 }
 0x8c4   : > { %3024 = vmatmul.mubr.msk.bf16.vlgmr.msra.gmra.mrb[24].mxu0 %vm2568_vm9, %v2537_v7 }
 0x997   : > { %v2606_v8 = vpop.f32.mrb[24].mxu0 }
 0x998   : > { %v2607_v9 = vadd.f32 %v2779_v1, %v2606_v8  ;;  %v3025_v10 = vpop.f32.mrb[25].mxu0 }
 0x999   : > { %v2609_v11 = vpop.f32.mrb[26].mxu0 }
 0x99a   : > { %v3026_v12 = vpop.f32.mrb[27].mxu0  ;;  %v2612_v13 = vadd.f32 %v2607_v9, %v2457_v58 }
 0x99c   : > { %v2613_v14 = vsel %vm570_vm1, %v2612_v13, 0.0 }
 0x99d   : > { %2614 = vadd.xlane.f32.xlu0 %v2613_v14 }
 0xa2a   : > { %v2615_v15 = vpop.xlane.xlu0 %2614 }
 0xa2b   : > { %v2616_v16 = vmul.f32 0.03125, %v2615_v15 }
 0xa2d   : > { %v2617_v18 = vsub.f32 %v2612_v13, %v2616_v16 }
 0xa2f   : > { %v2618_v19 = vmul.f32 %v2617_v18, %v2617_v18 }
 0xa31   : > { %v2619_v20 = vsel %vm570_vm1, %v2618_v19, 0.0 }
 0xa32   : > { %2620 = vadd.xlane.f32.xlu1 %v2619_v20 }
 0xabf   : > { %v2621_v21 = vpop.xlane.xlu1 %2620 }
 0xac0   : > { %v2622_v22 = vmul.f32 0.03125, %v2621_v21 }
 0xac2   : > { %v2623_v23 = vadd.f32 1e-05, %v2622_v22 }
 0xac4   : > { %3102 = vrsqrt.f32 %v2623_v23 }
 0xace   : > { %v3103_v24 = vpop.eup %3102 }
 0xacf   : > { %v2625_v26 = vmul.f32 %v3103_v24, %v2617_v18 }
 0xad1   : > { %v2632_v28 = vmul.f32 %v2785_v25, %v2625_v26 }
 0xad3   : > { %v2639_v29 = vadd.f32 %v2786_v27, %v2632_v28 }
 0xad5   : > { %2640 = vst.msk [vmem:[%s550_s18] sm:$0xff] %vm570_vm1, %v2639_v29 }
 0xad6 PF: > { %s26_s21 = sadd.s32 1, %s3110_s21  }
 0xad7   : > { %p23_p4 = scmp.ge.s32.totalorder %s26_s21, 4  }
 0xad9   :  { %25 = sbr.rel (!%p23_p4) target bundleno = 2 (0x2), region = 135 }

// kernel: transformer_fwd.7
= control target key start
LH: loop header
LB: loop body
LE: loop exit
PB: predicated region body
PF: predicated region fallthrough
CT: control target
= control target key end

     0   :  { %s3576_s29 = smov 0   ;;  %s3996_s0 = inlined_call_operand.vmem [shape: f32[2,10,32], index: 0, kind: input, shape index: {}]   ;;  %s3997_s1 = inlined_call_operand.vmem [shape: f32[2,1,10], index: 1, kind: input, shape index: {}]   ;;  %s3998_s2 = inlined_call_operand.vmem [shape: f32[4,4,10,10], index: 2, kind: input, shape index: {}]   ;;  %s3999_s3 = inlined_call_operand.vmem [shape: bf16[32,96], index: 3, kind: input, shape index: {}]   ;;  %s4000_s4 = inlined_call_operand.vmem [shape: bf16[32,32], index: 4, kind: input, shape index: {}]   ;;  %s4001_s5 = inlined_call_operand.vmem [shape: f32[1,32], index: 5, kind: input, shape index: {}]   ;;  %s4002_s6 = inlined_call_operand.vmem [shape: f32[1,32], index: 6, kind: input, shape index: {}]   ;;  %s4003_s7 = inlined_call_operand.vmem [shape: f32[1,32], index: 7, kind: input, shape index: {}]   ;;  %s4004_s8 = inlined_call_operand.vmem [shape: bf16[32,64], index: 8, kind: input, shape index: {}]   ;;  %s4005_s9 = inlined_call_operand.vmem [shape: f32[1,64], index: 9, kind: input, shape index: {}]   ;;  %s4006_s10 = inlined_call_operand.vmem [shape: bf16[64,32], index: 10, kind: input, shape index: {}]   ;;  %s4007_s11 = inlined_call_operand.vmem [shape: f32[1,32], index: 11, kind: input, shape index: {}]   ;;  %s4008_s12 = inlined_call_operand.vmem [shape: f32[1,32], index: 12, kind: input, shape index: {}]   ;;  %s4009_s13 = inlined_call_operand.vmem [shape: f32[1,32], index: 13, kind: input, shape index: {}]   ;;  %s4010_s14 = inlined_call_operand.vmem [shape: f32[2,10,32], index: 14, kind: output, shape index: {}]  }
   0x1 LB: > { %s2854_s30 = sadd.s32 4294967295, %s3481_s29   ;;  %p2858_p0 = scmp.ge.s32.totalorder %s3481_s29, 1  ;;  %s3481_s29 = sphi %s3576_s29, %s24_s29  }
   0x2   : > { %p420_p1 = scmp.lt.s32.totalorder %s3481_s29, 3 }
   0x4   : > { %p421_p2 = pnand %p2858_p0, %p420_p1 }
   0x5   : > { %v3425_v0 = vld [vmem:[%s3999_s3] sm:$0xff] (!%p421_p2)   ;;  %v3483_v1 = vmov (!%p421_p2), 0.0   ;;  %v3426_v2 = vld [vmem:[%s3999_s3 + $0x8] sm:$0xff] (!%p421_p2)   ;;  %vm3484_vm0 = vmmov (!%p421_p2), 0   ;;  %p469_p3 = scmp.lt.s32.totalorder (!%p421_p2), %s2854_s30, 1  ;;  %vm502_vm1 = vcmask (!%p421_p2), 261120   ;;  %v602_v22 = vlaneseq (!%p421_p2) }
   0x6   : > { %424 = sbr.rel (%p421_p2) target bundleno = 2835 (0xb13), region = 76  ;;  %3068 = vmatprep.subr.bf16.mxu0 (!%p421_p2), %v3483_v1  ;;  %3076 = vmatprep.subr.bf16.mxu1 (!%p421_p2), %v3483_v1  ;;  %s3485_s23 = smov (!%p421_p2), 120   ;;  %vm553_vm2 = vcmask (!%p421_p2), 64512   ;;  %v3492_v26 = vmov (!%p421_p2), 0   ;;  %vm611_vm5 = vcmask (!%p421_p2), 80896   ;;  %vm615_vm6 = vcmask (!%p421_p2), 74752  }
   0x7   : > { %3069 = vmatpush3.bf16.msra.mxu0 (!%p421_p2), %v3425_v0  ;;  %3072 = vmatprep.mubr.msk.bf16.mxu0 (!%p421_p2), %vm3484_vm0, %v3483_v1  ;;  %s3486_s24 = smov (!%p421_p2), 96   ;;  %s3487_s25 = smov (!%p421_p2), 80   ;;  %v603_v24 = vshrl.u32 (!%p421_p2), %v602_v22, 7  ;;  %vm641_vm7 = vcmask (!%p421_p2), 1044480   ;;  %vm1078_vm8 = vcmask (!%p421_p2), 1041408   ;;  %vm3497_vm9 = vmmov (!%p421_p2), 1  }
   0x8   : > { %3070 = vmatprep.subr.bf16.mxu0 (!%p421_p2), %v3483_v1  ;;  %3078 = vmatprep.mubr.msk.bf16.mxu1 (!%p421_p2), %vm3484_vm0, %v3483_v1  ;;  %s3488_s26 = smov (!%p421_p2), 88   ;;  %s3489_s27 = smov (!%p421_p2), 72   ;;  %vm3715_vm10 = vmpackc.low (!%p421_p2), %vm1078_vm8, %vm3497_vm9  ;;  %vm2465_vm11 = vcmask (!%p421_p2), 130048   ;;  %vm2468_vm12 = vcmask (!%p421_p2), 195584   ;;  %vm2546_vm13 = vcmask (!%p421_p2), 254976   ;;  %vm2699_vm14 = vcmask (!%p421_p2), 523264  }
   0x9   : > { %s3490_s28 = smov (!%p421_p2), 112   ;;  %s3491_s15 = smov (!%p421_p2), 104   ;;  %v604_v25 = vsub.s32 (!%p421_p2), 0, %v603_v24 }
   0xa   : > { %s3493_s20 = smov (!%p421_p2), 56   ;;  %s3494_s21 = smov (!%p421_p2), 64  }
   0xb   : > { %3071 = vmatpush3.bf16.msra.mxu0 (!%p421_p2), %v3426_v2 }
   0xc   : > { %3082 = vmatprep.subr.bf16.mxu0 (!%p421_p2), %v3483_v1 }
   0xd   : > { %s4014_s30 = smov (!%p469_p3, %s2854_s30), 1 }
   0xe   : > { %s2972_s19 = sshll.u32 %s4014_s30, 4  ;;  %s476_s18 = scalar_lea.vmem %s3997_s1, %s4014_s30 }
   0xf   : > { %s473_s22 = scalar_lea.vmem %s3996_s0, %s2972_s19  ;;  %v547_v23 = vld [vmem:[%s476_s18] sm:$0x1]  ;;  %s481_s18 = scalar_lea.vmem %s4010_s14, %s2972_s19 }
  0x10   : > { %v3606_v3 = vld [vmem:[%s473_s22] sm:$0xff]  ;;  %v3608_v4 = vld [vmem:[%s473_s22 + $0x8] sm:$0x3]  ;;  %vm548_vm3 = vcmp.eq.f32.partialorder %v547_v23, 0.0  ;;  %s3495_s22 = smov 48  }
  0x11   : > { %v485_v5 = vpack.c.bf16 %v3608_v4, %v3606_v3  ;;  %v601_v27 = vsel %vm548_vm3, 1, %v3492_v26 }
  0x12   : > { %v605_v28 = vrot.slane %v601_v27, %v604_v25 }
  0x13   : > { %3073 = vmatmul.mubr.msk.bf16.vlgmr.msra.gmra.mrb[0].mxu0 %vm502_vm1, %v485_v5 }
  0x14   : > { %3084 = vmatprep.mubr.msk.bf16.mxu0 %vm3484_vm0, %v3483_v1  ;;  %vm606_vm4 = vcmp.eq.s32.totalorder %v605_v28, 1 }
  0xe6   : > { %v540_v6 = vpop.f32.mrb[0].mxu0 }
  0xe7   : > { %v3074_v7 = vpop.f32.mrb[1].mxu0 }
  0xe8   : > { %v543_v8 = vpop.f32.mrb[2].mxu0 }
  0xe9   : > { %v3615_v9 = vpack.c.bf16 %v543_v8, %v540_v6  ;;  %v3075_v10 = vpop.f32.mrb[3].mxu0 }
  0xeb   : > { %686 = vrot.lane.b32.xlu1 %v3615_v9, %s3485_s23  ;;  %551 = vrot.lane.b32.xlu0 %v3615_v9, %s3486_s24  ;;  %s3496_s23 = smov 40  }
  0xef   : > { %815 = vrot.lane.b32.xlu1 %v3615_v9, %s3487_s25  ;;  %688 = vrot.lane.b32.xlu0 %v3615_v9, %s3488_s26  ;;  %s3498_s25 = smov 8  }
  0xf3   : > { %942 = vrot.lane.b32.xlu1 %v3615_v9, %s3489_s27  ;;  %813 = vrot.lane.b32.xlu0 %v3615_v9, %s3490_s28  ;;  %s3499_s28 = smov 16  }
  0xf7   : > { %940 = vrot.lane.b32.xlu0 %v3615_v9, %s3491_s15  ;;  %s3500_s15 = smov 24  }
 0x15d   : > { %v552_v11 = vpop.permute.xlu0 %551  ;;  %v687_v14 = vpop.permute.xlu1 %686 }
 0x15e   : > { %v558_v12 = vsel %vm553_vm2, %v552_v11, 0 }
 0x15f   : > { %3077 = vmatpush3.bf16.xpose.msra.mxu1 %v558_v12 }
 0x160   : > { %3088 = vmatprep.subr.bf16.mxu1 %v3483_v1 }
 0x161   : > { %v689_v13 = vpop.permute.xlu0 %688  ;;  %v816_v16 = vpop.permute.xlu1 %815 }
 0x162   : > { %v694_v15 = vsel %vm553_vm2, %v689_v13, 0  ;;  %v821_v17 = vsel %vm553_vm2, %v816_v16, 0 }
 0x165   : > { %v943_v18 = vpop.permute.xlu1 %942  ;;  %v814_v19 = vpop.permute.xlu0 %813 }
 0x166   : > { %3079 = vmatmul.mubr.msk.bf16.vlgmr.msra.gmra.mrb[0].mxu1 %vm553_vm2, %v3615_v9  ;;  %v948_v20 = vsel %vm553_vm2, %v943_v18, 0 }
 0x167   : > { %3089 = vmatpush3.bf16.xpose.msra.mxu1 %v694_v15  ;;  %3090 = vmatprep.mubr.msk.bf16.mxu1 %vm3484_vm0, %v3483_v1 }
 0x168   : > { %3100 = vmatprep.subr.bf16.mxu1 %v3483_v1 }
 0x169   : > { %v941_v21 = vpop.permute.xlu0 %940 }
 0x16e   : > { %3091 = vmatmul.mubr.msk.bf16.vlgmr.msra.gmra.mrb[4].mxu1 %vm553_vm2, %v687_v14 }
 0x16f   : > { %3101 = vmatpush3.bf16.xpose.msra.mxu1 %v821_v17  ;;  %3102 = vmatprep.mubr.msk.bf16.mxu1 %vm3484_vm0, %v3483_v1 }
 0x170   : > { %3112 = vmatprep.subr.bf16.mxu1 %v3483_v1 }
 0x176   : > { %3103 = vmatmul.mubr.msk.bf16.vlgmr.msra.gmra.mrb[8].mxu1 %vm553_vm2, %v814_v19 }
 0x177   : > { %3113 = vmatpush3.bf16.xpose.msra.mxu1 %v948_v20  ;;  %3114 = vmatprep.mubr.msk.bf16.mxu1 %vm3484_vm0, %v3483_v1 }
 0x17e   : > { %3115 = vmatmul.mubr.msk.bf16.vlgmr.msra.gmra.mrb[12].mxu1 %vm553_vm2, %v941_v21 }
 0x239   : > { %v594_v29 = vpop.f32.mrb[0].mxu1 }
 0x23a   : > { %v607_v30 = vsel %vm606_vm4, -1e+20, %v594_v29  ;;  %v3080_v31 = vpop.f32.mrb[1].mxu1 }
 0x23b   : > { %v609_v32 = vmul.f32 0.17677669, %v607_v30  ;;  %v597_v33 = vpop.f32.mrb[2].mxu1 }
 0x23c   : > { %v608_v34 = vsel %vm606_vm4, -1e+20, %v597_v33  ;;  %v3081_v35 = vpop.f32.mrb[3].mxu1 }
 0x23d   : > { %v610_v36 = vmul.f32 0.17677669, %v608_v34  ;;  %v612_v37 = vsel %vm611_vm5, %v609_v32, -inf }
 0x23e   : > { %613 = vmax.xlane.f32.xlu1 %v612_v37 }
 0x23f   : > { %v616_v38 = vsel %vm615_vm6, %v610_v36, -inf }
 0x240   : > { %617 = vmax.xlane.f32.xlu0 %v616_v38 }
 0x241   : > { %v730_v39 = vpop.f32.mrb[4].mxu1 }
 0x242   : > { %v737_v40 = vsel %vm606_vm4, -1e+20, %v730_v39  ;;  %v3092_v41 = vpop.f32.mrb[5].mxu1 }
 0x243   : > { %v739_v42 = vmul.f32 0.17677669, %v737_v40  ;;  %v733_v43 = vpop.f32.mrb[6].mxu1 }
 0x244   : > { %v738_v44 = vsel %vm606_vm4, -1e+20, %v733_v43  ;;  %v3093_v45 = vpop.f32.mrb[7].mxu1 }
 0x245   : > { %v740_v46 = vmul.f32 0.17677669, %v738_v44  ;;  %v741_v47 = vsel %vm611_vm5, %v739_v42, -inf }
 0x246   : > { %742 = vmax.xlane.f32.xlu0 %v741_v47 }
 0x247   : > { %v744_v48 = vsel %vm615_vm6, %v740_v46, -inf }
 0x248   : > { %745 = vmax.xlane.f32.xlu1 %v744_v48 }
 0x249   : > { %v857_v49 = vpop.f32.mrb[8].mxu1 }
 0x24a   : > { %v864_v50 = vsel %vm606_vm4, -1e+20, %v857_v49  ;;  %v3104_v51 = vpop.f32.mrb[9].mxu1 }
 0x24b   : > { %v866_v52 = vmul.f32 0.17677669, %v864_v50  ;;  %v860_v53 = vpop.f32.mrb[10].mxu1 }
 0x24c   : > { %v865_v54 = vsel %vm606_vm4, -1e+20, %v860_v53  ;;  %v3105_v55 = vpop.f32.mrb[11].mxu1 }
 0x24d   : > { %v867_v56 = vmul.f32 0.17677669, %v865_v54  ;;  %v868_v57 = vsel %vm611_vm5, %v866_v52, -inf }
 0x24e   : > { %869 = vmax.xlane.f32.xlu0 %v868_v57 }
 0x24f   : > { %v871_v58 = vsel %vm615_vm6, %v867_v56, -inf }
 0x250   : > { %872 = vmax.xlane.f32.xlu1 %v871_v58 }
 0x251   : > { %v984_v59 = vpop.f32.mrb[12].mxu1 }
 0x252   : > { %v991_v60 = vsel %vm606_vm4, -1e+20, %v984_v59  ;;  %v3116_v61 = vpop.f32.mrb[13].mxu1 }
 0x253   : > { %v993_v62 = vmul.f32 0.17677669, %v991_v60  ;;  %v987_v63 = vpop.f32.mrb[14].mxu1 }
 0x254   : > { %v992_v0 = vsel %vm606_vm4, -1e+20, %v987_v63  ;;  %v3117_v2 = vpop.f32.mrb[15].mxu1 }
 0x255   : > { %v994_v5 = vmul.f32 0.17677669, %v992_v0  ;;  %v995_v6 = vsel %vm611_vm5, %v993_v62, -inf }
 0x256   : > { %996 = vmax.xlane.f32.xlu0 %v995_v6 }
 0x257   : > { %v998_v7 = vsel %vm615_vm6, %v994_v5, -inf }
 0x258   : > { %999 = vmax.xlane.f32.xlu1 %v998_v7 }
 0x2cb   : > { %v614_v8 = vpop.xlane.xlu1 %613 }
 0x2cc   : > { %v619_v10 = vsub.f32 %v609_v32, %v614_v8 }
 0x2cd   : > { %v618_v11 = vpop.xlane.xlu0 %617 }
 0x2ce   : > { %v621_v12 = vmul.f32 1.442695, %v619_v10  ;;  %v620_v13 = vsub.f32 %v610_v36, %v618_v11 }
 0x2d0   : > { %3435 = vpow2.f32 %v621_v12  ;;  %v623_v14 = vmul.f32 1.442695, %v620_v13 }
 0x2d2   : > { %3437 = vpow2.f32 %v623_v14 }
 0x2d3   : > { %v743_v15 = vpop.xlane.xlu0 %742 }
 0x2d4   : > { %v747_v16 = vsub.f32 %v739_v42, %v743_v15 }
 0x2d5   : > { %v746_v17 = vpop.xlane.xlu1 %745 }
 0x2d6   : > { %v749_v18 = vmul.f32 1.442695, %v747_v16  ;;  %v748_v19 = vsub.f32 %v740_v46, %v746_v17 }
 0x2d8   : > { %3439 = vpow2.f32 %v749_v18  ;;  %v751_v20 = vmul.f32 1.442695, %v748_v19 }
 0x2da   : > { %v3436_v21 = vpop.eup %3435  ;;  %3441 = vpow2.f32 %v751_v20 }
 0x2db   : > { %v625_v22 = vsel %vm611_vm5, %v3436_v21, 0.0  ;;  %v870_v29 = vpop.xlane.xlu0 %869 }
 0x2dc   : > { %v3438_v23 = vpop.eup %3437  ;;  %626 = vadd.xlane.f32.xlu0 %v625_v22  ;;  %v874_v32 = vsub.f32 %v866_v52, %v870_v29 }
 0x2dd   : > { %v628_v24 = vsel %vm615_vm6, %v3438_v23, 0.0  ;;  %v873_v33 = vpop.xlane.xlu1 %872 }
 0x2de   : > { %629 = vadd.xlane.f32.xlu1 %v628_v24  ;;  %v876_v35 = vmul.f32 1.442695, %v874_v32  ;;  %v875_v36 = vsub.f32 %v867_v56, %v873_v33  ;;  %v2874_v24 = vld [vmem:[%s3998_s2 + $0x10] sm:$0xff]  ;;  %v1068_v32 = vld [vmem:[%s3998_s2 + $0x8] sm:$0x3]  ;;  %v2882_v33 = vld [vmem:[%s3998_s2 + $0x20] sm:$0xff] }
 0x2e0   : > { %v878_v38 = vmul.f32 1.442695, %v875_v36 }
 0x2e2   : > { %v3664_v25 = vpop.eup %3439 }
 0x2e3   : > { %v753_v26 = vsel %vm611_vm5, %v3664_v25, 0.0  ;;  %v997_v30 = vpop.xlane.xlu0 %996 }
 0x2e4   : > { %v3668_v27 = vpop.eup %3441  ;;  %754 = vadd.xlane.f32.xlu0 %v753_v26  ;;  %v1001_v31 = vsub.f32 %v993_v62, %v997_v30 }
 0x2e5   : > { %v756_v28 = vsel %vm615_vm6, %v3668_v27, 0.0  ;;  %v1000_v37 = vpop.xlane.xlu1 %999 }
 0x2e6   : > { %757 = vadd.xlane.f32.xlu1 %v756_v28  ;;  %v1003_v34 = vmul.f32 1.442695, %v1001_v31  ;;  %v1002_v39 = vsub.f32 %v994_v5, %v1000_v37 }
 0x2e8   : > { %3443 = vpow2.f32 %v1003_v34  ;;  %v1005_v40 = vmul.f32 1.442695, %v1002_v39  ;;  %v2875_v39 = vld [vmem:[%s3998_s2 + $0x18] sm:$0x3] }
 0x2e9   : > { %3445 = vpow2.f32 %v876_v35 }
 0x2ea   : > { %3447 = vpow2.f32 %v878_v38 }
 0x2eb   : > { %3449 = vpow2.f32 %v1005_v40  ;;  %v2894_v40 = vld [vmem:[%s3998_s2 + $0x50] sm:$0xff] }
 0x2f2   : > { %v3674_v41 = vpop.eup %3443 }
 0x2f3   : > { %v3446_v42 = vpop.eup %3445  ;;  %v1007_v43 = vsel %vm611_vm5, %v3674_v41, 0.0 }
 0x2f4   : > { %v880_v44 = vsel %vm611_vm5, %v3446_v42, 0.0  ;;  %v3448_v45 = vpop.eup %3447 }
 0x2f5   : > { %v883_v46 = vsel %vm615_vm6, %v3448_v45, 0.0  ;;  %v3680_v47 = vpop.eup %3449 }
 0x2f6   : > { %v1010_v48 = vsel %vm615_vm6, %v3680_v47, 0.0 }
 0x2f7   : > { %764 = vrot.lane.b32.xlu1 %v3615_v9, %s3493_s20 }
 0x2fa   : > { %636 = vrot.lane.b32.xlu0 %v3615_v9, %s3494_s21 }
 0x319   : > { %1008 = vadd.xlane.f32.xlu0 %v1007_v43  ;;  %v2893_v43 = vld [vmem:[%s3998_s2 + $0x48] sm:$0x3] }
 0x31b   : > { %881 = vadd.xlane.f32.xlu1 %v880_v44  ;;  %v2902_v44 = vld [vmem:[%s3998_s2 + $0x60] sm:$0xff] }
 0x31f   : > { %884 = vadd.xlane.f32.xlu1 %v883_v46 }
 0x323   : > { %1011 = vadd.xlane.f32.xlu1 %v1010_v48 }
 0x32f   : > { %891 = vrot.lane.b32.xlu0 %v3615_v9, %s3495_s22 }
 0x334   : > { %1018 = vrot.lane.b32.xlu1 %v3615_v9, %s3496_s23 }
 0x369   : > { %v627_v49 = vpop.xlane.xlu0 %626 }
 0x36a   : > { %3451 = vrcp.f32 %v627_v49 }
 0x36b   : > { %v630_v50 = vpop.xlane.xlu1 %629 }
 0x36c   : > { %3453 = vrcp.f32 %v630_v50  ;;  %v2883_v50 = vld [vmem:[%s3998_s2 + $0x28] sm:$0x3] }
 0x371   : > { %v755_v51 = vpop.xlane.xlu0 %754 }
 0x372   : > { %3455 = vrcp.f32 %v755_v51  ;;  %v2903_v51 = vld [vmem:[%s3998_s2 + $0x68] sm:$0x3] }
 0x373   : > { %v758_v52 = vpop.xlane.xlu1 %757 }
 0x374   : > { %v3452_v53 = vpop.eup %3451  ;;  %3457 = vrcp.f32 %v758_v52  ;;  %v2887_v52 = vld [vmem:[%s3998_s2 + $0x30] sm:$0xff] }
 0x375   : > { %v637_v54 = vpop.permute.xlu0 %636  ;;  %v633_v57 = vmul.f32 %v3452_v53, %v3436_v21  ;;  %v2907_v53 = vld [vmem:[%s3998_s2 + $0x70] sm:$0xff] }
 0x376   : > { %v3454_v55 = vpop.eup %3453  ;;  %v643_v56 = vsel %vm641_vm7, %v637_v54, 0 }
 0x377   : > { %v634_v58 = vmul.f32 %v3454_v55, %v3438_v23  ;;  %3083 = vmatpush3.bf16.msra.mxu0 %v643_v56  ;;  %v765_v59 = vpop.permute.xlu1 %764 }
 0x378   : > { %3094 = vmatprep.subr.bf16.mxu0 %v3483_v1  ;;  %v770_v60 = vsel %vm641_vm7, %v765_v59, 0  ;;  %v2888_v59 = vld [vmem:[%s3998_s2 + $0x38] sm:$0x3] }
 0x379   : > { %v635_v9 = vpack.c.bf16 %v634_v58, %v633_v57 }
 0x37b   : > { %3085 = vmatmul.mubr.msk.bf16.vlgmr.msra.gmra.mrb[4].mxu0 %vm611_vm5, %v635_v9  ;;  %v2908_v9 = vld [vmem:[%s3998_s2 + $0x78] sm:$0x3] }
 0x37c   : > { %v3456_v61 = vpop.eup %3455  ;;  %3095 = vmatpush3.bf16.msra.mxu0 %v770_v60  ;;  %3096 = vmatprep.mubr.msk.bf16.mxu0 %vm3484_vm0, %v3483_v1  ;;  %v2914_v60 = vld [vmem:[%s3998_s2 + $0x90] sm:$0xff] }
 0x37d   : > { %3106 = vmatprep.subr.bf16.mxu0 %v3483_v1  ;;  %v761_v63 = vmul.f32 %v3456_v61, %v3664_v25  ;;  %v1067_v25 = vld [vmem:[%s3998_s2] sm:$0xff]  ;;  %v2934_v61 = vld [vmem:[%s3998_s2 + $0xd0] sm:$0xff] }
 0x37e   : > { %v3458_v62 = vpop.eup %3457  ;;  %3135 = vmatprep.mubr.msk.f32.mxu1 %vm611_vm5, %v1067_v25 }
 0x37f   : > { %v762_v0 = vmul.f32 %v3458_v62, %v3668_v27  ;;  %v2915_v62 = vld [vmem:[%s3998_s2 + $0x98] sm:$0x3] }
 0x381   : > { %v763_v2 = vpack.c.bf16 %v762_v0, %v761_v63  ;;  %v2935_v63 = vld [vmem:[%s3998_s2 + $0xd8] sm:$0x3]  ;;  %v2912_v0 = vld [vmem:[%s3998_s2 + $0x80] sm:$0xff] }
 0x383   : > { %3097 = vmatmul.mubr.msk.bf16.vlgmr.msra.gmra.mrb[8].mxu0 %vm611_vm5, %v763_v2  ;;  %v2932_v2 = vld [vmem:[%s3998_s2 + $0xc0] sm:$0xff] }
 0x384   : > { %3108 = vmatprep.mubr.msk.bf16.mxu0 %vm3484_vm0, %v3483_v1 }
 0x3a6   : > { %v1009_v5 = vpop.xlane.xlu0 %1008 }
 0x3a8   : > { %v882_v6 = vpop.xlane.xlu1 %881 }
 0x3a9   : > { %3459 = vrcp.f32 %v882_v6  ;;  %v2933_v6 = vld [vmem:[%s3998_s2 + $0xc8] sm:$0x3] }
 0x3aa   : > { %v892_v7 = vpop.permute.xlu0 %891 }
 0x3ab   : > { %v897_v8 = vsel %vm641_vm7, %v892_v7, 0  ;;  %v2922_v7 = vld [vmem:[%s3998_s2 + $0xa0] sm:$0xff] }
 0x3ac   : > { %v885_v10 = vpop.xlane.xlu1 %884  ;;  %3107 = vmatpush3.bf16.msra.mxu0 %v897_v8  ;;  %v2942_v8 = vld [vmem:[%s3998_s2 + $0xe0] sm:$0xff] }
 0x3ad   : > { %3461 = vrcp.f32 %v885_v10  ;;  %3118 = vmatprep.subr.bf16.mxu0 %v3483_v1  ;;  %v2923_v10 = vld [vmem:[%s3998_s2 + $0xa8] sm:$0x3] }
 0x3b0   : > { %v1012_v11 = vpop.xlane.xlu1 %1011 }
 0x3b1   : > { %3463 = vrcp.f32 %v1012_v11  ;;  %v2943_v11 = vld [vmem:[%s3998_s2 + $0xe8] sm:$0x3] }
 0x3b2   : > { %3465 = vrcp.f32 %v1009_v5  ;;  %v2913_v5 = vld [vmem:[%s3998_s2 + $0x88] sm:$0x3] }
 0x3b3   : > { %v3460_v12 = vpop.eup %3459 }
 0x3b4   : > { %v888_v14 = vmul.f32 %v3460_v12, %v3446_v42  ;;  %v1019_v16 = vpop.permute.xlu1 %1018  ;;  %v2892_v42 = vld [vmem:[%s3998_s2 + $0x40] sm:$0xff]  ;;  %v2927_v12 = vld [vmem:[%s3998_s2 + $0xb0] sm:$0xff] }
 0x3b5   : > { %v1024_v19 = vsel %vm641_vm7, %v1019_v16, 0 }
 0x3b7   : > { %v3462_v13 = vpop.eup %3461 }
 0x3b8   : > { %v889_v15 = vmul.f32 %v3462_v13, %v3448_v45  ;;  %v2947_v13 = vld [vmem:[%s3998_s2 + $0xf0] sm:$0xff] }
 0x3ba   : > { %v890_v17 = vpack.c.bf16 %v889_v15, %v888_v14  ;;  %v2928_v14 = vld [vmem:[%s3998_s2 + $0xb8] sm:$0x3] }
 0x3bb   : > { %v3464_v18 = vpop.eup %3463  ;;  %v2948_v15 = vld [vmem:[%s3998_s2 + $0xf8] sm:$0x3] }
 0x3bc   : > { %3109 = vmatmul.mubr.msk.bf16.vlgmr.msra.gmra.mrb[12].mxu0 %vm611_vm5, %v890_v17  ;;  %v3466_v20 = vpop.eup %3465  ;;  %v1016_v21 = vmul.f32 %v3464_v18, %v3680_v47  ;;  %v3427_v18 = vld [vmem:[%s4000_s4] sm:$0xff]  }
 0x3bd   : > { %3119 = vmatpush3.bf16.msra.mxu0 %v1024_v19  ;;  %3120 = vmatprep.mubr.msk.bf16.mxu0 %vm3484_vm0, %v3483_v1  ;;  %v1015_v22 = vmul.f32 %v3466_v20, %v3674_v41  ;;  %v2895_v41 = vld [vmem:[%s3998_s2 + $0x58] sm:$0x3] }
 0x3bf   : > { %v1017_v23 = vpack.c.bf16 %v1016_v21, %v1015_v22 }
 0x3c4   : > { %3121 = vmatmul.mubr.msk.bf16.vlgmr.msra.gmra.mrb[16].mxu0 %vm611_vm5, %v1017_v23 }
 0x3c5   : > { %3128 = vmatprep.mubr.msk.f32.mxu0 %vm611_vm5, %v2874_v24 }
 0x44e   : > { %v679_v26 = vpop.f32.mrb[4].mxu0 }
 0x44f   : > { %v3086_v27 = vpop.f32.mrb[5].mxu0 }
 0x450   : > { %v682_v28 = vpop.f32.mrb[6].mxu0 }
 0x451   : > { %v3719_v30 = vpack.c.bf16 %v682_v28, %v679_v26  ;;  %v3087_v31 = vpop.f32.mrb[7].mxu0  ;;  %v3428_v26 = vld [vmem:[%s4000_s4 + $0x8] sm:$0xff]  }
 0x453   : > { %3272 = vmatprep.subr.msk.bf16.mxu1 %vm3715_vm10, %v3719_v30 }
 0x454   : > { %3275 = vmatpush3.bf16.msk.msra.mxu1 %vm3715_vm10, %v3719_v30 }
 0x456   : > { %v806_v34 = vpop.f32.mrb[8].mxu0 }
 0x457   : > { %v3098_v35 = vpop.f32.mrb[9].mxu0  ;;  %3136 = vmatmul.mubr.msk.f32.vlgmr.msra.gmra.mrb[16].mxu1 %vm611_vm5, %v1068_v32 }
 0x458   : > { %v809_v36 = vpop.f32.mrb[10].mxu0  ;;  %3142 = vmatprep.mubr.msk.f32.mxu1 %vm611_vm5, %v2882_v33 }
 0x459   : > { %v3264_v37 = vpack.c.bf16 %v809_v36, %v806_v34  ;;  %v3099_v38 = vpop.f32.mrb[11].mxu0 }
 0x45b   : > { %3266 = vmatprep.subr.msk.bf16.mxu0 %vm3715_vm10, %v3264_v37 }
 0x45c   : > { %3269 = vmatpush3.bf16.msk.msra.mxu0 %vm3715_vm10, %v3264_v37 }
 0x45d   : > { %3290 = vmatprep.subr.msk.bf16.mxu0 %vm3715_vm10, %v3264_v37 }
 0x45f   : > { %3129 = vmatmul.mubr.msk.f32.vlgmr.msra.gmra.mrb[20].mxu0 %vm611_vm5, %v2875_v39 }
 0x460   : > { %3293 = vmatpush3.bf16.msk.msra.mxu0 %vm3715_vm10, %v3264_v37  ;;  %3156 = vmatprep.mubr.msk.f32.mxu0 %vm611_vm5, %v2894_v40 }
 0x461   : > { %3296 = vmatprep.subr.msk.bf16.mxu0 %vm3715_vm10, %v3719_v30 }
 0x463   : > { %3157 = vmatmul.mubr.msk.f32.vlgmr.msra.gmra.mrb[22].mxu0 %vm611_vm5, %v2895_v41 }
 0x464   : > { %3299 = vmatpush3.bf16.msk.msra.mxu0 %vm3715_vm10, %v3719_v30  ;;  %3163 = vmatprep.mubr.msk.f32.mxu0 %vm611_vm5, %v2892_v42 }
 0x46b   : > { %3164 = vmatmul.mubr.msk.f32.vlgmr.msra.gmra.mrb[22].mxu0 %vm611_vm5, %v2893_v43 }
 0x46c   : > { %3170 = vmatprep.mubr.msk.f32.mxu0 %vm611_vm5, %v2902_v44 }
 0x48f   : > { %v933_v45 = vpop.f32.mrb[12].mxu0 }
 0x490   : > { %v3110_v46 = vpop.f32.mrb[13].mxu0 }
 0x491   : > { %v936_v47 = vpop.f32.mrb[14].mxu0 }
 0x492   : > { %v3276_v48 = vpack.c.bf16 %v936_v47, %v933_v45  ;;  %v3111_v49 = vpop.f32.mrb[15].mxu0 }
 0x493   : > { %v2952_v49 = vld [vmem:[%s4001_s5] ss:$0 sm:$0xff] }
 0x494   : > { %3278 = vmatprep.subr.msk.bf16.mxu1 %vm3715_vm10, %v3276_v48  ;;  %3302 = vmatprep.subr.msk.bf16.mxu0 %vm3715_vm10, %v3276_v48 }
 0x495   : > { %3281 = vmatpush3.bf16.msk.msra.mxu1 %vm3715_vm10, %v3276_v48  ;;  %3305 = vmatpush3.bf16.msk.msra.mxu0 %vm3715_vm10, %v3276_v48 }
 0x497   : > { %v1060_v54 = vpop.f32.mrb[16].mxu0 }
 0x498   : > { %v3122_v55 = vpop.f32.mrb[17].mxu0  ;;  %3143 = vmatmul.mubr.msk.f32.vlgmr.msra.gmra.mrb[16].mxu1 %vm611_vm5, %v2883_v50  ;;  %3171 = vmatmul.mubr.msk.f32.vlgmr.msra.gmra.mrb[22].mxu0 %vm611_vm5, %v2903_v51 }
 0x499   : > { %v1063_v56 = vpop.f32.mrb[18].mxu0  ;;  %3149 = vmatprep.mubr.msk.f32.mxu1 %vm611_vm5, %v2887_v52  ;;  %3177 = vmatprep.mubr.msk.f32.mxu0 %vm611_vm5, %v2907_v53 }
 0x49a   : > { %v3282_v57 = vpack.c.bf16 %v1063_v56, %v1060_v54  ;;  %v3123_v58 = vpop.f32.mrb[19].mxu0 }
 0x49c   : > { %3284 = vmatprep.subr.msk.bf16.mxu1 %vm3715_vm10, %v3282_v57  ;;  %3308 = vmatprep.subr.msk.bf16.mxu0 %vm3715_vm10, %v3282_v57 }
 0x49d   : > { %3287 = vmatpush3.bf16.msk.msra.mxu1 %vm3715_vm10, %v3282_v57  ;;  %3311 = vmatpush3.bf16.msk.msra.mxu0 %vm3715_vm10, %v3282_v57 }
 0x49e   : > { %3314 = vmatprep.subr.msk.bf16.mxu1 %vm3715_vm10, %v3264_v37  ;;  %3338 = vmatprep.subr.msk.bf16.mxu0 %vm3715_vm10, %v3264_v37 }
 0x4a0   : > { %3150 = vmatmul.mubr.msk.f32.vlgmr.msra.gmra.mrb[16].mxu1 %vm611_vm5, %v2888_v59  ;;  %3178 = vmatmul.mubr.msk.f32.vlgmr.msra.gmra.mrb[22].mxu0 %vm611_vm5, %v2908_v9 }
 0x4a1   : > { %3317 = vmatpush3.bf16.msk.msra.mxu1 %vm3715_vm10, %v3264_v37  ;;  %3341 = vmatpush3.bf16.msk.msra.mxu0 %vm3715_vm10, %v3264_v37 }
 0x4a2   : > { %3320 = vmatprep.subr.msk.bf16.mxu1 %vm3715_vm10, %v3719_v30  ;;  %3344 = vmatprep.subr.msk.bf16.mxu0 %vm3715_vm10, %v3719_v30 }
 0x4a3   : > { %3184 = vmatprep.mubr.msk.f32.mxu1 %vm611_vm5, %v2914_v60  ;;  %3212 = vmatprep.mubr.msk.f32.mxu0 %vm611_vm5, %v2934_v61 }
 0x4a4   : > { %3185 = vmatmul.mubr.msk.f32.vlgmr.msra.gmra.mrb[18].mxu1 %vm611_vm5, %v2915_v62  ;;  %3213 = vmatmul.mubr.msk.f32.vlgmr.msra.gmra.mrb[24].mxu0 %vm611_vm5, %v2935_v63 }
 0x4a5   : > { %3323 = vmatpush3.bf16.msk.msra.mxu1 %vm3715_vm10, %v3719_v30  ;;  %3347 = vmatpush3.bf16.msk.msra.mxu0 %vm3715_vm10, %v3719_v30 }
 0x4a6   : > { %3326 = vmatprep.subr.msk.bf16.mxu1 %vm3715_vm10, %v3276_v48  ;;  %3350 = vmatprep.subr.msk.bf16.mxu0 %vm3715_vm10, %v3276_v48 }
 0x4a7   : > { %3191 = vmatprep.mubr.msk.f32.mxu1 %vm611_vm5, %v2912_v0  ;;  %3219 = vmatprep.mubr.msk.f32.mxu0 %vm611_vm5, %v2932_v2 }
 0x4ac   : > { %3192 = vmatmul.mubr.msk.f32.vlgmr.msra.gmra.mrb[18].mxu1 %vm611_vm5, %v2913_v5  ;;  %3220 = vmatmul.mubr.msk.f32.vlgmr.msra.gmra.mrb[24].mxu0 %vm611_vm5, %v2933_v6 }
 0x4ad   : > { %3329 = vmatpush3.bf16.msk.msra.mxu1 %vm3715_vm10, %v3276_v48  ;;  %3353 = vmatpush3.bf16.msk.msra.mxu0 %vm3715_vm10, %v3276_v48 }
 0x4ae   : > { %3332 = vmatprep.subr.msk.bf16.mxu1 %vm3715_vm10, %v3282_v57  ;;  %3356 = vmatprep.subr.msk.bf16.mxu0 %vm3715_vm10, %v3282_v57 }
 0x4af   : > { %3198 = vmatprep.mubr.msk.f32.mxu1 %vm611_vm5, %v2922_v7  ;;  %3226 = vmatprep.mubr.msk.f32.mxu0 %vm611_vm5, %v2942_v8  ;;  %v3430_v7 = vld [vmem:[%s4004_s8 + $0x8] sm:$0xff]   ;;  %v3431_v8 = vld [vmem:[%s4006_s10] sm:$0xff]  }
 0x4b4   : > { %3199 = vmatmul.mubr.msk.f32.vlgmr.msra.gmra.mrb[18].mxu1 %vm611_vm5, %v2923_v10  ;;  %3227 = vmatmul.mubr.msk.f32.vlgmr.msra.gmra.mrb[24].mxu0 %vm611_vm5, %v2943_v11  ;;  %v3432_v10 = vld [vmem:[%s4006_s10 + $0x8] sm:$0xff]  }
 0x4b5   : > { %3335 = vmatpush3.bf16.msk.msra.mxu1 %vm3715_vm10, %v3282_v57  ;;  %3359 = vmatpush3.bf16.msk.msra.mxu0 %vm3715_vm10, %v3282_v57 }
 0x4b6   : > { %3205 = vmatprep.mubr.msk.f32.mxu1 %vm611_vm5, %v2927_v12  ;;  %3233 = vmatprep.mubr.msk.f32.mxu0 %vm611_vm5, %v2947_v13 }
 0x4b7   : > { %3236 = vmatprep.subr.bf16.mxu1 %v3483_v1  ;;  %3244 = vmatprep.subr.bf16.mxu0 %v3483_v1 }
 0x4bc   : > { %3206 = vmatmul.mubr.msk.f32.vlgmr.msra.gmra.mrb[18].mxu1 %vm611_vm5, %v2928_v14  ;;  %3234 = vmatmul.mubr.msk.f32.vlgmr.msra.gmra.mrb[24].mxu0 %vm611_vm5, %v2948_v15 }
 0x4bd   : > { %3240 = vmatprep.mubr.msk.bf16.mxu1 %vm3484_vm0, %v3483_v1  ;;  %3248 = vmatprep.mubr.msk.bf16.mxu0 %vm3484_vm0, %v3483_v1 }
 0x4be   : > { %3237 = vmatpush3.bf16.msra.mxu1 %v3427_v18 }
 0x4bf   : > { %3238 = vmatprep.subr.bf16.mxu1 %v3483_v1 }
 0x4c2   : > { %3239 = vmatpush3.bf16.msra.mxu1 %v3428_v26 }
 0x4c3   : > { %3252 = vmatprep.subr.bf16.mxu1 %v3483_v1 }
 0x532   : > { %v3130_v16 = vpop.f32.mrb[20].mxu0 }
 0x533   : > { %v1148_v17 = vpop.f32.mrb[21].mxu0 }
 0x573   : > { %v3151_v19 = vpop.f32.mrb[16].mxu1  ;;  %v3179_v20 = vpop.f32.mrb[22].mxu0 }
 0x574   : > { %v3360_v21 = vadd.f32 %v3151_v19, %v3130_v16  ;;  %v1408_v22 = vpop.f32.mrb[17].mxu1  ;;  %v1748_v23 = vpop.f32.mrb[23].mxu0  ;;  %v2956_v19 = vld [vmem:[%s4002_s6] ss:$0 sm:$0xff] }
 0x575   : > { %v3361_v24 = vadd.f32 %v1408_v22, %v1148_v17  ;;  %v3410_v25 = vpack.i.bf16 %v3179_v20, %v1748_v23  ;;  %v2957_v23 = vld [vmem:[%s4003_s7] ss:$0 sm:$0xff] }
 0x577   : > { %3411 = vrot.lane.b32.xlu0 %v3410_v25, %s3498_s25 }
 0x58f   : > { %v3207_v27 = vpop.f32.mrb[18].mxu1  ;;  %v3235_v28 = vpop.f32.mrb[24].mxu0 }
 0x590   : > { %v2088_v29 = vpop.f32.mrb[19].mxu1  ;;  %v2428_v30 = vpop.f32.mrb[25].mxu0 }
 0x591   : > { %v3415_v31 = vpack.i.bf16 %v3207_v27, %v2088_v29  ;;  %v3420_v32 = vpack.i.bf16 %v3235_v28, %v2428_v30  ;;  %v3433_v28 = vld [vmem:[%s4006_s10 + $0x10] sm:$0xff]   ;;  %v3434_v29 = vld [vmem:[%s4006_s10 + $0x18] sm:$0xff]   ;;  %v2958_v30 = vld [vmem:[%s4005_s9] ss:$0 sm:$0xff] }
 0x593   : > { %3416 = vrot.lane.b32.xlu0 %v3415_v31, %s3499_s28  ;;  %3421 = vrot.lane.b32.xlu1 %v3420_v32, %s3500_s15 }
 0x5e9   : > { %v3412_v33 = vpop.permute.xlu0 %3411 }
 0x5ea   : > { %v3414_v34 = vunpack.i.h.bf16 %v3412_v33  ;;  %v3413_v35 = vunpack.i.l.bf16 %v3412_v33 }
 0x5ec   : > { %v2464_v42 = vsel %vm553_vm2, %v3360_v21, %v3414_v34  ;;  %v2463_v43 = vsel %vm553_vm2, %v3361_v24, %v3413_v35 }
 0x605   : > { %v3417_v36 = vpop.permute.xlu0 %3416  ;;  %v3422_v37 = vpop.permute.xlu1 %3421 }
 0x606   : > { %v3419_v38 = vunpack.i.h.bf16 %v3417_v36  ;;  %v3418_v39 = vunpack.i.l.bf16 %v3417_v36  ;;  %v3424_v40 = vunpack.i.h.bf16 %v3422_v37  ;;  %v3423_v41 = vunpack.i.l.bf16 %v3422_v37 }
 0x608   : > { %v2466_v44 = vsel %vm2465_vm11, %v2463_v43, %v3418_v39  ;;  %v2467_v45 = vsel %vm2465_vm11, %v2464_v42, %v3419_v38 }
 0x609   : > { %v2470_v46 = vsel %vm2468_vm12, %v2467_v45, %v3424_v40  ;;  %v2469_v47 = vsel %vm2468_vm12, %v2466_v44, %v3423_v41 }
 0x60a   : > { %v2478_v48 = vpack.c.bf16 %v2470_v46, %v2469_v47 }
 0x60c   : > { %3241 = vmatmul.mubr.msk.bf16.vlgmr.msra.gmra.mrb[20].mxu1 %vm502_vm1, %v2478_v48 }
 0x60d   : > { %3260 = vmatprep.mubr.msk.bf16.mxu1 %vm3484_vm0, %v3483_v1  ;;  %3253 = vmatpush3.bf16.msra.mxu1 %v3431_v8 }
 0x60e   : > { %3254 = vmatprep.subr.bf16.mxu1 %v3483_v1 }
 0x611   : > { %3255 = vmatpush3.bf16.msra.mxu1 %v3432_v10 }
 0x612   : > { %3256 = vmatprep.subr.bf16.mxu1 %v3483_v1 }
 0x615   : > { %3257 = vmatpush3.bf16.msra.mxu1 %v3433_v28 }
 0x616   : > { %3258 = vmatprep.subr.bf16.mxu1 %v3483_v1 }
 0x619   : > { %3259 = vmatpush3.bf16.msra.mxu1 %v3434_v29 }
 0x6df   : > { %v2534_v50 = vpop.f32.mrb[20].mxu1 }
 0x6e0   : > { %v2535_v51 = vadd.f32 %v2952_v49, %v2534_v50  ;;  %v3242_v52 = vpop.f32.mrb[21].mxu1 }
 0x6e1   : > { %v2537_v53 = vpop.f32.mrb[22].mxu1 }
 0x6e2   : > { %v2538_v54 = vadd.f32 %v2952_v49, %v2537_v53  ;;  %v3243_v55 = vpop.f32.mrb[23].mxu1  ;;  %v2541_v56 = vadd.f32 %v2535_v51, %v3606_v3 }
 0x6e4   : > { %v2543_v57 = vsel %vm502_vm1, %v2541_v56, 0.0  ;;  %v2542_v58 = vadd.f32 %v2538_v54, %v3608_v4  ;;  %v3429_v4 = vld [vmem:[%s4004_s8] sm:$0xff]  }
 0x6e5   : > { %2544 = vadd.xlane.f32.xlu0 %v2543_v57  ;;  %3245 = vmatpush3.bf16.msra.mxu0 %v3429_v4  ;;  %v2969_v4 = vld [vmem:[%s4009_s13] ss:$0 sm:$0xff] }
 0x6e6   : > { %v2547_v59 = vsel %vm2546_vm13, %v2542_v58, 0.0  ;;  %3246 = vmatprep.subr.bf16.mxu0 %v3483_v1  ;;  %v2962_v1 = vld [vmem:[%s4007_s11] ss:$0 sm:$0xff] }
 0x6e7   : > { %2548 = vadd.xlane.f32.xlu1 %v2547_v59 }
 0x6e9   : > { %3247 = vmatpush3.bf16.msra.mxu0 %v3430_v7 }
 0x772   : > { %v2545_v9 = vpop.xlane.xlu0 %2544 }
 0x773   : > { %v2551_v60 = vmul.f32 0.03125, %v2545_v9 }
 0x774   : > { %v2549_v61 = vpop.xlane.xlu1 %2548 }
 0x775   : > { %v2553_v62 = vsub.f32 %v2541_v56, %v2551_v60  ;;  %v2552_v63 = vmul.f32 0.03125, %v2549_v61 }
 0x777   : > { %v2554_v0 = vsub.f32 %v2542_v58, %v2552_v63  ;;  %v2555_v2 = vmul.f32 %v2553_v62, %v2553_v62 }
 0x779   : > { %v2557_v5 = vsel %vm502_vm1, %v2555_v2, 0.0  ;;  %v2556_v6 = vmul.f32 %v2554_v0, %v2554_v0 }
 0x77a   : > { %2558 = vadd.xlane.f32.xlu0 %v2557_v5  ;;  %v2968_v5 = vld [vmem:[%s4008_s12] ss:$0 sm:$0xff] }
 0x77b   : > { %v2560_v3 = vsel %vm2546_vm13, %v2556_v6, 0.0 }
 0x77e   : > { %2561 = vadd.xlane.f32.xlu0 %v2560_v3 }
 0x807   : > { %v2559_v11 = vpop.xlane.xlu0 %2558 }
 0x808   : > { %v2563_v12 = vmul.f32 0.03125, %v2559_v11 }
 0x80a   : > { %v2565_v13 = vadd.f32 1e-05, %v2563_v12 }
 0x80b   : > { %v2562_v14 = vpop.xlane.xlu0 %2561 }
 0x80c   : > { %3467 = vrsqrt.f32 %v2565_v13  ;;  %v2564_v15 = vmul.f32 0.03125, %v2562_v14 }
 0x80e   : > { %v2566_v16 = vadd.f32 1e-05, %v2564_v15 }
 0x810   : > { %3469 = vrsqrt.f32 %v2566_v16 }
 0x816   : > { %v3468_v17 = vpop.eup %3467 }
 0x817   : > { %v2569_v18 = vmul.f32 %v3468_v17, %v2553_v62 }
 0x819   : > { %v2577_v21 = vmul.f32 %v2956_v19, %v2569_v18 }
 0x81a   : > { %v3470_v20 = vpop.eup %3469 }
 0x81b   : > { %v2570_v22 = vmul.f32 %v3470_v20, %v2554_v0  ;;  %v2585_v25 = vadd.f32 %v2957_v23, %v2577_v21 }
 0x81d   : > { %v2578_v24 = vmul.f32 %v2956_v19, %v2570_v22 }
 0x81f   : > { %v2586_v26 = vadd.f32 %v2957_v23, %v2578_v24 }
 0x821   : > { %v2603_v27 = vpack.c.bf16 %v2586_v26, %v2585_v25 }
 0x823   : > { %3249 = vmatmul.mubr.msk.bf16.vlgmr.msra.gmra.mrb[28].mxu0 %vm502_vm1, %v2603_v27 }
 0x8f6   : > { %v2659_v31 = vpop.f32.mrb[28].mxu0 }
 0x8f7   : > { %v2660_v32 = vadd.f32 %v2958_v30, %v2659_v31  ;;  %v3250_v33 = vpop.f32.mrb[29].mxu0 }
 0x8f8   : > { %v2662_v34 = vpop.f32.mrb[30].mxu0 }
 0x8f9   : > { %v2663_v35 = vadd.f32 %v2958_v30, %v2662_v34  ;;  %v3251_v36 = vpop.f32.mrb[31].mxu0  ;;  %v2666_v37 = vmax.f32 %v2660_v32, 0.0 }
 0x8fb   : > { %v2667_v38 = vmax.f32 %v2663_v35, 0.0 }
 0x8fd   : > { %v2668_v39 = vpack.c.bf16 %v2667_v38, %v2666_v37 }
 0x8ff   : > { %3261 = vmatmul.mubr.msk.bf16.vlgmr.msra.gmra.mrb[24].mxu1 %vm2699_vm14, %v2668_v39 }
 0x9d2   : > { %v2737_v40 = vpop.f32.mrb[24].mxu1 }
 0x9d3   : > { %v2738_v41 = vadd.f32 %v2962_v1, %v2737_v40  ;;  %v3262_v42 = vpop.f32.mrb[25].mxu1 }
 0x9d4   : > { %v2740_v43 = vpop.f32.mrb[26].mxu1 }
 0x9d5   : > { %v2741_v44 = vadd.f32 %v2962_v1, %v2740_v43  ;;  %v3263_v45 = vpop.f32.mrb[27].mxu1  ;;  %v2744_v46 = vadd.f32 %v2738_v41, %v2585_v25 }
 0x9d7   : > { %v2746_v47 = vsel %vm502_vm1, %v2744_v46, 0.0  ;;  %v2745_v48 = vadd.f32 %v2741_v44, %v2586_v26 }
 0x9d8   : > { %2747 = vadd.xlane.f32.xlu1 %v2746_v47 }
 0x9d9   : > { %v2749_v49 = vsel %vm2546_vm13, %v2745_v48, 0.0 }
 0x9da   : > { %2750 = vadd.xlane.f32.xlu0 %v2749_v49 }
 0xa65   : > { %v2748_v50 = vpop.xlane.xlu1 %2747 }
 0xa66   : > { %v2752_v51 = vmul.f32 0.03125, %v2748_v50 }
 0xa67   : > { %v2751_v52 = vpop.xlane.xlu0 %2750 }
 0xa68   : > { %v2754_v53 = vsub.f32 %v2744_v46, %v2752_v51  ;;  %v2753_v54 = vmul.f32 0.03125, %v2751_v52 }
 0xa6a   : > { %v2755_v55 = vsub.f32 %v2745_v48, %v2753_v54  ;;  %v2756_v56 = vmul.f32 %v2754_v53, %v2754_v53 }
 0xa6c   : > { %v2758_v57 = vsel %vm502_vm1, %v2756_v56, 0.0  ;;  %v2757_v58 = vmul.f32 %v2755_v55, %v2755_v55 }
 0xa6d   : > { %2759 = vadd.xlane.f32.xlu1 %v2758_v57 }
 0xa6e   : > { %v2761_v59 = vsel %vm2546_vm13, %v2757_v58, 0.0 }
 0xa6f   : > { %2762 = vadd.xlane.f32.xlu0 %v2761_v59 }
 0xafa   : > { %v2760_v9 = vpop.xlane.xlu1 %2759 }
 0xafb   : > { %v2764_v60 = vmul.f32 0.03125, %v2760_v9 }
 0xafc   : > { %v2763_v61 = vpop.xlane.xlu0 %2762 }
 0xafd   : > { %v2766_v62 = vadd.f32 1e-05, %v2764_v60  ;;  %v2765_v63 = vmul.f32 0.03125, %v2763_v61 }
 0xaff   : > { %3471 = vrsqrt.f32 %v2766_v62  ;;  %v2767_v0 = vadd.f32 1e-05, %v2765_v63 }
 0xb01   : > { %3473 = vrsqrt.f32 %v2767_v0 }
 0xb09   : > { %v3472_v2 = vpop.eup %3471 }
 0xb0a   : > { %v2770_v6 = vmul.f32 %v3472_v2, %v2754_v53 }
 0xb0b   : > { %v3474_v3 = vpop.eup %3473 }
 0xb0c   : > { %v2778_v7 = vmul.f32 %v2968_v5, %v2770_v6  ;;  %v2771_v8 = vmul.f32 %v3474_v3, %v2755_v55 }
 0xb0e   : > { %v2786_v10 = vadd.f32 %v2969_v4, %v2778_v7  ;;  %v2779_v11 = vmul.f32 %v2968_v5, %v2771_v8 }
 0xb10   : > { %2788 = vst.msk [vmem:[%s481_s18] sm:$0xff] %vm502_vm1, %v2786_v10  ;;  %v2787_v12 = vadd.f32 %v2969_v4, %v2779_v11 }
 0xb12   : > { %2789 = vst.msk [vmem:[%s481_s18 + $0x8] sm:$0x3] %vm2546_vm13, %v2787_v12 }
 0xb13 PF: > { %s24_s29 = sadd.s32 1, %s3481_s29  }
 0xb14   : > { %p21_p4 = scmp.ge.s32.totalorder %s24_s29, 4  }
 0xb16   :  { %23 = sbr.rel (!%p21_p4) target bundleno = 1 (0x1), region = 124 }

</bundles_post_ra>
